<compile_context>
chip_gen: v6e
topology: v6e:2x2x1
jax: 0.10.0
libtpu: 0.0.40
codegen_flags: <defaults>
</compile_context>

<pallas_src>
import functools
from typing import NamedTuple

import jax
import jax.numpy as jnp
from jax.experimental import pallas as pl
from jax.experimental.pallas import tpu as pltpu

_NEG = -1e30  # bias of padded softmax classes: exp(_NEG - m) == 0.0 exactly


def _round_up(x, m):
    return ((x + m - 1) // m) * m


class Dims(NamedTuple):
    vocab_size: int
    output_size: int
    embedding_dim: int
    hidden_dim: int
    n_layers: int
    HP: int   # hidden padded to a multiple of 128 lanes
    OP: int   # output classes padded to a multiple of 128 lanes


# ---------------------------------------------------------------------------
# Fused kernel: embedding gather + LSTM stack over time + FC + Softmax
# ---------------------------------------------------------------------------
def _fused_rnn_kernel(*refs, n_layers, B, T, BP, HP):
    # --- unpack refs in pallas_call order: inputs, outputs, scratch ---------
    it = iter(refs)
    tok_ref = next(it)                                   # (B, T)  int32  SMEM
    emb_ref = next(it)                                   # (V, 1, E)       VMEM
    layer_params = [(next(it), next(it), next(it))       # (wih, whh, b) per layer
                    for _ in range(n_layers)]
    h0_ref = next(it)                                    # (L, BP, HP)
    c0_ref = next(it)                                    # (L, BP, HP)
    fcw_ref = next(it)                                   # (HP, OP)
    fcb_ref = next(it)                                   # (1, OP)
    probs_ref = next(it)                                 # (BP, OP)     out
    hT_ref = next(it)                                    # (L, BP, HP)  out
    cT_ref = next(it)                                    # (L, BP, HP)  out
    x_sc = next(it)                                      # (T*BP, E)    scratch
    pre_sc = next(it)                                    # (T*BP, 4*HP) scratch
    seq_sc = next(it)                                    # (T*BP, HP)   scratch

    # --- 1. embedding lookup: ids in SMEM, table resident in VMEM ----------
    x_sc[...] = jnp.zeros_like(x_sc)                     # zero padded batch rows
    for t in range(T):                                   # static unroll (tiny)
        for b in range(B):
            tok = tok_ref[b, t]                          # SMEM scalar
            x_sc[pl.ds(t * BP + b, 1), :] = emb_ref[tok]  # (1, E) row gather

    # --- 2. LSTM stack, time recurrence fully inside the kernel ------------
    h = None
    for layer in range(n_layers):
        wih_ref, whh_ref, b_ref = layer_params[layer]
        src = x_sc if layer == 0 else seq_sc
        # Input projection for ALL timesteps in a single MXU matmul; the bias
        # broadcast is hoisted out of the time loop.  Gate blocks are
        # HP(=128)-lane aligned, so the per-gate slices below are free.
        pre_sc[...] = (
            jnp.dot(src[...], wih_ref[...], preferred_element_type=jnp.float32)
            + b_ref[...])

        h = h0_ref[layer]                                # (BP, HP) in vregs
        c = c0_ref[layer]
        for t in range(T):                               # static unroll -> static slices
            r0 = t * BP
            gates = pre_sc[r0:r0 + BP, :] + jnp.dot(
                h, whh_ref[...], preferred_element_type=jnp.float32)
            i_g = jax.nn.sigmoid(gates[:, 0 * HP:1 * HP])
            f_g = jax.nn.sigmoid(gates[:, 1 * HP:2 * HP])
            g_g = jnp.tanh(gates[:, 2 * HP:3 * HP])
            o_g = jax.nn.sigmoid(gates[:, 3 * HP:4 * HP])
            c = f_g * c + i_g * g_g
            h = o_g * jnp.tanh(c)
            if layer < n_layers - 1:
                seq_sc[r0:r0 + BP, :] = h                # feeds next layer
        # TODO(synk): inter-layer LSTM dropout (drop_prob) is train-only.
        hT_ref[layer] = h                                # single final-state write
        cT_ref[layer] = c

    # --- 3. FC + Softmax on the last timestep of the top layer -------------
    # TODO(synk): nn.Dropout(0.3) before the FC is train-only (eval == identity).
    logits = (jnp.dot(h, fcw_ref[...], preferred_element_type=jnp.float32)
              + fcb_ref[...])                            # padded classes get -1e30
    m = jnp.max(logits, axis=-1, keepdims=True)
    e = jnp.exp(logits - m)
    s = jnp.sum(e, axis=-1, keepdims=True)
    probs_ref[...] = e * pl.reciprocal(s)                # EUP reciprocal (exact)


# ---------------------------------------------------------------------------
# Parameter init (real PyTorch-like shapes) and packing into padded layout
# ---------------------------------------------------------------------------
def init_params(key, vocab_size, output_size, embedding_dim, hidden_dim, n_layers):
    keys = jax.random.split(key, 2 + 4 * n_layers + 2)
    k_iter = iter(keys)
    params = {}
    params["embedding"] = jax.random.normal(
        next(k_iter), (vocab_size, embedding_dim), dtype=jnp.float32)

    bound = 1.0 / jnp.sqrt(jnp.float32(hidden_dim))
    lstm = []
    for layer in range(n_layers):
        in_dim = embedding_dim if layer == 0 else hidden_dim
        w_ih = jax.random.uniform(next(k_iter), (in_dim, 4 * hidden_dim),
                                  minval=-bound, maxval=bound, dtype=jnp.float32)
        w_hh = jax.random.uniform(next(k_iter), (hidden_dim, 4 * hidden_dim),
                                  minval=-bound, maxval=bound, dtype=jnp.float32)
        b_ih = jax.random.uniform(next(k_iter), (4 * hidden_dim,),
                                  minval=-bound, maxval=bound, dtype=jnp.float32)
        b_hh = jax.random.uniform(next(k_iter), (4 * hidden_dim,),
                                  minval=-bound, maxval=bound, dtype=jnp.float32)
        lstm.append((w_ih, w_hh, (b_ih + b_hh).reshape(1, 4 * hidden_dim)))
    params["lstm"] = lstm

    params["fc_w"] = jax.random.uniform(next(k_iter), (hidden_dim, output_size),
                                        minval=-bound, maxval=bound, dtype=jnp.float32)
    params["fc_b"] = jax.random.uniform(next(k_iter), (1, output_size),
                                        minval=-bound, maxval=bound, dtype=jnp.float32)
    return params


def _pad_gate_cols(w, H, HP):
    """(in_dim, 4H) -> (in_dim, 4*HP): each gate block zero-padded to HP lanes."""
    in_dim = w.shape[0]
    return jnp.pad(w.reshape(in_dim, 4, H),
                   ((0, 0), (0, 0), (0, HP - H))).reshape(in_dim, 4 * HP)


def pack_params(params, dims):
    """One-time repack of real-shaped params into the padded kernel layout."""
    H, HP, O, OP = dims.hidden_dim, dims.HP, dims.output_size, dims.OP
    emb = params["embedding"].reshape(dims.vocab_size, 1, dims.embedding_dim)
    layers = []
    for li, (w_ih, w_hh, b) in enumerate(params["lstm"]):
        wih_p = _pad_gate_cols(w_ih, H, HP)              # layer0: (E, 4HP)
        if li > 0:                                       # layers>=1: pad rows H->HP
            wih_p = jnp.pad(wih_p, ((0, HP - H), (0, 0)))
        whh_p = jnp.pad(_pad_gate_cols(w_hh, H, HP), ((0, HP - H), (0, 0)))
        b_p = _pad_gate_cols(b, H, HP)                   # (1, 4HP)
        layers.append((wih_p, whh_p, b_p))
    fc_w = jnp.pad(params["fc_w"], ((0, HP - H), (0, OP - O)))
    fc_b = jnp.concatenate(
        [params["fc_b"], jnp.full((1, OP - O), _NEG, jnp.float32)], axis=1)
    return {"emb": emb, "layers": layers, "fc_w": fc_w, "fc_b": fc_b}


def init_hidden(n_layers, batch_size, hidden_dim):
    z = jnp.zeros((n_layers, batch_size, hidden_dim), dtype=jnp.float32)
    return (z, z)


# ---------------------------------------------------------------------------
# Forward pass (mirrors ClassificationRNN.forward, eval mode)
# ---------------------------------------------------------------------------
@functools.partial(jax.jit, static_argnames=("dims",))
def classification_rnn_forward(packed, x_tokens, hidden, *, dims):
    B, T = x_tokens.shape
    L, H, HP, O, OP = (dims.n_layers, dims.hidden_dim, dims.HP,
                       dims.output_size, dims.OP)
    E = dims.embedding_dim
    BP = max(8, _round_up(B, 8))

    h0, c0 = hidden
    h0p = jnp.pad(h0.astype(jnp.float32), ((0, 0), (0, BP - B), (0, HP - H)))
    c0p = jnp.pad(c0.astype(jnp.float32), ((0, 0), (0, BP - B), (0, HP - H)))

    flat_w = []
    for (wih, whh, b) in packed["layers"]:
        flat_w += [wih, whh, b]

    kernel = functools.partial(_fused_rnn_kernel, n_layers=L, B=B, T=T,
                               BP=BP, HP=HP)
    n_vmem_inputs = 1 + 3 * L + 4   # emb, per-layer (wih,whh,b), h0,c0,fc_w,fc_b

    probs, h_n, c_n = pl.pallas_call(
        kernel,
        out_shape=(
            jax.ShapeDtypeStruct((BP, OP), jnp.float32),
            jax.ShapeDtypeStruct((L, BP, HP), jnp.float32),
            jax.ShapeDtypeStruct((L, BP, HP), jnp.float32),
        ),
        in_specs=[pl.BlockSpec(memory_space=pltpu.MemorySpace.SMEM)]
        + [pl.BlockSpec(memory_space=pltpu.MemorySpace.VMEM)] * n_vmem_inputs,
        out_specs=(
            pl.BlockSpec(memory_space=pltpu.MemorySpace.VMEM),
            pl.BlockSpec(memory_space=pltpu.MemorySpace.VMEM),
            pl.BlockSpec(memory_space=pltpu.MemorySpace.VMEM),
        ),
        scratch_shapes=[
            pltpu.VMEM((T * BP, E), jnp.float32),        # gathered embeddings
            pltpu.VMEM((T * BP, 4 * HP), jnp.float32),   # fused input projection
            pltpu.VMEM((T * BP, HP), jnp.float32),       # inter-layer sequence
        ],
    )(x_tokens.astype(jnp.int32), packed["emb"], *flat_w, h0p, c0p,
      packed["fc_w"], packed["fc_b"])

    sig_out = probs[:B, :O]                              # module's Softmax output
    new_hidden = (h_n[:, :B, :H], c_n[:, :B, :H])
    return sig_out, new_hidden


# ---------------------------------------------------------------------------
# Pure-JAX reference (for numerical validation only)
# ---------------------------------------------------------------------------
def reference_forward(params, x_tokens, hidden):
    emb = params["embedding"][x_tokens]                  # (B, T, E)
    h0, c0 = hidden
    hs, cs = list(h0), list(c0)
    layer_in = emb
    for li, (w_ih, w_hh, b) in enumerate(params["lstm"]):
        H = w_hh.shape[0]
        hl, cl = hs[li], cs[li]
        outs = []
        for t in range(layer_in.shape[1]):
            g = layer_in[:, t, :] @ w_ih + hl @ w_hh + b
            i = jax.nn.sigmoid(g[:, 0 * H:1 * H])
            f = jax.nn.sigmoid(g[:, 1 * H:2 * H])
            gg = jnp.tanh(g[:, 2 * H:3 * H])
            o = jax.nn.sigmoid(g[:, 3 * H:4 * H])
            cl = f * cl + i * gg
            hl = o * jnp.tanh(cl)
            outs.append(hl)
        layer_in = jnp.stack(outs, axis=1)
        hs[li], cs[li] = hl, cl
    logits = layer_in[:, -1, :] @ params["fc_w"] + params["fc_b"]
    probs = jax.nn.softmax(logits, axis=-1)
    return probs, (jnp.stack(hs), jnp.stack(cs))


# ---------------------------------------------------------------------------
if __name__ == "__main__":
    vocab_size = 50
    output_size = 3
    embedding_dim = 16
    hidden_dim = 32
    n_layers = 2
    batch = 2
    seq_len = 8

    key = jax.random.PRNGKey(0)
    pkey, xkey = jax.random.split(key)

    dims = Dims(vocab_size, output_size, embedding_dim, hidden_dim, n_layers,
                HP=_round_up(hidden_dim, 128), OP=_round_up(output_size, 128))

    params = init_params(pkey, vocab_size, output_size, embedding_dim,
                         hidden_dim, n_layers)
    packed = pack_params(params, dims)

    x_tokens = jax.random.randint(xkey, (batch, seq_len), 0, vocab_size,
                                  dtype=jnp.int32)
    hidden = init_hidden(n_layers, batch, hidden_dim)

    sig_out, (h_n, c_n) = classification_rnn_forward(packed, x_tokens, hidden,
                                                     dims=dims)
    jax.block_until_ready((sig_out, h_n, c_n))

    assert sig_out.shape == (batch, output_size)
    assert h_n.shape == (n_layers, batch, hidden_dim)
    assert c_n.shape == (n_layers, batch, hidden_dim)
    assert bool(jnp.all(jnp.isfinite(sig_out)))
    assert bool(jnp.allclose(jnp.sum(sig_out, axis=1), 1.0, atol=1e-5))

    # numerical check against a pure-JAX reference of the same module
    with jax.default_matmul_precision("float32"):
        ref_out, (ref_h, ref_c) = reference_forward(params, x_tokens, hidden)
    assert bool(jnp.allclose(sig_out, ref_out, atol=2e-3))
    assert bool(jnp.allclose(h_n, ref_h, atol=2e-3))
    assert bool(jnp.allclose(c_n, ref_c, atol=2e-3))

    print("KERNEL_OK")
</pallas_src>

<mosaic_0001>
module attributes {stable_mosaic.version = 11 : i64} {
  func.func @_fused_rnn_kernel(%arg0: memref<2x8xi32, #tpu.memory_space<smem>>, %arg1: memref<50x1x16xf32, #tpu.memory_space<vmem>>, %arg2: memref<16x512xf32, #tpu.memory_space<vmem>>, %arg3: memref<128x512xf32, #tpu.memory_space<vmem>>, %arg4: memref<1x512xf32, #tpu.memory_space<vmem>>, %arg5: memref<128x512xf32, #tpu.memory_space<vmem>>, %arg6: memref<128x512xf32, #tpu.memory_space<vmem>>, %arg7: memref<1x512xf32, #tpu.memory_space<vmem>>, %arg8: memref<2x8x128xf32, #tpu.memory_space<vmem>>, %arg9: memref<2x8x128xf32, #tpu.memory_space<vmem>>, %arg10: memref<128x128xf32, #tpu.memory_space<vmem>>, %arg11: memref<1x128xf32, #tpu.memory_space<vmem>>, %arg12: memref<8x128xf32, #tpu.memory_space<vmem>>, %arg13: memref<2x8x128xf32, #tpu.memory_space<vmem>>, %arg14: memref<2x8x128xf32, #tpu.memory_space<vmem>>, %arg15: memref<64x16xf32, #tpu.memory_space<vmem>>, %arg16: memref<64x512xf32, #tpu.memory_space<vmem>>, %arg17: memref<64x128xf32, #tpu.memory_space<vmem>>) attributes {dimension_semantics = [], scalar_prefetch = 0 : i64, scratch_operands = 3 : i64, tpu.core_type = #tpu.core_type<tc>} {
    %cst = arith.constant 0.000000e+00 : f32
    %0 = vector.broadcast %cst : f32 to vector<64x16xf32>
    %c0 = arith.constant 0 : index
    %c0_0 = arith.constant 0 : index
    %1 = vector.load %arg15[%c0, %c0_0] : memref<64x16xf32, #tpu.memory_space<vmem>>, vector<64x16xf32>
    tpu.vector_store %arg15[%c0, %c0_0], %0 {strides = array<i32>} : memref<64x16xf32, #tpu.memory_space<vmem>>, vector<64x16xf32>,
    %c0_1 = arith.constant 0 : index
    %c0_2 = arith.constant 0 : index
    %2 = memref.load %arg0[%c0_1, %c0_2] : memref<2x8xi32, #tpu.memory_space<smem>>
    %3 = arith.index_cast %2 : i32 to index
    %c0_3 = arith.constant 0 : index
    %c0_4 = arith.constant 0 : index
    %4 = vector.load %arg1[%3, %c0_3, %c0_4] : memref<50x1x16xf32, #tpu.memory_space<vmem>>, vector<1x1x16xf32>
    %5 = vector.shape_cast %4 : vector<1x1x16xf32> to vector<1x16xf32>
    %c0_5 = arith.constant 0 : index
    %c0_6 = arith.constant 0 : index
    %6 = vector.load %arg15[%c0_5, %c0_6] : memref<64x16xf32, #tpu.memory_space<vmem>>, vector<1x16xf32>
    tpu.vector_store %arg15[%c0_5, %c0_6], %5 {strides = array<i32>} : memref<64x16xf32, #tpu.memory_space<vmem>>, vector<1x16xf32>,
    %c1 = arith.constant 1 : index
    %c0_7 = arith.constant 0 : index
    %7 = memref.load %arg0[%c1, %c0_7] : memref<2x8xi32, #tpu.memory_space<smem>>
    %8 = arith.index_cast %7 : i32 to index
    %c0_8 = arith.constant 0 : index
    %c0_9 = arith.constant 0 : index
    %9 = vector.load %arg1[%8, %c0_8, %c0_9] : memref<50x1x16xf32, #tpu.memory_space<vmem>>, vector<1x1x16xf32>
    %10 = vector.shape_cast %9 : vector<1x1x16xf32> to vector<1x16xf32>
    %c1_10 = arith.constant 1 : index
    %c0_11 = arith.constant 0 : index
    %11 = vector.load %arg15[%c1_10, %c0_11] : memref<64x16xf32, #tpu.memory_space<vmem>>, vector<1x16xf32>
    tpu.vector_store %arg15[%c1_10, %c0_11], %10 {strides = array<i32>} : memref<64x16xf32, #tpu.memory_space<vmem>>, vector<1x16xf32>,
    %c0_12 = arith.constant 0 : index
    %c1_13 = arith.constant 1 : index
    %12 = memref.load %arg0[%c0_12, %c1_13] : memref<2x8xi32, #tpu.memory_space<smem>>
    %13 = arith.index_cast %12 : i32 to index
    %c0_14 = arith.constant 0 : index
    %c0_15 = arith.constant 0 : index
    %14 = vector.load %arg1[%13, %c0_14, %c0_15] : memref<50x1x16xf32, #tpu.memory_space<vmem>>, vector<1x1x16xf32>
    %15 = vector.shape_cast %14 : vector<1x1x16xf32> to vector<1x16xf32>
    %c8 = arith.constant 8 : index
    %c0_16 = arith.constant 0 : index
    %16 = vector.load %arg15[%c8, %c0_16] : memref<64x16xf32, #tpu.memory_space<vmem>>, vector<1x16xf32>
    tpu.vector_store %arg15[%c8, %c0_16], %15 {strides = array<i32>} : memref<64x16xf32, #tpu.memory_space<vmem>>, vector<1x16xf32>,
    %c1_17 = arith.constant 1 : index
    %c1_18 = arith.constant 1 : index
    %17 = memref.load %arg0[%c1_17, %c1_18] : memref<2x8xi32, #tpu.memory_space<smem>>
    %18 = arith.index_cast %17 : i32 to index
    %c0_19 = arith.constant 0 : index
    %c0_20 = arith.constant 0 : index
    %19 = vector.load %arg1[%18, %c0_19, %c0_20] : memref<50x1x16xf32, #tpu.memory_space<vmem>>, vector<1x1x16xf32>
    %20 = vector.shape_cast %19 : vector<1x1x16xf32> to vector<1x16xf32>
    %c9 = arith.constant 9 : index
    %c0_21 = arith.constant 0 : index
    %21 = vector.load %arg15[%c9, %c0_21] : memref<64x16xf32, #tpu.memory_space<vmem>>, vector<1x16xf32>
    tpu.vector_store %arg15[%c9, %c0_21], %20 {strides = array<i32>} : memref<64x16xf32, #tpu.memory_space<vmem>>, vector<1x16xf32>,
    %c0_22 = arith.constant 0 : index
    %c2 = arith.constant 2 : index
    %22 = memref.load %arg0[%c0_22, %c2] : memref<2x8xi32, #tpu.memory_space<smem>>
    %23 = arith.index_cast %22 : i32 to index
    %c0_23 = arith.constant 0 : index
    %c0_24 = arith.constant 0 : index
    %24 = vector.load %arg1[%23, %c0_23, %c0_24] : memref<50x1x16xf32, #tpu.memory_space<vmem>>, vector<1x1x16xf32>
    %25 = vector.shape_cast %24 : vector<1x1x16xf32> to vector<1x16xf32>
    %c16 = arith.constant 16 : index
    %c0_25 = arith.constant 0 : index
    %26 = vector.load %arg15[%c16, %c0_25] : memref<64x16xf32, #tpu.memory_space<vmem>>, vector<1x16xf32>
    tpu.vector_store %arg15[%c16, %c0_25], %25 {strides = array<i32>} : memref<64x16xf32, #tpu.memory_space<vmem>>, vector<1x16xf32>,
    %c1_26 = arith.constant 1 : index
    %c2_27 = arith.constant 2 : index
    %27 = memref.load %arg0[%c1_26, %c2_27] : memref<2x8xi32, #tpu.memory_space<smem>>
    %28 = arith.index_cast %27 : i32 to index
    %c0_28 = arith.constant 0 : index
    %c0_29 = arith.constant 0 : index
    %29 = vector.load %arg1[%28, %c0_28, %c0_29] : memref<50x1x16xf32, #tpu.memory_space<vmem>>, vector<1x1x16xf32>
    %30 = vector.shape_cast %29 : vector<1x1x16xf32> to vector<1x16xf32>
    %c17 = arith.constant 17 : index
    %c0_30 = arith.constant 0 : index
    %31 = vector.load %arg15[%c17, %c0_30] : memref<64x16xf32, #tpu.memory_space<vmem>>, vector<1x16xf32>
    tpu.vector_store %arg15[%c17, %c0_30], %30 {strides = array<i32>} : memref<64x16xf32, #tpu.memory_space<vmem>>, vector<1x16xf32>,
    %c0_31 = arith.constant 0 : index
    %c3 = arith.constant 3 : index
    %32 = memref.load %arg0[%c0_31, %c3] : memref<2x8xi32, #tpu.memory_space<smem>>
    %33 = arith.index_cast %32 : i32 to index
    %c0_32 = arith.constant 0 : index
    %c0_33 = arith.constant 0 : index
    %34 = vector.load %arg1[%33, %c0_32, %c0_33] : memref<50x1x16xf32, #tpu.memory_space<vmem>>, vector<1x1x16xf32>
    %35 = vector.shape_cast %34 : vector<1x1x16xf32> to vector<1x16xf32>
    %c24 = arith.constant 24 : index
    %c0_34 = arith.constant 0 : index
    %36 = vector.load %arg15[%c24, %c0_34] : memref<64x16xf32, #tpu.memory_space<vmem>>, vector<1x16xf32>
    tpu.vector_store %arg15[%c24, %c0_34], %35 {strides = array<i32>} : memref<64x16xf32, #tpu.memory_space<vmem>>, vector<1x16xf32>,
    %c1_35 = arith.constant 1 : index
    %c3_36 = arith.constant 3 : index
    %37 = memref.load %arg0[%c1_35, %c3_36] : memref<2x8xi32, #tpu.memory_space<smem>>
    %38 = arith.index_cast %37 : i32 to index
    %c0_37 = arith.constant 0 : index
    %c0_38 = arith.constant 0 : index
    %39 = vector.load %arg1[%38, %c0_37, %c0_38] : memref<50x1x16xf32, #tpu.memory_space<vmem>>, vector<1x1x16xf32>
    %40 = vector.shape_cast %39 : vector<1x1x16xf32> to vector<1x16xf32>
    %c25 = arith.constant 25 : index
    %c0_39 = arith.constant 0 : index
    %41 = vector.load %arg15[%c25, %c0_39] : memref<64x16xf32, #tpu.memory_space<vmem>>, vector<1x16xf32>
    tpu.vector_store %arg15[%c25, %c0_39], %40 {strides = array<i32>} : memref<64x16xf32, #tpu.memory_space<vmem>>, vector<1x16xf32>,
    %c0_40 = arith.constant 0 : index
    %c4 = arith.constant 4 : index
    %42 = memref.load %arg0[%c0_40, %c4] : memref<2x8xi32, #tpu.memory_space<smem>>
    %43 = arith.index_cast %42 : i32 to index
    %c0_41 = arith.constant 0 : index
    %c0_42 = arith.constant 0 : index
    %44 = vector.load %arg1[%43, %c0_41, %c0_42] : memref<50x1x16xf32, #tpu.memory_space<vmem>>, vector<1x1x16xf32>
    %45 = vector.shape_cast %44 : vector<1x1x16xf32> to vector<1x16xf32>
    %c32 = arith.constant 32 : index
    %c0_43 = arith.constant 0 : index
    %46 = vector.load %arg15[%c32, %c0_43] : memref<64x16xf32, #tpu.memory_space<vmem>>, vector<1x16xf32>
    tpu.vector_store %arg15[%c32, %c0_43], %45 {strides = array<i32>} : memref<64x16xf32, #tpu.memory_space<vmem>>, vector<1x16xf32>,
    %c1_44 = arith.constant 1 : index
    %c4_45 = arith.constant 4 : index
    %47 = memref.load %arg0[%c1_44, %c4_45] : memref<2x8xi32, #tpu.memory_space<smem>>
    %48 = arith.index_cast %47 : i32 to index
    %c0_46 = arith.constant 0 : index
    %c0_47 = arith.constant 0 : index
    %49 = vector.load %arg1[%48, %c0_46, %c0_47] : memref<50x1x16xf32, #tpu.memory_space<vmem>>, vector<1x1x16xf32>
    %50 = vector.shape_cast %49 : vector<1x1x16xf32> to vector<1x16xf32>
    %c33 = arith.constant 33 : index
    %c0_48 = arith.constant 0 : index
    %51 = vector.load %arg15[%c33, %c0_48] : memref<64x16xf32, #tpu.memory_space<vmem>>, vector<1x16xf32>
    tpu.vector_store %arg15[%c33, %c0_48], %50 {strides = array<i32>} : memref<64x16xf32, #tpu.memory_space<vmem>>, vector<1x16xf32>,
    %c0_49 = arith.constant 0 : index
    %c5 = arith.constant 5 : index
    %52 = memref.load %arg0[%c0_49, %c5] : memref<2x8xi32, #tpu.memory_space<smem>>
    %53 = arith.index_cast %52 : i32 to index
    %c0_50 = arith.constant 0 : index
    %c0_51 = arith.constant 0 : index
    %54 = vector.load %arg1[%53, %c0_50, %c0_51] : memref<50x1x16xf32, #tpu.memory_space<vmem>>, vector<1x1x16xf32>
    %55 = vector.shape_cast %54 : vector<1x1x16xf32> to vector<1x16xf32>
    %c40 = arith.constant 40 : index
    %c0_52 = arith.constant 0 : index
    %56 = vector.load %arg15[%c40, %c0_52] : memref<64x16xf32, #tpu.memory_space<vmem>>, vector<1x16xf32>
    tpu.vector_store %arg15[%c40, %c0_52], %55 {strides = array<i32>} : memref<64x16xf32, #tpu.memory_space<vmem>>, vector<1x16xf32>,
    %c1_53 = arith.constant 1 : index
    %c5_54 = arith.constant 5 : index
    %57 = memref.load %arg0[%c1_53, %c5_54] : memref<2x8xi32, #tpu.memory_space<smem>>
    %58 = arith.index_cast %57 : i32 to index
    %c0_55 = arith.constant 0 : index
    %c0_56 = arith.constant 0 : index
    %59 = vector.load %arg1[%58, %c0_55, %c0_56] : memref<50x1x16xf32, #tpu.memory_space<vmem>>, vector<1x1x16xf32>
    %60 = vector.shape_cast %59 : vector<1x1x16xf32> to vector<1x16xf32>
    %c41 = arith.constant 41 : index
    %c0_57 = arith.constant 0 : index
    %61 = vector.load %arg15[%c41, %c0_57] : memref<64x16xf32, #tpu.memory_space<vmem>>, vector<1x16xf32>
    tpu.vector_store %arg15[%c41, %c0_57], %60 {strides = array<i32>} : memref<64x16xf32, #tpu.memory_space<vmem>>, vector<1x16xf32>,
    %c0_58 = arith.constant 0 : index
    %c6 = arith.constant 6 : index
    %62 = memref.load %arg0[%c0_58, %c6] : memref<2x8xi32, #tpu.memory_space<smem>>
    %63 = arith.index_cast %62 : i32 to index
    %c0_59 = arith.constant 0 : index
    %c0_60 = arith.constant 0 : index
    %64 = vector.load %arg1[%63, %c0_59, %c0_60] : memref<50x1x16xf32, #tpu.memory_space<vmem>>, vector<1x1x16xf32>
    %65 = vector.shape_cast %64 : vector<1x1x16xf32> to vector<1x16xf32>
    %c48 = arith.constant 48 : index
    %c0_61 = arith.constant 0 : index
    %66 = vector.load %arg15[%c48, %c0_61] : memref<64x16xf32, #tpu.memory_space<vmem>>, vector<1x16xf32>
    tpu.vector_store %arg15[%c48, %c0_61], %65 {strides = array<i32>} : memref<64x16xf32, #tpu.memory_space<vmem>>, vector<1x16xf32>,
    %c1_62 = arith.constant 1 : index
    %c6_63 = arith.constant 6 : index
    %67 = memref.load %arg0[%c1_62, %c6_63] : memref<2x8xi32, #tpu.memory_space<smem>>
    %68 = arith.index_cast %67 : i32 to index
    %c0_64 = arith.constant 0 : index
    %c0_65 = arith.constant 0 : index
    %69 = vector.load %arg1[%68, %c0_64, %c0_65] : memref<50x1x16xf32, #tpu.memory_space<vmem>>, vector<1x1x16xf32>
    %70 = vector.shape_cast %69 : vector<1x1x16xf32> to vector<1x16xf32>
    %c49 = arith.constant 49 : index
    %c0_66 = arith.constant 0 : index
    %71 = vector.load %arg15[%c49, %c0_66] : memref<64x16xf32, #tpu.memory_space<vmem>>, vector<1x16xf32>
    tpu.vector_store %arg15[%c49, %c0_66], %70 {strides = array<i32>} : memref<64x16xf32, #tpu.memory_space<vmem>>, vector<1x16xf32>,
    %c0_67 = arith.constant 0 : index
    %c7 = arith.constant 7 : index
    %72 = memref.load %arg0[%c0_67, %c7] : memref<2x8xi32, #tpu.memory_space<smem>>
    %73 = arith.index_cast %72 : i32 to index
    %c0_68 = arith.constant 0 : index
    %c0_69 = arith.constant 0 : index
    %74 = vector.load %arg1[%73, %c0_68, %c0_69] : memref<50x1x16xf32, #tpu.memory_space<vmem>>, vector<1x1x16xf32>
    %75 = vector.shape_cast %74 : vector<1x1x16xf32> to vector<1x16xf32>
    %c56 = arith.constant 56 : index
    %c0_70 = arith.constant 0 : index
    %76 = vector.load %arg15[%c56, %c0_70] : memref<64x16xf32, #tpu.memory_space<vmem>>, vector<1x16xf32>
    tpu.vector_store %arg15[%c56, %c0_70], %75 {strides = array<i32>} : memref<64x16xf32, #tpu.memory_space<vmem>>, vector<1x16xf32>,
    %c1_71 = arith.constant 1 : index
    %c7_72 = arith.constant 7 : index
    %77 = memref.load %arg0[%c1_71, %c7_72] : memref<2x8xi32, #tpu.memory_space<smem>>
    %78 = arith.index_cast %77 : i32 to index
    %c0_73 = arith.constant 0 : index
    %c0_74 = arith.constant 0 : index
    %79 = vector.load %arg1[%78, %c0_73, %c0_74] : memref<50x1x16xf32, #tpu.memory_space<vmem>>, vector<1x1x16xf32>
    %80 = vector.shape_cast %79 : vector<1x1x16xf32> to vector<1x16xf32>
    %c57 = arith.constant 57 : index
    %c0_75 = arith.constant 0 : index
    %81 = vector.load %arg15[%c57, %c0_75] : memref<64x16xf32, #tpu.memory_space<vmem>>, vector<1x16xf32>
    tpu.vector_store %arg15[%c57, %c0_75], %80 {strides = array<i32>} : memref<64x16xf32, #tpu.memory_space<vmem>>, vector<1x16xf32>,
    %c0_76 = arith.constant 0 : index
    %c0_77 = arith.constant 0 : index
    %82 = vector.load %arg15[%c0_76, %c0_77] : memref<64x16xf32, #tpu.memory_space<vmem>>, vector<64x16xf32>
    %c0_78 = arith.constant 0 : index
    %c0_79 = arith.constant 0 : index
    %83 = vector.load %arg2[%c0_78, %c0_79] : memref<16x512xf32, #tpu.memory_space<vmem>>, vector<16x512xf32>
    %cst_80 = arith.constant dense<0.000000e+00> : vector<64x512xf32>
    %84 = tpu.matmul %82, %83, %cst_80 {dimension_numbers = #tpu.dot_dimension_numbers<[1], [0], [0], [1], [0, 0, 1, 1], [], []>} : vector<64x16xf32>, vector<16x512xf32>, vector<64x512xf32> -> vector<64x512xf32>
    %c0_81 = arith.constant 0 : index
    %c0_82 = arith.constant 0 : index
    %85 = vector.load %arg4[%c0_81, %c0_82] : memref<1x512xf32, #tpu.memory_space<vmem>>, vector<1x512xf32>
    %86 = vector.broadcast %85 : vector<1x512xf32> to vector<64x512xf32>
    %87 = arith.addf %84, %86 : vector<64x512xf32>
    %c0_83 = arith.constant 0 : index
    %c0_84 = arith.constant 0 : index
    %88 = vector.load %arg16[%c0_83, %c0_84] : memref<64x512xf32, #tpu.memory_space<vmem>>, vector<64x512xf32>
    tpu.vector_store %arg16[%c0_83, %c0_84], %87 {strides = array<i32>} : memref<64x512xf32, #tpu.memory_space<vmem>>, vector<64x512xf32>,
    %c0_85 = arith.constant 0 : index
    %c0_86 = arith.constant 0 : index
    %c0_87 = arith.constant 0 : index
    %89 = vector.load %arg8[%c0_85, %c0_86, %c0_87] : memref<2x8x128xf32, #tpu.memory_space<vmem>>, vector<1x8x128xf32>
    %90 = vector.shape_cast %89 : vector<1x8x128xf32> to vector<8x128xf32>
    %c0_88 = arith.constant 0 : index
    %c0_89 = arith.constant 0 : index
    %c0_90 = arith.constant 0 : index
    %91 = vector.load %arg9[%c0_88, %c0_89, %c0_90] : memref<2x8x128xf32, #tpu.memory_space<vmem>>, vector<1x8x128xf32>
    %92 = vector.shape_cast %91 : vector<1x8x128xf32> to vector<8x128xf32>
    %c0_91 = arith.constant 0 : index
    %c0_92 = arith.constant 0 : index
    %93 = vector.load %arg16[%c0_91, %c0_92] : memref<64x512xf32, #tpu.memory_space<vmem>>, vector<8x512xf32>
    %c0_93 = arith.constant 0 : index
    %c0_94 = arith.constant 0 : index
    %94 = vector.load %arg3[%c0_93, %c0_94] : memref<128x512xf32, #tpu.memory_space<vmem>>, vector<128x512xf32>
    %cst_95 = arith.constant dense<0.000000e+00> : vector<8x512xf32>
    %95 = tpu.matmul %90, %94, %cst_95 {dimension_numbers = #tpu.dot_dimension_numbers<[1], [0], [0], [1], [0, 0, 1, 1], [], []>} : vector<8x128xf32>, vector<128x512xf32>, vector<8x512xf32> -> vector<8x512xf32>
    %96 = arith.addf %93, %95 : vector<8x512xf32>
    %97 = vector.extract_strided_slice %96 {offsets = [0, 0], sizes = [8, 128], strides = [1, 1]} : vector<8x512xf32> to vector<8x128xf32>
    %98 = arith.negf %97 : vector<8x128xf32>
    %99 = math.exp %98 : vector<8x128xf32>
    %cst_96 = arith.constant 1.000000e+00 : f32
    %100 = vector.broadcast %cst_96 : f32 to vector<8x128xf32>
    %101 = arith.addf %100, %99 : vector<8x128xf32>
    %102 = arith.divf %100, %101 : vector<8x128xf32>
    %103 = vector.extract_strided_slice %96 {offsets = [0, 128], sizes = [8, 128], strides = [1, 1]} : vector<8x512xf32> to vector<8x128xf32>
    %104 = arith.negf %103 : vector<8x128xf32>
    %105 = math.exp %104 : vector<8x128xf32>
    %cst_97 = arith.constant 1.000000e+00 : f32
    %106 = vector.broadcast %cst_97 : f32 to vector<8x128xf32>
    %107 = arith.addf %106, %105 : vector<8x128xf32>
    %108 = arith.divf %106, %107 : vector<8x128xf32>
    %109 = vector.extract_strided_slice %96 {offsets = [0, 256], sizes = [8, 128], strides = [1, 1]} : vector<8x512xf32> to vector<8x128xf32>
    %110 = math.tanh %109 : vector<8x128xf32>
    %111 = vector.extract_strided_slice %96 {offsets = [0, 384], sizes = [8, 128], strides = [1, 1]} : vector<8x512xf32> to vector<8x128xf32>
    %112 = arith.negf %111 : vector<8x128xf32>
    %113 = math.exp %112 : vector<8x128xf32>
    %cst_98 = arith.constant 1.000000e+00 : f32
    %114 = vector.broadcast %cst_98 : f32 to vector<8x128xf32>
    %115 = arith.addf %114, %113 : vector<8x128xf32>
    %116 = arith.divf %114, %115 : vector<8x128xf32>
    %117 = arith.mulf %108, %92 : vector<8x128xf32>
    %118 = arith.mulf %102, %110 : vector<8x128xf32>
    %119 = arith.addf %117, %118 : vector<8x128xf32>
    %120 = math.tanh %119 : vector<8x128xf32>
    %121 = arith.mulf %116, %120 : vector<8x128xf32>
    %c0_99 = arith.constant 0 : index
    %c0_100 = arith.constant 0 : index
    %122 = vector.load %arg17[%c0_99, %c0_100] : memref<64x128xf32, #tpu.memory_space<vmem>>, vector<8x128xf32>
    tpu.vector_store %arg17[%c0_99, %c0_100], %121 {strides = array<i32>} : memref<64x128xf32, #tpu.memory_space<vmem>>, vector<8x128xf32>,
    %c8_101 = arith.constant 8 : index
    %c0_102 = arith.constant 0 : index
    %123 = vector.load %arg16[%c8_101, %c0_102] : memref<64x512xf32, #tpu.memory_space<vmem>>, vector<8x512xf32>
    %c0_103 = arith.constant 0 : index
    %c0_104 = arith.constant 0 : index
    %124 = vector.load %arg3[%c0_103, %c0_104] : memref<128x512xf32, #tpu.memory_space<vmem>>, vector<128x512xf32>
    %cst_105 = arith.constant dense<0.000000e+00> : vector<8x512xf32>
    %125 = tpu.matmul %121, %124, %cst_105 {dimension_numbers = #tpu.dot_dimension_numbers<[1], [0], [0], [1], [0, 0, 1, 1], [], []>} : vector<8x128xf32>, vector<128x512xf32>, vector<8x512xf32> -> vector<8x512xf32>
    %126 = arith.addf %123, %125 : vector<8x512xf32>
    %127 = vector.extract_strided_slice %126 {offsets = [0, 0], sizes = [8, 128], strides = [1, 1]} : vector<8x512xf32> to vector<8x128xf32>
    %128 = arith.negf %127 : vector<8x128xf32>
    %129 = math.exp %128 : vector<8x128xf32>
    %cst_106 = arith.constant 1.000000e+00 : f32
    %130 = vector.broadcast %cst_106 : f32 to vector<8x128xf32>
    %131 = arith.addf %130, %129 : vector<8x128xf32>
    %132 = arith.divf %130, %131 : vector<8x128xf32>
    %133 = vector.extract_strided_slice %126 {offsets = [0, 128], sizes = [8, 128], strides = [1, 1]} : vector<8x512xf32> to vector<8x128xf32>
    %134 = arith.negf %133 : vector<8x128xf32>
    %135 = math.exp %134 : vector<8x128xf32>
    %cst_107 = arith.constant 1.000000e+00 : f32
    %136 = vector.broadcast %cst_107 : f32 to vector<8x128xf32>
    %137 = arith.addf %136, %135 : vector<8x128xf32>
    %138 = arith.divf %136, %137 : vector<8x128xf32>
    %139 = vector.extract_strided_slice %126 {offsets = [0, 256], sizes = [8, 128], strides = [1, 1]} : vector<8x512xf32> to vector<8x128xf32>
    %140 = math.tanh %139 : vector<8x128xf32>
    %141 = vector.extract_strided_slice %126 {offsets = [0, 384], sizes = [8, 128], strides = [1, 1]} : vector<8x512xf32> to vector<8x128xf32>
    %142 = arith.negf %141 : vector<8x128xf32>
    %143 = math.exp %142 : vector<8x128xf32>
    %cst_108 = arith.constant 1.000000e+00 : f32
    %144 = vector.broadcast %cst_108 : f32 to vector<8x128xf32>
    %145 = arith.addf %144, %143 : vector<8x128xf32>
    %146 = arith.divf %144, %145 : vector<8x128xf32>
    %147 = arith.mulf %138, %119 : vector<8x128xf32>
    %148 = arith.mulf %132, %140 : vector<8x128xf32>
    %149 = arith.addf %147, %148 : vector<8x128xf32>
    %150 = math.tanh %149 : vector<8x128xf32>
    %151 = arith.mulf %146, %150 : vector<8x128xf32>
    %c8_109 = arith.constant 8 : index
    %c0_110 = arith.constant 0 : index
    %152 = vector.load %arg17[%c8_109, %c0_110] : memref<64x128xf32, #tpu.memory_space<vmem>>, vector<8x128xf32>
    tpu.vector_store %arg17[%c8_109, %c0_110], %151 {strides = array<i32>} : memref<64x128xf32, #tpu.memory_space<vmem>>, vector<8x128xf32>,
    %c16_111 = arith.constant 16 : index
    %c0_112 = arith.constant 0 : index
    %153 = vector.load %arg16[%c16_111, %c0_112] : memref<64x512xf32, #tpu.memory_space<vmem>>, vector<8x512xf32>
    %c0_113 = arith.constant 0 : index
    %c0_114 = arith.constant 0 : index
    %154 = vector.load %arg3[%c0_113, %c0_114] : memref<128x512xf32, #tpu.memory_space<vmem>>, vector<128x512xf32>
    %cst_115 = arith.constant dense<0.000000e+00> : vector<8x512xf32>
    %155 = tpu.matmul %151, %154, %cst_115 {dimension_numbers = #tpu.dot_dimension_numbers<[1], [0], [0], [1], [0, 0, 1, 1], [], []>} : vector<8x128xf32>, vector<128x512xf32>, vector<8x512xf32> -> vector<8x512xf32>
    %156 = arith.addf %153, %155 : vector<8x512xf32>
    %157 = vector.extract_strided_slice %156 {offsets = [0, 0], sizes = [8, 128], strides = [1, 1]} : vector<8x512xf32> to vector<8x128xf32>
    %158 = arith.negf %157 : vector<8x128xf32>
    %159 = math.exp %158 : vector<8x128xf32>
    %cst_116 = arith.constant 1.000000e+00 : f32
    %160 = vector.broadcast %cst_116 : f32 to vector<8x128xf32>
    %161 = arith.addf %160, %159 : vector<8x128xf32>
    %162 = arith.divf %160, %161 : vector<8x128xf32>
    %163 = vector.extract_strided_slice %156 {offsets = [0, 128], sizes = [8, 128], strides = [1, 1]} : vector<8x512xf32> to vector<8x128xf32>
    %164 = arith.negf %163 : vector<8x128xf32>
    %165 = math.exp %164 : vector<8x128xf32>
    %cst_117 = arith.constant 1.000000e+00 : f32
    %166 = vector.broadcast %cst_117 : f32 to vector<8x128xf32>
    %167 = arith.addf %166, %165 : vector<8x128xf32>
    %168 = arith.divf %166, %167 : vector<8x128xf32>
    %169 = vector.extract_strided_slice %156 {offsets = [0, 256], sizes = [8, 128], strides = [1, 1]} : vector<8x512xf32> to vector<8x128xf32>
    %170 = math.tanh %169 : vector<8x128xf32>
    %171 = vector.extract_strided_slice %156 {offsets = [0, 384], sizes = [8, 128], strides = [1, 1]} : vector<8x512xf32> to vector<8x128xf32>
    %172 = arith.negf %171 : vector<8x128xf32>
    %173 = math.exp %172 : vector<8x128xf32>
    %cst_118 = arith.constant 1.000000e+00 : f32
    %174 = vector.broadcast %cst_118 : f32 to vector<8x128xf32>
    %175 = arith.addf %174, %173 : vector<8x128xf32>
    %176 = arith.divf %174, %175 : vector<8x128xf32>
    %177 = arith.mulf %168, %149 : vector<8x128xf32>
    %178 = arith.mulf %162, %170 : vector<8x128xf32>
    %179 = arith.addf %177, %178 : vector<8x128xf32>
    %180 = math.tanh %179 : vector<8x128xf32>
    %181 = arith.mulf %176, %180 : vector<8x128xf32>
    %c16_119 = arith.constant 16 : index
    %c0_120 = arith.constant 0 : index
    %182 = vector.load %arg17[%c16_119, %c0_120] : memref<64x128xf32, #tpu.memory_space<vmem>>, vector<8x128xf32>
    tpu.vector_store %arg17[%c16_119, %c0_120], %181 {strides = array<i32>} : memref<64x128xf32, #tpu.memory_space<vmem>>, vector<8x128xf32>,
    %c24_121 = arith.constant 24 : index
    %c0_122 = arith.constant 0 : index
    %183 = vector.load %arg16[%c24_121, %c0_122] : memref<64x512xf32, #tpu.memory_space<vmem>>, vector<8x512xf32>
    %c0_123 = arith.constant 0 : index
    %c0_124 = arith.constant 0 : index
    %184 = vector.load %arg3[%c0_123, %c0_124] : memref<128x512xf32, #tpu.memory_space<vmem>>, vector<128x512xf32>
    %cst_125 = arith.constant dense<0.000000e+00> : vector<8x512xf32>
    %185 = tpu.matmul %181, %184, %cst_125 {dimension_numbers = #tpu.dot_dimension_numbers<[1], [0], [0], [1], [0, 0, 1, 1], [], []>} : vector<8x128xf32>, vector<128x512xf32>, vector<8x512xf32> -> vector<8x512xf32>
    %186 = arith.addf %183, %185 : vector<8x512xf32>
    %187 = vector.extract_strided_slice %186 {offsets = [0, 0], sizes = [8, 128], strides = [1, 1]} : vector<8x512xf32> to vector<8x128xf32>
    %188 = arith.negf %187 : vector<8x128xf32>
    %189 = math.exp %188 : vector<8x128xf32>
    %cst_126 = arith.constant 1.000000e+00 : f32
    %190 = vector.broadcast %cst_126 : f32 to vector<8x128xf32>
    %191 = arith.addf %190, %189 : vector<8x128xf32>
    %192 = arith.divf %190, %191 : vector<8x128xf32>
    %193 = vector.extract_strided_slice %186 {offsets = [0, 128], sizes = [8, 128], strides = [1, 1]} : vector<8x512xf32> to vector<8x128xf32>
    %194 = arith.negf %193 : vector<8x128xf32>
    %195 = math.exp %194 : vector<8x128xf32>
    %cst_127 = arith.constant 1.000000e+00 : f32
    %196 = vector.broadcast %cst_127 : f32 to vector<8x128xf32>
    %197 = arith.addf %196, %195 : vector<8x128xf32>
    %198 = arith.divf %196, %197 : vector<8x128xf32>
    %199 = vector.extract_strided_slice %186 {offsets = [0, 256], sizes = [8, 128], strides = [1, 1]} : vector<8x512xf32> to vector<8x128xf32>
    %200 = math.tanh %199 : vector<8x128xf32>
    %201 = vector.extract_strided_slice %186 {offsets = [0, 384], sizes = [8, 128], strides = [1, 1]} : vector<8x512xf32> to vector<8x128xf32>
    %202 = arith.negf %201 : vector<8x128xf32>
    %203 = math.exp %202 : vector<8x128xf32>
    %cst_128 = arith.constant 1.000000e+00 : f32
    %204 = vector.broadcast %cst_128 : f32 to vector<8x128xf32>
    %205 = arith.addf %204, %203 : vector<8x128xf32>
    %206 = arith.divf %204, %205 : vector<8x128xf32>
    %207 = arith.mulf %198, %179 : vector<8x128xf32>
    %208 = arith.mulf %192, %200 : vector<8x128xf32>
    %209 = arith.addf %207, %208 : vector<8x128xf32>
    %210 = math.tanh %209 : vector<8x128xf32>
    %211 = arith.mulf %206, %210 : vector<8x128xf32>
    %c24_129 = arith.constant 24 : index
    %c0_130 = arith.constant 0 : index
    %212 = vector.load %arg17[%c24_129, %c0_130] : memref<64x128xf32, #tpu.memory_space<vmem>>, vector<8x128xf32>
    tpu.vector_store %arg17[%c24_129, %c0_130], %211 {strides = array<i32>} : memref<64x128xf32, #tpu.memory_space<vmem>>, vector<8x128xf32>,
    %c32_131 = arith.constant 32 : index
    %c0_132 = arith.constant 0 : index
    %213 = vector.load %arg16[%c32_131, %c0_132] : memref<64x512xf32, #tpu.memory_space<vmem>>, vector<8x512xf32>
    %c0_133 = arith.constant 0 : index
    %c0_134 = arith.constant 0 : index
    %214 = vector.load %arg3[%c0_133, %c0_134] : memref<128x512xf32, #tpu.memory_space<vmem>>, vector<128x512xf32>
    %cst_135 = arith.constant dense<0.000000e+00> : vector<8x512xf32>
    %215 = tpu.matmul %211, %214, %cst_135 {dimension_numbers = #tpu.dot_dimension_numbers<[1], [0], [0], [1], [0, 0, 1, 1], [], []>} : vector<8x128xf32>, vector<128x512xf32>, vector<8x512xf32> -> vector<8x512xf32>
    %216 = arith.addf %213, %215 : vector<8x512xf32>
    %217 = vector.extract_strided_slice %216 {offsets = [0, 0], sizes = [8, 128], strides = [1, 1]} : vector<8x512xf32> to vector<8x128xf32>
    %218 = arith.negf %217 : vector<8x128xf32>
    %219 = math.exp %218 : vector<8x128xf32>
    %cst_136 = arith.constant 1.000000e+00 : f32
    %220 = vector.broadcast %cst_136 : f32 to vector<8x128xf32>
    %221 = arith.addf %220, %219 : vector<8x128xf32>
    %222 = arith.divf %220, %221 : vector<8x128xf32>
    %223 = vector.extract_strided_slice %216 {offsets = [0, 128], sizes = [8, 128], strides = [1, 1]} : vector<8x512xf32> to vector<8x128xf32>
    %224 = arith.negf %223 : vector<8x128xf32>
    %225 = math.exp %224 : vector<8x128xf32>
    %cst_137 = arith.constant 1.000000e+00 : f32
    %226 = vector.broadcast %cst_137 : f32 to vector<8x128xf32>
    %227 = arith.addf %226, %225 : vector<8x128xf32>
    %228 = arith.divf %226, %227 : vector<8x128xf32>
    %229 = vector.extract_strided_slice %216 {offsets = [0, 256], sizes = [8, 128], strides = [1, 1]} : vector<8x512xf32> to vector<8x128xf32>
    %230 = math.tanh %229 : vector<8x128xf32>
    %231 = vector.extract_strided_slice %216 {offsets = [0, 384], sizes = [8, 128], strides = [1, 1]} : vector<8x512xf32> to vector<8x128xf32>
    %232 = arith.negf %231 : vector<8x128xf32>
    %233 = math.exp %232 : vector<8x128xf32>
    %cst_138 = arith.constant 1.000000e+00 : f32
    %234 = vector.broadcast %cst_138 : f32 to vector<8x128xf32>
    %235 = arith.addf %234, %233 : vector<8x128xf32>
    %236 = arith.divf %234, %235 : vector<8x128xf32>
    %237 = arith.mulf %228, %209 : vector<8x128xf32>
    %238 = arith.mulf %222, %230 : vector<8x128xf32>
    %239 = arith.addf %237, %238 : vector<8x128xf32>
    %240 = math.tanh %239 : vector<8x128xf32>
    %241 = arith.mulf %236, %240 : vector<8x128xf32>
    %c32_139 = arith.constant 32 : index
    %c0_140 = arith.constant 0 : index
    %242 = vector.load %arg17[%c32_139, %c0_140] : memref<64x128xf32, #tpu.memory_space<vmem>>, vector<8x128xf32>
    tpu.vector_store %arg17[%c32_139, %c0_140], %241 {strides = array<i32>} : memref<64x128xf32, #tpu.memory_space<vmem>>, vector<8x128xf32>,
    %c40_141 = arith.constant 40 : index
    %c0_142 = arith.constant 0 : index
    %243 = vector.load %arg16[%c40_141, %c0_142] : memref<64x512xf32, #tpu.memory_space<vmem>>, vector<8x512xf32>
    %c0_143 = arith.constant 0 : index
    %c0_144 = arith.constant 0 : index
    %244 = vector.load %arg3[%c0_143, %c0_144] : memref<128x512xf32, #tpu.memory_space<vmem>>, vector<128x512xf32>
    %cst_145 = arith.constant dense<0.000000e+00> : vector<8x512xf32>
    %245 = tpu.matmul %241, %244, %cst_145 {dimension_numbers = #tpu.dot_dimension_numbers<[1], [0], [0], [1], [0, 0, 1, 1], [], []>} : vector<8x128xf32>, vector<128x512xf32>, vector<8x512xf32> -> vector<8x512xf32>
    %246 = arith.addf %243, %245 : vector<8x512xf32>
    %247 = vector.extract_strided_slice %246 {offsets = [0, 0], sizes = [8, 128], strides = [1, 1]} : vector<8x512xf32> to vector<8x128xf32>
    %248 = arith.negf %247 : vector<8x128xf32>
    %249 = math.exp %248 : vector<8x128xf32>
    %cst_146 = arith.constant 1.000000e+00 : f32
    %250 = vector.broadcast %cst_146 : f32 to vector<8x128xf32>
    %251 = arith.addf %250, %249 : vector<8x128xf32>
    %252 = arith.divf %250, %251 : vector<8x128xf32>
    %253 = vector.extract_strided_slice %246 {offsets = [0, 128], sizes = [8, 128], strides = [1, 1]} : vector<8x512xf32> to vector<8x128xf32>
    %254 = arith.negf %253 : vector<8x128xf32>
    %255 = math.exp %254 : vector<8x128xf32>
    %cst_147 = arith.constant 1.000000e+00 : f32
    %256 = vector.broadcast %cst_147 : f32 to vector<8x128xf32>
    %257 = arith.addf %256, %255 : vector<8x128xf32>
    %258 = arith.divf %256, %257 : vector<8x128xf32>
    %259 = vector.extract_strided_slice %246 {offsets = [0, 256], sizes = [8, 128], strides = [1, 1]} : vector<8x512xf32> to vector<8x128xf32>
    %260 = math.tanh %259 : vector<8x128xf32>
    %261 = vector.extract_strided_slice %246 {offsets = [0, 384], sizes = [8, 128], strides = [1, 1]} : vector<8x512xf32> to vector<8x128xf32>
    %262 = arith.negf %261 : vector<8x128xf32>
    %263 = math.exp %262 : vector<8x128xf32>
    %cst_148 = arith.constant 1.000000e+00 : f32
    %264 = vector.broadcast %cst_148 : f32 to vector<8x128xf32>
    %265 = arith.addf %264, %263 : vector<8x128xf32>
    %266 = arith.divf %264, %265 : vector<8x128xf32>
    %267 = arith.mulf %258, %239 : vector<8x128xf32>
    %268 = arith.mulf %252, %260 : vector<8x128xf32>
    %269 = arith.addf %267, %268 : vector<8x128xf32>
    %270 = math.tanh %269 : vector<8x128xf32>
    %271 = arith.mulf %266, %270 : vector<8x128xf32>
    %c40_149 = arith.constant 40 : index
    %c0_150 = arith.constant 0 : index
    %272 = vector.load %arg17[%c40_149, %c0_150] : memref<64x128xf32, #tpu.memory_space<vmem>>, vector<8x128xf32>
    tpu.vector_store %arg17[%c40_149, %c0_150], %271 {strides = array<i32>} : memref<64x128xf32, #tpu.memory_space<vmem>>, vector<8x128xf32>,
    %c48_151 = arith.constant 48 : index
    %c0_152 = arith.constant 0 : index
    %273 = vector.load %arg16[%c48_151, %c0_152] : memref<64x512xf32, #tpu.memory_space<vmem>>, vector<8x512xf32>
    %c0_153 = arith.constant 0 : index
    %c0_154 = arith.constant 0 : index
    %274 = vector.load %arg3[%c0_153, %c0_154] : memref<128x512xf32, #tpu.memory_space<vmem>>, vector<128x512xf32>
    %cst_155 = arith.constant dense<0.000000e+00> : vector<8x512xf32>
    %275 = tpu.matmul %271, %274, %cst_155 {dimension_numbers = #tpu.dot_dimension_numbers<[1], [0], [0], [1], [0, 0, 1, 1], [], []>} : vector<8x128xf32>, vector<128x512xf32>, vector<8x512xf32> -> vector<8x512xf32>
    %276 = arith.addf %273, %275 : vector<8x512xf32>
    %277 = vector.extract_strided_slice %276 {offsets = [0, 0], sizes = [8, 128], strides = [1, 1]} : vector<8x512xf32> to vector<8x128xf32>
    %278 = arith.negf %277 : vector<8x128xf32>
    %279 = math.exp %278 : vector<8x128xf32>
    %cst_156 = arith.constant 1.000000e+00 : f32
    %280 = vector.broadcast %cst_156 : f32 to vector<8x128xf32>
    %281 = arith.addf %280, %279 : vector<8x128xf32>
    %282 = arith.divf %280, %281 : vector<8x128xf32>
    %283 = vector.extract_strided_slice %276 {offsets = [0, 128], sizes = [8, 128], strides = [1, 1]} : vector<8x512xf32> to vector<8x128xf32>
    %284 = arith.negf %283 : vector<8x128xf32>
    %285 = math.exp %284 : vector<8x128xf32>
    %cst_157 = arith.constant 1.000000e+00 : f32
    %286 = vector.broadcast %cst_157 : f32 to vector<8x128xf32>
    %287 = arith.addf %286, %285 : vector<8x128xf32>
    %288 = arith.divf %286, %287 : vector<8x128xf32>
    %289 = vector.extract_strided_slice %276 {offsets = [0, 256], sizes = [8, 128], strides = [1, 1]} : vector<8x512xf32> to vector<8x128xf32>
    %290 = math.tanh %289 : vector<8x128xf32>
    %291 = vector.extract_strided_slice %276 {offsets = [0, 384], sizes = [8, 128], strides = [1, 1]} : vector<8x512xf32> to vector<8x128xf32>
    %292 = arith.negf %291 : vector<8x128xf32>
    %293 = math.exp %292 : vector<8x128xf32>
    %cst_158 = arith.constant 1.000000e+00 : f32
    %294 = vector.broadcast %cst_158 : f32 to vector<8x128xf32>
    %295 = arith.addf %294, %293 : vector<8x128xf32>
    %296 = arith.divf %294, %295 : vector<8x128xf32>
    %297 = arith.mulf %288, %269 : vector<8x128xf32>
    %298 = arith.mulf %282, %290 : vector<8x128xf32>
    %299 = arith.addf %297, %298 : vector<8x128xf32>
    %300 = math.tanh %299 : vector<8x128xf32>
    %301 = arith.mulf %296, %300 : vector<8x128xf32>
    %c48_159 = arith.constant 48 : index
    %c0_160 = arith.constant 0 : index
    %302 = vector.load %arg17[%c48_159, %c0_160] : memref<64x128xf32, #tpu.memory_space<vmem>>, vector<8x128xf32>
    tpu.vector_store %arg17[%c48_159, %c0_160], %301 {strides = array<i32>} : memref<64x128xf32, #tpu.memory_space<vmem>>, vector<8x128xf32>,
    %c56_161 = arith.constant 56 : index
    %c0_162 = arith.constant 0 : index
    %303 = vector.load %arg16[%c56_161, %c0_162] : memref<64x512xf32, #tpu.memory_space<vmem>>, vector<8x512xf32>
    %c0_163 = arith.constant 0 : index
    %c0_164 = arith.constant 0 : index
    %304 = vector.load %arg3[%c0_163, %c0_164] : memref<128x512xf32, #tpu.memory_space<vmem>>, vector<128x512xf32>
    %cst_165 = arith.constant dense<0.000000e+00> : vector<8x512xf32>
    %305 = tpu.matmul %301, %304, %cst_165 {dimension_numbers = #tpu.dot_dimension_numbers<[1], [0], [0], [1], [0, 0, 1, 1], [], []>} : vector<8x128xf32>, vector<128x512xf32>, vector<8x512xf32> -> vector<8x512xf32>
    %306 = arith.addf %303, %305 : vector<8x512xf32>
    %307 = vector.extract_strided_slice %306 {offsets = [0, 0], sizes = [8, 128], strides = [1, 1]} : vector<8x512xf32> to vector<8x128xf32>
    %308 = arith.negf %307 : vector<8x128xf32>
    %309 = math.exp %308 : vector<8x128xf32>
    %cst_166 = arith.constant 1.000000e+00 : f32
    %310 = vector.broadcast %cst_166 : f32 to vector<8x128xf32>
    %311 = arith.addf %310, %309 : vector<8x128xf32>
    %312 = arith.divf %310, %311 : vector<8x128xf32>
    %313 = vector.extract_strided_slice %306 {offsets = [0, 128], sizes = [8, 128], strides = [1, 1]} : vector<8x512xf32> to vector<8x128xf32>
    %314 = arith.negf %313 : vector<8x128xf32>
    %315 = math.exp %314 : vector<8x128xf32>
    %cst_167 = arith.constant 1.000000e+00 : f32
    %316 = vector.broadcast %cst_167 : f32 to vector<8x128xf32>
    %317 = arith.addf %316, %315 : vector<8x128xf32>
    %318 = arith.divf %316, %317 : vector<8x128xf32>
    %319 = vector.extract_strided_slice %306 {offsets = [0, 256], sizes = [8, 128], strides = [1, 1]} : vector<8x512xf32> to vector<8x128xf32>
    %320 = math.tanh %319 : vector<8x128xf32>
    %321 = vector.extract_strided_slice %306 {offsets = [0, 384], sizes = [8, 128], strides = [1, 1]} : vector<8x512xf32> to vector<8x128xf32>
    %322 = arith.negf %321 : vector<8x128xf32>
    %323 = math.exp %322 : vector<8x128xf32>
    %cst_168 = arith.constant 1.000000e+00 : f32
    %324 = vector.broadcast %cst_168 : f32 to vector<8x128xf32>
    %325 = arith.addf %324, %323 : vector<8x128xf32>
    %326 = arith.divf %324, %325 : vector<8x128xf32>
    %327 = arith.mulf %318, %299 : vector<8x128xf32>
    %328 = arith.mulf %312, %320 : vector<8x128xf32>
    %329 = arith.addf %327, %328 : vector<8x128xf32>
    %330 = math.tanh %329 : vector<8x128xf32>
    %331 = arith.mulf %326, %330 : vector<8x128xf32>
    %c56_169 = arith.constant 56 : index
    %c0_170 = arith.constant 0 : index
    %332 = vector.load %arg17[%c56_169, %c0_170] : memref<64x128xf32, #tpu.memory_space<vmem>>, vector<8x128xf32>
    tpu.vector_store %arg17[%c56_169, %c0_170], %331 {strides = array<i32>} : memref<64x128xf32, #tpu.memory_space<vmem>>, vector<8x128xf32>,
    %c0_171 = arith.constant 0 : index
    %c0_172 = arith.constant 0 : index
    %c0_173 = arith.constant 0 : index
    %333 = vector.load %arg13[%c0_171, %c0_172, %c0_173] : memref<2x8x128xf32, #tpu.memory_space<vmem>>, vector<1x8x128xf32>
    %334 = vector.shape_cast %333 : vector<1x8x128xf32> to vector<8x128xf32>
    %335 = vector.shape_cast %331 : vector<8x128xf32> to vector<1x8x128xf32>
    tpu.vector_store %arg13[%c0_171, %c0_172, %c0_173], %335 {strides = array<i32>} : memref<2x8x128xf32, #tpu.memory_space<vmem>>, vector<1x8x128xf32>,
    %c0_174 = arith.constant 0 : index
    %c0_175 = arith.constant 0 : index
    %c0_176 = arith.constant 0 : index
    %336 = vector.load %arg14[%c0_174, %c0_175, %c0_176] : memref<2x8x128xf32, #tpu.memory_space<vmem>>, vector<1x8x128xf32>
    %337 = vector.shape_cast %336 : vector<1x8x128xf32> to vector<8x128xf32>
    %338 = vector.shape_cast %329 : vector<8x128xf32> to vector<1x8x128xf32>
    tpu.vector_store %arg14[%c0_174, %c0_175, %c0_176], %338 {strides = array<i32>} : memref<2x8x128xf32, #tpu.memory_space<vmem>>, vector<1x8x128xf32>,
    %c0_177 = arith.constant 0 : index
    %c0_178 = arith.constant 0 : index
    %339 = vector.load %arg17[%c0_177, %c0_178] : memref<64x128xf32, #tpu.memory_space<vmem>>, vector<64x128xf32>
    %c0_179 = arith.constant 0 : index
    %c0_180 = arith.constant 0 : index
    %340 = vector.load %arg5[%c0_179, %c0_180] : memref<128x512xf32, #tpu.memory_space<vmem>>, vector<128x512xf32>
    %cst_181 = arith.constant dense<0.000000e+00> : vector<64x512xf32>
    %341 = tpu.matmul %339, %340, %cst_181 {dimension_numbers = #tpu.dot_dimension_numbers<[1], [0], [0], [1], [0, 0, 1, 1], [], []>} : vector<64x128xf32>, vector<128x512xf32>, vector<64x512xf32> -> vector<64x512xf32>
    %c0_182 = arith.constant 0 : index
    %c0_183 = arith.constant 0 : index
    %342 = vector.load %arg7[%c0_182, %c0_183] : memref<1x512xf32, #tpu.memory_space<vmem>>, vector<1x512xf32>
    %343 = vector.broadcast %342 : vector<1x512xf32> to vector<64x512xf32>
    %344 = arith.addf %341, %343 : vector<64x512xf32>
    %c0_184 = arith.constant 0 : index
    %c0_185 = arith.constant 0 : index
    %345 = vector.load %arg16[%c0_184, %c0_185] : memref<64x512xf32, #tpu.memory_space<vmem>>, vector<64x512xf32>
    tpu.vector_store %arg16[%c0_184, %c0_185], %344 {strides = array<i32>} : memref<64x512xf32, #tpu.memory_space<vmem>>, vector<64x512xf32>,
    %c1_186 = arith.constant 1 : index
    %c0_187 = arith.constant 0 : index
    %c0_188 = arith.constant 0 : index
    %346 = vector.load %arg8[%c1_186, %c0_187, %c0_188] : memref<2x8x128xf32, #tpu.memory_space<vmem>>, vector<1x8x128xf32>
    %347 = vector.shape_cast %346 : vector<1x8x128xf32> to vector<8x128xf32>
    %c1_189 = arith.constant 1 : index
    %c0_190 = arith.constant 0 : index
    %c0_191 = arith.constant 0 : index
    %348 = vector.load %arg9[%c1_189, %c0_190, %c0_191] : memref<2x8x128xf32, #tpu.memory_space<vmem>>, vector<1x8x128xf32>
    %349 = vector.shape_cast %348 : vector<1x8x128xf32> to vector<8x128xf32>
    %c0_192 = arith.constant 0 : index
    %c0_193 = arith.constant 0 : index
    %350 = vector.load %arg16[%c0_192, %c0_193] : memref<64x512xf32, #tpu.memory_space<vmem>>, vector<8x512xf32>
    %c0_194 = arith.constant 0 : index
    %c0_195 = arith.constant 0 : index
    %351 = vector.load %arg6[%c0_194, %c0_195] : memref<128x512xf32, #tpu.memory_space<vmem>>, vector<128x512xf32>
    %cst_196 = arith.constant dense<0.000000e+00> : vector<8x512xf32>
    %352 = tpu.matmul %347, %351, %cst_196 {dimension_numbers = #tpu.dot_dimension_numbers<[1], [0], [0], [1], [0, 0, 1, 1], [], []>} : vector<8x128xf32>, vector<128x512xf32>, vector<8x512xf32> -> vector<8x512xf32>
    %353 = arith.addf %350, %352 : vector<8x512xf32>
    %354 = vector.extract_strided_slice %353 {offsets = [0, 0], sizes = [8, 128], strides = [1, 1]} : vector<8x512xf32> to vector<8x128xf32>
    %355 = arith.negf %354 : vector<8x128xf32>
    %356 = math.exp %355 : vector<8x128xf32>
    %cst_197 = arith.constant 1.000000e+00 : f32
    %357 = vector.broadcast %cst_197 : f32 to vector<8x128xf32>
    %358 = arith.addf %357, %356 : vector<8x128xf32>
    %359 = arith.divf %357, %358 : vector<8x128xf32>
    %360 = vector.extract_strided_slice %353 {offsets = [0, 128], sizes = [8, 128], strides = [1, 1]} : vector<8x512xf32> to vector<8x128xf32>
    %361 = arith.negf %360 : vector<8x128xf32>
    %362 = math.exp %361 : vector<8x128xf32>
    %cst_198 = arith.constant 1.000000e+00 : f32
    %363 = vector.broadcast %cst_198 : f32 to vector<8x128xf32>
    %364 = arith.addf %363, %362 : vector<8x128xf32>
    %365 = arith.divf %363, %364 : vector<8x128xf32>
    %366 = vector.extract_strided_slice %353 {offsets = [0, 256], sizes = [8, 128], strides = [1, 1]} : vector<8x512xf32> to vector<8x128xf32>
    %367 = math.tanh %366 : vector<8x128xf32>
    %368 = vector.extract_strided_slice %353 {offsets = [0, 384], sizes = [8, 128], strides = [1, 1]} : vector<8x512xf32> to vector<8x128xf32>
    %369 = arith.negf %368 : vector<8x128xf32>
    %370 = math.exp %369 : vector<8x128xf32>
    %cst_199 = arith.constant 1.000000e+00 : f32
    %371 = vector.broadcast %cst_199 : f32 to vector<8x128xf32>
    %372 = arith.addf %371, %370 : vector<8x128xf32>
    %373 = arith.divf %371, %372 : vector<8x128xf32>
    %374 = arith.mulf %365, %349 : vector<8x128xf32>
    %375 = arith.mulf %359, %367 : vector<8x128xf32>
    %376 = arith.addf %374, %375 : vector<8x128xf32>
    %377 = math.tanh %376 : vector<8x128xf32>
    %378 = arith.mulf %373, %377 : vector<8x128xf32>
    %c8_200 = arith.constant 8 : index
    %c0_201 = arith.constant 0 : index
    %379 = vector.load %arg16[%c8_200, %c0_201] : memref<64x512xf32, #tpu.memory_space<vmem>>, vector<8x512xf32>
    %c0_202 = arith.constant 0 : index
    %c0_203 = arith.constant 0 : index
    %380 = vector.load %arg6[%c0_202, %c0_203] : memref<128x512xf32, #tpu.memory_space<vmem>>, vector<128x512xf32>
    %cst_204 = arith.constant dense<0.000000e+00> : vector<8x512xf32>
    %381 = tpu.matmul %378, %380, %cst_204 {dimension_numbers = #tpu.dot_dimension_numbers<[1], [0], [0], [1], [0, 0, 1, 1], [], []>} : vector<8x128xf32>, vector<128x512xf32>, vector<8x512xf32> -> vector<8x512xf32>
    %382 = arith.addf %379, %381 : vector<8x512xf32>
    %383 = vector.extract_strided_slice %382 {offsets = [0, 0], sizes = [8, 128], strides = [1, 1]} : vector<8x512xf32> to vector<8x128xf32>
    %384 = arith.negf %383 : vector<8x128xf32>
    %385 = math.exp %384 : vector<8x128xf32>
    %cst_205 = arith.constant 1.000000e+00 : f32
    %386 = vector.broadcast %cst_205 : f32 to vector<8x128xf32>
    %387 = arith.addf %386, %385 : vector<8x128xf32>
    %388 = arith.divf %386, %387 : vector<8x128xf32>
    %389 = vector.extract_strided_slice %382 {offsets = [0, 128], sizes = [8, 128], strides = [1, 1]} : vector<8x512xf32> to vector<8x128xf32>
    %390 = arith.negf %389 : vector<8x128xf32>
    %391 = math.exp %390 : vector<8x128xf32>
    %cst_206 = arith.constant 1.000000e+00 : f32
    %392 = vector.broadcast %cst_206 : f32 to vector<8x128xf32>
    %393 = arith.addf %392, %391 : vector<8x128xf32>
    %394 = arith.divf %392, %393 : vector<8x128xf32>
    %395 = vector.extract_strided_slice %382 {offsets = [0, 256], sizes = [8, 128], strides = [1, 1]} : vector<8x512xf32> to vector<8x128xf32>
    %396 = math.tanh %395 : vector<8x128xf32>
    %397 = vector.extract_strided_slice %382 {offsets = [0, 384], sizes = [8, 128], strides = [1, 1]} : vector<8x512xf32> to vector<8x128xf32>
    %398 = arith.negf %397 : vector<8x128xf32>
    %399 = math.exp %398 : vector<8x128xf32>
    %cst_207 = arith.constant 1.000000e+00 : f32
    %400 = vector.broadcast %cst_207 : f32 to vector<8x128xf32>
    %401 = arith.addf %400, %399 : vector<8x128xf32>
    %402 = arith.divf %400, %401 : vector<8x128xf32>
    %403 = arith.mulf %394, %376 : vector<8x128xf32>
    %404 = arith.mulf %388, %396 : vector<8x128xf32>
    %405 = arith.addf %403, %404 : vector<8x128xf32>
    %406 = math.tanh %405 : vector<8x128xf32>
    %407 = arith.mulf %402, %406 : vector<8x128xf32>
    %c16_208 = arith.constant 16 : index
    %c0_209 = arith.constant 0 : index
    %408 = vector.load %arg16[%c16_208, %c0_209] : memref<64x512xf32, #tpu.memory_space<vmem>>, vector<8x512xf32>
    %c0_210 = arith.constant 0 : index
    %c0_211 = arith.constant 0 : index
    %409 = vector.load %arg6[%c0_210, %c0_211] : memref<128x512xf32, #tpu.memory_space<vmem>>, vector<128x512xf32>
    %cst_212 = arith.constant dense<0.000000e+00> : vector<8x512xf32>
    %410 = tpu.matmul %407, %409, %cst_212 {dimension_numbers = #tpu.dot_dimension_numbers<[1], [0], [0], [1], [0, 0, 1, 1], [], []>} : vector<8x128xf32>, vector<128x512xf32>, vector<8x512xf32> -> vector<8x512xf32>
    %411 = arith.addf %408, %410 : vector<8x512xf32>
    %412 = vector.extract_strided_slice %411 {offsets = [0, 0], sizes = [8, 128], strides = [1, 1]} : vector<8x512xf32> to vector<8x128xf32>
    %413 = arith.negf %412 : vector<8x128xf32>
    %414 = math.exp %413 : vector<8x128xf32>
    %cst_213 = arith.constant 1.000000e+00 : f32
    %415 = vector.broadcast %cst_213 : f32 to vector<8x128xf32>
    %416 = arith.addf %415, %414 : vector<8x128xf32>
    %417 = arith.divf %415, %416 : vector<8x128xf32>
    %418 = vector.extract_strided_slice %411 {offsets = [0, 128], sizes = [8, 128], strides = [1, 1]} : vector<8x512xf32> to vector<8x128xf32>
    %419 = arith.negf %418 : vector<8x128xf32>
    %420 = math.exp %419 : vector<8x128xf32>
    %cst_214 = arith.constant 1.000000e+00 : f32
    %421 = vector.broadcast %cst_214 : f32 to vector<8x128xf32>
    %422 = arith.addf %421, %420 : vector<8x128xf32>
    %423 = arith.divf %421, %422 : vector<8x128xf32>
    %424 = vector.extract_strided_slice %411 {offsets = [0, 256], sizes = [8, 128], strides = [1, 1]} : vector<8x512xf32> to vector<8x128xf32>
    %425 = math.tanh %424 : vector<8x128xf32>
    %426 = vector.extract_strided_slice %411 {offsets = [0, 384], sizes = [8, 128], strides = [1, 1]} : vector<8x512xf32> to vector<8x128xf32>
    %427 = arith.negf %426 : vector<8x128xf32>
    %428 = math.exp %427 : vector<8x128xf32>
    %cst_215 = arith.constant 1.000000e+00 : f32
    %429 = vector.broadcast %cst_215 : f32 to vector<8x128xf32>
    %430 = arith.addf %429, %428 : vector<8x128xf32>
    %431 = arith.divf %429, %430 : vector<8x128xf32>
    %432 = arith.mulf %423, %405 : vector<8x128xf32>
    %433 = arith.mulf %417, %425 : vector<8x128xf32>
    %434 = arith.addf %432, %433 : vector<8x128xf32>
    %435 = math.tanh %434 : vector<8x128xf32>
    %436 = arith.mulf %431, %435 : vector<8x128xf32>
    %c24_216 = arith.constant 24 : index
    %c0_217 = arith.constant 0 : index
    %437 = vector.load %arg16[%c24_216, %c0_217] : memref<64x512xf32, #tpu.memory_space<vmem>>, vector<8x512xf32>
    %c0_218 = arith.constant 0 : index
    %c0_219 = arith.constant 0 : index
    %438 = vector.load %arg6[%c0_218, %c0_219] : memref<128x512xf32, #tpu.memory_space<vmem>>, vector<128x512xf32>
    %cst_220 = arith.constant dense<0.000000e+00> : vector<8x512xf32>
    %439 = tpu.matmul %436, %438, %cst_220 {dimension_numbers = #tpu.dot_dimension_numbers<[1], [0], [0], [1], [0, 0, 1, 1], [], []>} : vector<8x128xf32>, vector<128x512xf32>, vector<8x512xf32> -> vector<8x512xf32>
    %440 = arith.addf %437, %439 : vector<8x512xf32>
    %441 = vector.extract_strided_slice %440 {offsets = [0, 0], sizes = [8, 128], strides = [1, 1]} : vector<8x512xf32> to vector<8x128xf32>
    %442 = arith.negf %441 : vector<8x128xf32>
    %443 = math.exp %442 : vector<8x128xf32>
    %cst_221 = arith.constant 1.000000e+00 : f32
    %444 = vector.broadcast %cst_221 : f32 to vector<8x128xf32>
    %445 = arith.addf %444, %443 : vector<8x128xf32>
    %446 = arith.divf %444, %445 : vector<8x128xf32>
    %447 = vector.extract_strided_slice %440 {offsets = [0, 128], sizes = [8, 128], strides = [1, 1]} : vector<8x512xf32> to vector<8x128xf32>
    %448 = arith.negf %447 : vector<8x128xf32>
    %449 = math.exp %448 : vector<8x128xf32>
    %cst_222 = arith.constant 1.000000e+00 : f32
    %450 = vector.broadcast %cst_222 : f32 to vector<8x128xf32>
    %451 = arith.addf %450, %449 : vector<8x128xf32>
    %452 = arith.divf %450, %451 : vector<8x128xf32>
    %453 = vector.extract_strided_slice %440 {offsets = [0, 256], sizes = [8, 128], strides = [1, 1]} : vector<8x512xf32> to vector<8x128xf32>
    %454 = math.tanh %453 : vector<8x128xf32>
    %455 = vector.extract_strided_slice %440 {offsets = [0, 384], sizes = [8, 128], strides = [1, 1]} : vector<8x512xf32> to vector<8x128xf32>
    %456 = arith.negf %455 : vector<8x128xf32>
    %457 = math.exp %456 : vector<8x128xf32>
    %cst_223 = arith.constant 1.000000e+00 : f32
    %458 = vector.broadcast %cst_223 : f32 to vector<8x128xf32>
    %459 = arith.addf %458, %457 : vector<8x128xf32>
    %460 = arith.divf %458, %459 : vector<8x128xf32>
    %461 = arith.mulf %452, %434 : vector<8x128xf32>
    %462 = arith.mulf %446, %454 : vector<8x128xf32>
    %463 = arith.addf %461, %462 : vector<8x128xf32>
    %464 = math.tanh %463 : vector<8x128xf32>
    %465 = arith.mulf %460, %464 : vector<8x128xf32>
    %c32_224 = arith.constant 32 : index
    %c0_225 = arith.constant 0 : index
    %466 = vector.load %arg16[%c32_224, %c0_225] : memref<64x512xf32, #tpu.memory_space<vmem>>, vector<8x512xf32>
    %c0_226 = arith.constant 0 : index
    %c0_227 = arith.constant 0 : index
    %467 = vector.load %arg6[%c0_226, %c0_227] : memref<128x512xf32, #tpu.memory_space<vmem>>, vector<128x512xf32>
    %cst_228 = arith.constant dense<0.000000e+00> : vector<8x512xf32>
    %468 = tpu.matmul %465, %467, %cst_228 {dimension_numbers = #tpu.dot_dimension_numbers<[1], [0], [0], [1], [0, 0, 1, 1], [], []>} : vector<8x128xf32>, vector<128x512xf32>, vector<8x512xf32> -> vector<8x512xf32>
    %469 = arith.addf %466, %468 : vector<8x512xf32>
    %470 = vector.extract_strided_slice %469 {offsets = [0, 0], sizes = [8, 128], strides = [1, 1]} : vector<8x512xf32> to vector<8x128xf32>
    %471 = arith.negf %470 : vector<8x128xf32>
    %472 = math.exp %471 : vector<8x128xf32>
    %cst_229 = arith.constant 1.000000e+00 : f32
    %473 = vector.broadcast %cst_229 : f32 to vector<8x128xf32>
    %474 = arith.addf %473, %472 : vector<8x128xf32>
    %475 = arith.divf %473, %474 : vector<8x128xf32>
    %476 = vector.extract_strided_slice %469 {offsets = [0, 128], sizes = [8, 128], strides = [1, 1]} : vector<8x512xf32> to vector<8x128xf32>
    %477 = arith.negf %476 : vector<8x128xf32>
    %478 = math.exp %477 : vector<8x128xf32>
    %cst_230 = arith.constant 1.000000e+00 : f32
    %479 = vector.broadcast %cst_230 : f32 to vector<8x128xf32>
    %480 = arith.addf %479, %478 : vector<8x128xf32>
    %481 = arith.divf %479, %480 : vector<8x128xf32>
    %482 = vector.extract_strided_slice %469 {offsets = [0, 256], sizes = [8, 128], strides = [1, 1]} : vector<8x512xf32> to vector<8x128xf32>
    %483 = math.tanh %482 : vector<8x128xf32>
    %484 = vector.extract_strided_slice %469 {offsets = [0, 384], sizes = [8, 128], strides = [1, 1]} : vector<8x512xf32> to vector<8x128xf32>
    %485 = arith.negf %484 : vector<8x128xf32>
    %486 = math.exp %485 : vector<8x128xf32>
    %cst_231 = arith.constant 1.000000e+00 : f32
    %487 = vector.broadcast %cst_231 : f32 to vector<8x128xf32>
    %488 = arith.addf %487, %486 : vector<8x128xf32>
    %489 = arith.divf %487, %488 : vector<8x128xf32>
    %490 = arith.mulf %481, %463 : vector<8x128xf32>
    %491 = arith.mulf %475, %483 : vector<8x128xf32>
    %492 = arith.addf %490, %491 : vector<8x128xf32>
    %493 = math.tanh %492 : vector<8x128xf32>
    %494 = arith.mulf %489, %493 : vector<8x128xf32>
    %c40_232 = arith.constant 40 : index
    %c0_233 = arith.constant 0 : index
    %495 = vector.load %arg16[%c40_232, %c0_233] : memref<64x512xf32, #tpu.memory_space<vmem>>, vector<8x512xf32>
    %c0_234 = arith.constant 0 : index
    %c0_235 = arith.constant 0 : index
    %496 = vector.load %arg6[%c0_234, %c0_235] : memref<128x512xf32, #tpu.memory_space<vmem>>, vector<128x512xf32>
    %cst_236 = arith.constant dense<0.000000e+00> : vector<8x512xf32>
    %497 = tpu.matmul %494, %496, %cst_236 {dimension_numbers = #tpu.dot_dimension_numbers<[1], [0], [0], [1], [0, 0, 1, 1], [], []>} : vector<8x128xf32>, vector<128x512xf32>, vector<8x512xf32> -> vector<8x512xf32>
    %498 = arith.addf %495, %497 : vector<8x512xf32>
    %499 = vector.extract_strided_slice %498 {offsets = [0, 0], sizes = [8, 128], strides = [1, 1]} : vector<8x512xf32> to vector<8x128xf32>
    %500 = arith.negf %499 : vector<8x128xf32>
    %501 = math.exp %500 : vector<8x128xf32>
    %cst_237 = arith.constant 1.000000e+00 : f32
    %502 = vector.broadcast %cst_237 : f32 to vector<8x128xf32>
    %503 = arith.addf %502, %501 : vector<8x128xf32>
    %504 = arith.divf %502, %503 : vector<8x128xf32>
    %505 = vector.extract_strided_slice %498 {offsets = [0, 128], sizes = [8, 128], strides = [1, 1]} : vector<8x512xf32> to vector<8x128xf32>
    %506 = arith.negf %505 : vector<8x128xf32>
    %507 = math.exp %506 : vector<8x128xf32>
    %cst_238 = arith.constant 1.000000e+00 : f32
    %508 = vector.broadcast %cst_238 : f32 to vector<8x128xf32>
    %509 = arith.addf %508, %507 : vector<8x128xf32>
    %510 = arith.divf %508, %509 : vector<8x128xf32>
    %511 = vector.extract_strided_slice %498 {offsets = [0, 256], sizes = [8, 128], strides = [1, 1]} : vector<8x512xf32> to vector<8x128xf32>
    %512 = math.tanh %511 : vector<8x128xf32>
    %513 = vector.extract_strided_slice %498 {offsets = [0, 384], sizes = [8, 128], strides = [1, 1]} : vector<8x512xf32> to vector<8x128xf32>
    %514 = arith.negf %513 : vector<8x128xf32>
    %515 = math.exp %514 : vector<8x128xf32>
    %cst_239 = arith.constant 1.000000e+00 : f32
    %516 = vector.broadcast %cst_239 : f32 to vector<8x128xf32>
    %517 = arith.addf %516, %515 : vector<8x128xf32>
    %518 = arith.divf %516, %517 : vector<8x128xf32>
    %519 = arith.mulf %510, %492 : vector<8x128xf32>
    %520 = arith.mulf %504, %512 : vector<8x128xf32>
    %521 = arith.addf %519, %520 : vector<8x128xf32>
    %522 = math.tanh %521 : vector<8x128xf32>
    %523 = arith.mulf %518, %522 : vector<8x128xf32>
    %c48_240 = arith.constant 48 : index
    %c0_241 = arith.constant 0 : index
    %524 = vector.load %arg16[%c48_240, %c0_241] : memref<64x512xf32, #tpu.memory_space<vmem>>, vector<8x512xf32>
    %c0_242 = arith.constant 0 : index
    %c0_243 = arith.constant 0 : index
    %525 = vector.load %arg6[%c0_242, %c0_243] : memref<128x512xf32, #tpu.memory_space<vmem>>, vector<128x512xf32>
    %cst_244 = arith.constant dense<0.000000e+00> : vector<8x512xf32>
    %526 = tpu.matmul %523, %525, %cst_244 {dimension_numbers = #tpu.dot_dimension_numbers<[1], [0], [0], [1], [0, 0, 1, 1], [], []>} : vector<8x128xf32>, vector<128x512xf32>, vector<8x512xf32> -> vector<8x512xf32>
    %527 = arith.addf %524, %526 : vector<8x512xf32>
    %528 = vector.extract_strided_slice %527 {offsets = [0, 0], sizes = [8, 128], strides = [1, 1]} : vector<8x512xf32> to vector<8x128xf32>
    %529 = arith.negf %528 : vector<8x128xf32>
    %530 = math.exp %529 : vector<8x128xf32>
    %cst_245 = arith.constant 1.000000e+00 : f32
    %531 = vector.broadcast %cst_245 : f32 to vector<8x128xf32>
    %532 = arith.addf %531, %530 : vector<8x128xf32>
    %533 = arith.divf %531, %532 : vector<8x128xf32>
    %534 = vector.extract_strided_slice %527 {offsets = [0, 128], sizes = [8, 128], strides = [1, 1]} : vector<8x512xf32> to vector<8x128xf32>
    %535 = arith.negf %534 : vector<8x128xf32>
    %536 = math.exp %535 : vector<8x128xf32>
    %cst_246 = arith.constant 1.000000e+00 : f32
    %537 = vector.broadcast %cst_246 : f32 to vector<8x128xf32>
    %538 = arith.addf %537, %536 : vector<8x128xf32>
    %539 = arith.divf %537, %538 : vector<8x128xf32>
    %540 = vector.extract_strided_slice %527 {offsets = [0, 256], sizes = [8, 128], strides = [1, 1]} : vector<8x512xf32> to vector<8x128xf32>
    %541 = math.tanh %540 : vector<8x128xf32>
    %542 = vector.extract_strided_slice %527 {offsets = [0, 384], sizes = [8, 128], strides = [1, 1]} : vector<8x512xf32> to vector<8x128xf32>
    %543 = arith.negf %542 : vector<8x128xf32>
    %544 = math.exp %543 : vector<8x128xf32>
    %cst_247 = arith.constant 1.000000e+00 : f32
    %545 = vector.broadcast %cst_247 : f32 to vector<8x128xf32>
    %546 = arith.addf %545, %544 : vector<8x128xf32>
    %547 = arith.divf %545, %546 : vector<8x128xf32>
    %548 = arith.mulf %539, %521 : vector<8x128xf32>
    %549 = arith.mulf %533, %541 : vector<8x128xf32>
    %550 = arith.addf %548, %549 : vector<8x128xf32>
    %551 = math.tanh %550 : vector<8x128xf32>
    %552 = arith.mulf %547, %551 : vector<8x128xf32>
    %c56_248 = arith.constant 56 : index
    %c0_249 = arith.constant 0 : index
    %553 = vector.load %arg16[%c56_248, %c0_249] : memref<64x512xf32, #tpu.memory_space<vmem>>, vector<8x512xf32>
    %c0_250 = arith.constant 0 : index
    %c0_251 = arith.constant 0 : index
    %554 = vector.load %arg6[%c0_250, %c0_251] : memref<128x512xf32, #tpu.memory_space<vmem>>, vector<128x512xf32>
    %cst_252 = arith.constant dense<0.000000e+00> : vector<8x512xf32>
    %555 = tpu.matmul %552, %554, %cst_252 {dimension_numbers = #tpu.dot_dimension_numbers<[1], [0], [0], [1], [0, 0, 1, 1], [], []>} : vector<8x128xf32>, vector<128x512xf32>, vector<8x512xf32> -> vector<8x512xf32>
    %556 = arith.addf %553, %555 : vector<8x512xf32>
    %557 = vector.extract_strided_slice %556 {offsets = [0, 0], sizes = [8, 128], strides = [1, 1]} : vector<8x512xf32> to vector<8x128xf32>
    %558 = arith.negf %557 : vector<8x128xf32>
    %559 = math.exp %558 : vector<8x128xf32>
    %cst_253 = arith.constant 1.000000e+00 : f32
    %560 = vector.broadcast %cst_253 : f32 to vector<8x128xf32>
    %561 = arith.addf %560, %559 : vector<8x128xf32>
    %562 = arith.divf %560, %561 : vector<8x128xf32>
    %563 = vector.extract_strided_slice %556 {offsets = [0, 128], sizes = [8, 128], strides = [1, 1]} : vector<8x512xf32> to vector<8x128xf32>
    %564 = arith.negf %563 : vector<8x128xf32>
    %565 = math.exp %564 : vector<8x128xf32>
    %cst_254 = arith.constant 1.000000e+00 : f32
    %566 = vector.broadcast %cst_254 : f32 to vector<8x128xf32>
    %567 = arith.addf %566, %565 : vector<8x128xf32>
    %568 = arith.divf %566, %567 : vector<8x128xf32>
    %569 = vector.extract_strided_slice %556 {offsets = [0, 256], sizes = [8, 128], strides = [1, 1]} : vector<8x512xf32> to vector<8x128xf32>
    %570 = math.tanh %569 : vector<8x128xf32>
    %571 = vector.extract_strided_slice %556 {offsets = [0, 384], sizes = [8, 128], strides = [1, 1]} : vector<8x512xf32> to vector<8x128xf32>
    %572 = arith.negf %571 : vector<8x128xf32>
    %573 = math.exp %572 : vector<8x128xf32>
    %cst_255 = arith.constant 1.000000e+00 : f32
    %574 = vector.broadcast %cst_255 : f32 to vector<8x128xf32>
    %575 = arith.addf %574, %573 : vector<8x128xf32>
    %576 = arith.divf %574, %575 : vector<8x128xf32>
    %577 = arith.mulf %568, %550 : vector<8x128xf32>
    %578 = arith.mulf %562, %570 : vector<8x128xf32>
    %579 = arith.addf %577, %578 : vector<8x128xf32>
    %580 = math.tanh %579 : vector<8x128xf32>
    %581 = arith.mulf %576, %580 : vector<8x128xf32>
    %c1_256 = arith.constant 1 : index
    %c0_257 = arith.constant 0 : index
    %c0_258 = arith.constant 0 : index
    %582 = vector.load %arg13[%c1_256, %c0_257, %c0_258] : memref<2x8x128xf32, #tpu.memory_space<vmem>>, vector<1x8x128xf32>
    %583 = vector.shape_cast %582 : vector<1x8x128xf32> to vector<8x128xf32>
    %584 = vector.shape_cast %581 : vector<8x128xf32> to vector<1x8x128xf32>
    tpu.vector_store %arg13[%c1_256, %c0_257, %c0_258], %584 {strides = array<i32>} : memref<2x8x128xf32, #tpu.memory_space<vmem>>, vector<1x8x128xf32>,
    %c1_259 = arith.constant 1 : index
    %c0_260 = arith.constant 0 : index
    %c0_261 = arith.constant 0 : index
    %585 = vector.load %arg14[%c1_259, %c0_260, %c0_261] : memref<2x8x128xf32, #tpu.memory_space<vmem>>, vector<1x8x128xf32>
    %586 = vector.shape_cast %585 : vector<1x8x128xf32> to vector<8x128xf32>
    %587 = vector.shape_cast %579 : vector<8x128xf32> to vector<1x8x128xf32>
    tpu.vector_store %arg14[%c1_259, %c0_260, %c0_261], %587 {strides = array<i32>} : memref<2x8x128xf32, #tpu.memory_space<vmem>>, vector<1x8x128xf32>,
    %c0_262 = arith.constant 0 : index
    %c0_263 = arith.constant 0 : index
    %588 = vector.load %arg10[%c0_262, %c0_263] : memref<128x128xf32, #tpu.memory_space<vmem>>, vector<128x128xf32>
    %cst_264 = arith.constant dense<0.000000e+00> : vector<8x128xf32>
    %589 = tpu.matmul %581, %588, %cst_264 {dimension_numbers = #tpu.dot_dimension_numbers<[1], [0], [0], [1], [0, 0, 1, 1], [], []>} : vector<8x128xf32>, vector<128x128xf32>, vector<8x128xf32> -> vector<8x128xf32>
    %c0_265 = arith.constant 0 : index
    %c0_266 = arith.constant 0 : index
    %590 = vector.load %arg11[%c0_265, %c0_266] : memref<1x128xf32, #tpu.memory_space<vmem>>, vector<1x128xf32>
    %591 = vector.broadcast %590 : vector<1x128xf32> to vector<8x128xf32>
    %592 = arith.addf %589, %591 : vector<8x128xf32>
    %cst_267 = arith.constant dense<0xFF800000> : vector<8xf32>
    %593 = vector.multi_reduction <maximumf>, %592, %cst_267 [1] : vector<8x128xf32> to vector<8xf32>
    %594 = vector.shape_cast %593 : vector<8xf32> to vector<8x1xf32>
    %595 = vector.broadcast %594 : vector<8x1xf32> to vector<8x128xf32>
    %596 = arith.subf %592, %595 : vector<8x128xf32>
    %597 = math.exp %596 : vector<8x128xf32>
    %cst_268 = arith.constant dense<0.000000e+00> : vector<8xf32>
    %598 = vector.multi_reduction <add>, %597, %cst_268 [1] : vector<8x128xf32> to vector<8xf32>
    %599 = vector.shape_cast %598 : vector<8xf32> to vector<8x1xf32>
    %600 = tpu.reciprocal %599 : vector<8x1xf32> -> vector<8x1xf32>
    %601 = vector.broadcast %600 : vector<8x1xf32> to vector<8x128xf32>
    %602 = arith.mulf %597, %601 : vector<8x128xf32>
    %c0_269 = arith.constant 0 : index
    %c0_270 = arith.constant 0 : index
    %603 = vector.load %arg12[%c0_269, %c0_270] : memref<8x128xf32, #tpu.memory_space<vmem>>, vector<8x128xf32>
    tpu.vector_store %arg12[%c0_269, %c0_270], %602 {strides = array<i32>} : memref<8x128xf32, #tpu.memory_space<vmem>>, vector<8x128xf32>,
    return
  }
}

</mosaic_0001>

<bundles_post_ra>
// kernel: classification_rnn_forward.1
= control target key start
LH: loop header
LB: loop body
LE: loop exit
PB: predicated region body
PF: predicated region fallthrough
CT: control target
= control target key end

     0   :  { %20 = vsyncpa [#allocation7], 0  ;;  %s7147_s0 = inlined_call_operand.vmem [shape: s32[2,8], index: 0, kind: input, shape index: {}]   ;;  %s7148_s1 = inlined_call_operand.vmem [shape: f32[50,1,16], index: 1, kind: input, shape index: {}]   ;;  %s7149_s2 = inlined_call_operand.vmem [shape: f32[16,512], index: 2, kind: input, shape index: {}]   ;;  %s7150_s3 = inlined_call_operand.hbm [shape: f32[128,512], index: 3, kind: input, shape index: {}]   ;;  %s7151_s4 = inlined_call_operand.vmem [shape: f32[1,512], index: 4, kind: input, shape index: {}]   ;;  %s7152_s5 = inlined_call_operand.hbm [shape: f32[128,512], index: 5, kind: input, shape index: {}]   ;;  %s7153_s6 = inlined_call_operand.hbm [shape: f32[128,512], index: 6, kind: input, shape index: {}]   ;;  %s7154_s7 = inlined_call_operand.vmem [shape: f32[1,512], index: 7, kind: input, shape index: {}]   ;;  %s7155_s8 = inlined_call_operand.vmem [shape: f32[2,8,128], index: 8, kind: input, shape index: {}]   ;;  %s7156_s9 = inlined_call_operand.vmem [shape: f32[2,8,128], index: 9, kind: input, shape index: {}]   ;;  %s7157_s10 = inlined_call_operand.hbm [shape: f32[128,128], index: 10, kind: input, shape index: {}]   ;;  %s7158_s11 = inlined_call_operand.vmem [shape: f32[1,128], index: 11, kind: input, shape index: {}]   ;;  %s7159_s12 = inlined_call_operand.vmem [shape: f32[8,128], index: 12, kind: output, shape index: {0}]   ;;  %s7160_s13 = inlined_call_operand.vmem [shape: f32[2,8,128], index: 13, kind: output, shape index: {1}]   ;;  %s7161_s14 = inlined_call_operand.vmem [shape: f32[2,8,128], index: 14, kind: output, shape index: {2}]  }
   0x1   :  { %21 = vsyncpa [#allocation6], 0 }
   0x2   :  { %22 = vsyncpa [#allocation10], 0 }
   0x3   :  { %23 = vsyncpa [#allocation13], 0  ;;  %s30_s15 = sshll.u32 %s7147_s0, 4  ;;  %s4944_s16 = smov [#allocation9]   ;;  %s31_s15 = int_to_ptr.vmem [resolvable:$true] %s30_s15 }
   0x4   :  { %s57_s17 = sshll.u32 %s4944_s16, 4  ;;  %s58_s17 = int_to_ptr.vmem [resolvable:$true] %s57_s17 }
   0x5   :  { %s4852_s18 = scalar_lea.vmem %s58_s17, 8192  ;;  %p4857_p1 = scmp.lt.s32.totalorder %s58_s17, %s58_s17 }
   0x6   :  { %p4853_p0 = scmp.ne.s32.totalorder %s58_s17, %s4852_s18  ;;  %p4858_p2 = scmp.lt.s32.totalorder %s4852_s18, %s4852_s18 }
   0x8   :  { %p4859_p3 = por %p4858_p2, %p4857_p1 }
   0xa   :  { %p4860_p4 = pnand %p4859_p3, %p4853_p0 }
   0xc   :  { %4863 = shalt.err (!%p4860_p4)
}
   0xd   :  { %s4945_s19 = smov 512   ;;  %s4946_s20 = smov 32  }
   0xe   :  { %63 = dma.hbm_to_vmem [thread:$0]  %s7152_s5, 8192, %s58_s17, [#allocation10], %s4945_s19, %s4945_s19, %s4946_s20  }
   0xf   :  { %s4864_s0 = scalar_lea.vmem %s31_s15, 32  ;;  %p4869_p6 = scmp.lt.s32.totalorder %s31_s15, %s31_s15 }
  0x10   :  { %p4865_p5 = scmp.ne.s32.totalorder %s31_s15, %s4864_s0  ;;  %p4870_p7 = scmp.lt.s32.totalorder %s4864_s0, %s4864_s0 }
  0x12   :  { %p4871_p8 = por %p4870_p7, %p4869_p6 }
  0x14   :  { %p4872_p9 = pnand %p4871_p8, %p4865_p5 }
  0x16   :  { %4875 = shalt.err (!%p4872_p9)
}
  0x17   :  { %s4947_s23 = smov [#allocation5]   ;;  %s4948_s24 = smov [#allocation8]  }
  0x18   :  { %33 = dma.vmem_to_smem %s31_s15, 32, %s4947_s23, [#allocation7]  }
  0x19   :  { %s43_s25 = sshll.u32 %s4948_s24, 4  ;;  %s4949_s26 = smov [#allocation11]   ;;  %s44_s25 = int_to_ptr.vmem [resolvable:$true] %s43_s25 }
  0x1a   :  { %s69_s27 = sshll.u32 %s4949_s26, 4  ;;  %s4884_s28 = scalar_lea.vmem %s44_s25, 8192  ;;  %s70_s27 = int_to_ptr.vmem [resolvable:$true] %s69_s27 }
  0x1b   :  { %p4885_p10 = scmp.ne.s32.totalorder %s44_s25, %s4884_s28  ;;  %p4889_p11 = scmp.lt.s32.totalorder %s44_s25, %s44_s25 }
  0x1c   :  { %p4890_p12 = scmp.lt.s32.totalorder %s4884_s28, %s4884_s28 }
  0x1e   :  { %p4891_p13 = por %p4890_p12, %p4889_p11 }
  0x20   :  { %p4892_p0 = pnand %p4891_p13, %p4885_p10 }
  0x22   :  { %4895 = shalt.err (!%p4892_p0)
}
  0x23   :  { %49 = dma.hbm_to_vmem [thread:$0]  %s7150_s3, 8192, %s44_s25, [#allocation6], %s4945_s19, %s4945_s19, %s4946_s20  }
  0x24   :  { %s4904_s30 = scalar_lea.vmem %s70_s27, 8192  ;;  %p4909_p2 = scmp.lt.s32.totalorder %s70_s27, %s70_s27 }
  0x25   :  { %p4905_p1 = scmp.ne.s32.totalorder %s70_s27, %s4904_s30  ;;  %p4910_p3 = scmp.lt.s32.totalorder %s4904_s30, %s4904_s30 }
  0x27   :  { %p4911_p4 = por %p4910_p3, %p4909_p2 }
  0x29   :  { %p4912_p5 = pnand %p4911_p4, %p4905_p1 }
  0x2b   :  { %4915 = shalt.err (!%p4912_p5)
}
  0x2c   :  { %75 = dma.hbm_to_vmem [thread:$0]  %s7153_s6, 8192, %s70_s27, [#allocation10], %s4945_s19, %s4945_s19, %s4946_s20  }
  0x2d   :  { %s4950_s17 = smov [#allocation12]  }
  0x2e   :  { %s87_s18 = sshll.u32 %s4950_s17, 4  ;;  %s88_s18 = int_to_ptr.vmem [resolvable:$true] %s87_s18 }
  0x2f   :  { %s4924_s21 = scalar_lea.vmem %s88_s18, 2048  ;;  %p4929_p7 = scmp.lt.s32.totalorder %s88_s18, %s88_s18 }
  0x30   :  { %p4925_p6 = scmp.ne.s32.totalorder %s88_s18, %s4924_s21  ;;  %p4930_p8 = scmp.lt.s32.totalorder %s4924_s21, %s4924_s21 }
  0x32   :  { %p4931_p9 = por %p4930_p8, %p4929_p7 }
  0x34   :  { %p4932_p10 = pnand %p4931_p9, %p4925_p6 }
  0x36   :  { %4935 = shalt.err (!%p4932_p10)
}
  0x37   :  { %s4951_s3 = smov 128   ;;  %s4952_s22 = smov 8  }
  0x38   :  { %93 = dma.hbm_to_vmem [thread:$0]  %s7157_s10, 2048, %s88_s18, [#allocation13], %s4951_s3, %s4951_s3, %s4952_s22  }
  0x39   :  { %4936 = dma.done.wait [#allocation7], 32  }
  0x3a   :  { %4937 = vsyncadd [#allocation7], 4294967264 }
  0x3b   :  { %4938 = dma.done.wait [#allocation6], 8192  }
  0x3c   :  { %4939 = vsyncadd [#allocation6], 4294959104 }
  0x3d   :  { %4940 = dma.done.wait [#allocation10], 16384  }
  0x3e   :  { %4941 = vsyncadd [#allocation10], 4294950912 }
  0x3f   :  { %4942 = dma.done.wait [#allocation13], 2048  }
  0x40   :  { %4943 = vsyncadd [#allocation13], 4294965248 }
  0x41   :  { %111 = sfence }
  0x42   :  { %v199_v0 = vld [vmem:[%s7149_s2 + $0x28] sm:$0xff]  ;;  %v198_v1 = vld [vmem:[%s7149_s2 + $0x20] sm:$0xff]  ;;  %v201_v2 = vld [vmem:[%s7149_s2 + $0x38] sm:$0xff]  ;;  %vm112_vm0 = vcmask 130048   ;;  %v7164_v6 = vmov 0.0   ;;  %s5074_s15 = sld [smem:[#allocation5]] }
  0x43   :  { %276 = vmatprep.subr.mxu0 %v199_v0  ;;  %389 = vmatprep.subr.mxu1 %v201_v2  ;;  %v195_v3 = vld [vmem:[%s7149_s2 + $0x8] sm:$0xff]  ;;  %v200_v4 = vld [vmem:[%s7149_s2 + $0x30] sm:$0xff]  ;;  %v194_v5 = vld [vmem:[%s7149_s2] sm:$0xff]  ;;  %113 = vst.msk [vmem:[#allocation2] sm:$0xff] %vm112_vm0, %v7164_v6  ;;  %s4373_s3 = sld [smem:[#allocation5 + $0x80]]  ;;  %vm124_vm1 = vcmask 122880  }
  0x44   :  { %114 = vst.msk [vmem:[#allocation2 + $0x8] sm:$0xff] %vm112_vm0, %v7164_v6  ;;  %115 = vst.msk [vmem:[#allocation2 + $0x10] sm:$0xff] %vm112_vm0, %v7164_v6  ;;  %277 = vmatpush1.msra.mxu0 %v198_v1  ;;  %390 = vmatpush1.msra.mxu1 %v200_v4  ;;  %v197_v7 = vld [vmem:[%s7149_s2 + $0x18] sm:$0xff]  ;;  %v196_v8 = vld [vmem:[%s7149_s2 + $0x10] sm:$0xff]  ;;  %s4374_s22 = sld [smem:[#allocation5 + $0x1]]  ;;  %vm4954_vm2 = vmmov 0  }
  0x45   :  { %116 = vst.msk [vmem:[#allocation2 + $0x18] sm:$0xff] %vm112_vm0, %v7164_v6  ;;  %117 = vst.msk [vmem:[#allocation2 + $0x20] sm:$0xff] %vm112_vm0, %v7164_v6  ;;  %278 = vmatprep.subr.mxu0 %v195_v3  ;;  %391 = vmatprep.subr.mxu1 %v197_v7  ;;  %v5096_v9 = vld [vmem:[#allocation8 + $0x1e8] sm:$0xff]  ;;  %v5098_v10 = vld [vmem:[#allocation8 + $0x1f8] sm:$0xff]  ;;  %s4375_s0 = sld [smem:[#allocation5 + $0x81]] }
  0x46   :  { %118 = vst.msk [vmem:[#allocation2 + $0x28] sm:$0xff] %vm112_vm0, %v7164_v6  ;;  %119 = vst.msk [vmem:[#allocation2 + $0x30] sm:$0xff] %vm112_vm0, %v7164_v6  ;;  %279 = vmatpush1.msra.mxu0 %v194_v5  ;;  %312 = vmatprep.mubr.f32.mxu0 %v7164_v6  ;;  %s4376_s23 = sld [smem:[#allocation5 + $0x2]]  ;;  %v5145_v18 = vld [vmem:[#allocation8 + $0x1e0] sm:$0xff]  ;;  %v5151_v20 = vld [vmem:[#allocation8 + $0x1c8] sm:$0xff] }
  0x47   :  { %120 = vst.msk [vmem:[#allocation2 + $0x38] sm:$0xff] %vm112_vm0, %v7164_v6  ;;  %392 = vmatpush1.msra.mxu1 %v196_v8  ;;  %425 = vmatprep.mubr.f32.mxu1 %v7164_v6  ;;  %s4377_s2 = sld [smem:[#allocation5 + $0x82]]  ;;  %v5153_v21 = vld [vmem:[#allocation8 + $0x1f0] sm:$0xff]  ;;  %v5162_v24 = vld [vmem:[#allocation8 + $0x1d8] sm:$0xff]  ;;  %v5173_v26 = vld [vmem:[#allocation8 + $0x1c0] sm:$0xff] }
  0x48   :  { %576 = vmatprep.subr.mxu0 %v5096_v9  ;;  %647 = vmatprep.subr.mxu1 %v5098_v10  ;;  %s122_s20 = scalar_lea.vmem %s7148_s1, %s5074_s15  ;;  %s4378_s24 = sld [smem:[#allocation5 + $0x3]]  ;;  %v5182_v27 = vld [vmem:[#allocation8 + $0x1a8] sm:$0xff]  ;;  %v5184_v28 = vld [vmem:[#allocation8 + $0x1d0] sm:$0xff]  ;;  %v5190_v32 = vld [vmem:[#allocation8 + $0x1a0] sm:$0xff] }
  0x49   :  { %v123_v11 = vld [vmem:[%s122_s20] sm:$0x1]  ;;  %s127_s10 = scalar_lea.vmem %s7148_s1, %s4373_s3  ;;  %s4379_s27 = sld [smem:[#allocation5 + $0x83]]  ;;  %v5204_v33 = vld [vmem:[#allocation8 + $0x1b8] sm:$0xff]  ;;  %v5206_v34 = vld [vmem:[#allocation8 + $0x188] sm:$0xff] }
  0x4a   :  { %125 = vst.msk [vmem:[#allocation2] sm:$0x1] %vm124_vm1, %v123_v11  ;;  %v128_v12 = vld [vmem:[%s127_s10] sm:$0x1]  ;;  %s131_s29 = scalar_lea.vmem %s7148_s1, %s4374_s22  ;;  %s4380_s30 = sld [smem:[#allocation5 + $0x4]]  ;;  %v5210_v35 = vld [vmem:[#allocation8 + $0x1b0] sm:$0xff] }
  0x4b   :  { %129 = vst.msk [vmem:[#allocation2 + $0x1] sm:$0x1] %vm124_vm1, %v128_v12  ;;  %v132_v13 = vld [vmem:[%s131_s29] sm:$0x1]  ;;  %s135_s17 = scalar_lea.vmem %s7148_s1, %s4375_s0  ;;  %s5119_s18 = sld [smem:[#allocation5 + $0x84]]  ;;  %v5216_v37 = vld [vmem:[#allocation8 + $0x198] sm:$0xff] }
  0x4c   :  { %133 = vst.msk [vmem:[#allocation2 + $0x8] sm:$0x1] %vm124_vm1, %v132_v13  ;;  %v136_v14 = vld [vmem:[%s135_s17] sm:$0x1]  ;;  %s139_s6 = scalar_lea.vmem %s7148_s1, %s4376_s23  ;;  %s5125_s19 = sld [smem:[#allocation5 + $0x5]]  ;;  %v5220_v40 = vld [vmem:[#allocation8 + $0x168] sm:$0xff] }
  0x4d   :  { %137 = vst.msk [vmem:[#allocation2 + $0x9] sm:$0x1] %vm124_vm1, %v136_v14  ;;  %v140_v15 = vld [vmem:[%s139_s6] sm:$0x1]  ;;  %s143_s25 = scalar_lea.vmem %s7148_s1, %s4377_s2  ;;  %s5131_s26 = sld [smem:[#allocation5 + $0x85]]  ;;  %v5234_v41 = vld [vmem:[#allocation8 + $0x190] sm:$0xff] }
  0x4e   :  { %141 = vst.msk [vmem:[#allocation2 + $0x10] sm:$0x1] %vm124_vm1, %v140_v15  ;;  %v144_v16 = vld [vmem:[%s143_s25] sm:$0x1]  ;;  %s147_s28 = scalar_lea.vmem %s7148_s1, %s4378_s24  ;;  %s5137_s23 = sld [smem:[#allocation5 + $0x6]]  ;;  %v5240_v44 = vld [vmem:[#allocation8 + $0x178] sm:$0xff] }
  0x4f   :  { %145 = vst.msk [vmem:[#allocation2 + $0x11] sm:$0x1] %vm124_vm1, %v144_v16  ;;  %v148_v17 = vld [vmem:[%s147_s28] sm:$0x1]  ;;  %s151_s16 = scalar_lea.vmem %s7148_s1, %s4379_s27  ;;  %s5143_s2 = sld [smem:[#allocation5 + $0x86]]  ;;  %v5244_v45 = vld [vmem:[#allocation8 + $0x148] sm:$0xff] }
  0x50   :  { %149 = vst.msk [vmem:[#allocation2 + $0x18] sm:$0x1] %vm124_vm1, %v148_v17  ;;  %v152_v19 = vld [vmem:[%s151_s16] sm:$0x1]  ;;  %s155_s24 = scalar_lea.vmem %s7148_s1, %s4380_s30  ;;  %s5160_s6 = sld [smem:[#allocation5 + $0x7]]  ;;  %v5248_v48 = vld [vmem:[#allocation8 + $0x170] sm:$0xff] }
  0x51   :  { %153 = vst.msk [vmem:[#allocation2 + $0x19] sm:$0x1] %vm124_vm1, %v152_v19  ;;  %v156_v22 = vld [vmem:[%s155_s24] sm:$0x1]  ;;  %s159_s3 = scalar_lea.vmem %s7148_s1, %s5119_s18  ;;  %s5169_s25 = sld [smem:[#allocation5 + $0x87]]  ;;  %v5256_v50 = vld [vmem:[#allocation8 + $0x158] sm:$0xff] }
  0x52   :  { %v186_v23 = vld [vmem:[#allocation2] sm:$0xff]  ;;  %157 = vst.msk [vmem:[#allocation2 + $0x20] sm:$0x1] %vm124_vm1, %v156_v22  ;;  %s163_s20 = scalar_lea.vmem %s7148_s1, %s5125_s19  ;;  %v5260_v51 = vld [vmem:[#allocation8 + $0x128] sm:$0xff]  ;;  %v5264_v52 = vld [vmem:[#allocation8 + $0x150] sm:$0xff] }
  0x53   :  { %v160_v25 = vld [vmem:[%s159_s3] sm:$0x1]  ;;  %4388 = vmatmul.mubr.msk.f32.vlgmr.msra.gmra.mxu0 %vm112_vm0, %v186_v23  ;;  %4396 = vmatmul.mubr.msk.f32.vlgmr.msra.gmra.mxu1 %vm112_vm0, %v186_v23  ;;  %s167_s10 = scalar_lea.vmem %s7148_s1, %s5131_s26  ;;  %v5272_v55 = vld [vmem:[#allocation8 + $0x138] sm:$0xff]  ;;  %v5274_v56 = vld [vmem:[#allocation8 + $0x108] sm:$0xff] }
  0x54   :  { %161 = vst.msk [vmem:[#allocation2 + $0x21] sm:$0x1] %vm124_vm1, %v160_v25  ;;  %577 = vmatpush1.msra.mxu0 %v5145_v18  ;;  %648 = vmatpush1.msra.mxu1 %v5153_v21  ;;  %v187_v29 = vld [vmem:[#allocation2 + $0x8] sm:$0xff]  ;;  %v164_v30 = vld [vmem:[%s163_s20] sm:$0x1]  ;;  %s171_s28 = scalar_lea.vmem %s7148_s1, %s5137_s23  ;;  %v5278_v57 = vld [vmem:[#allocation8 + $0x130] sm:$0xff] }
  0x55   :  { %578 = vmatprep.subr.mxu0 %v5151_v20  ;;  %649 = vmatprep.subr.mxu1 %v5162_v24  ;;  %v168_v31 = vld [vmem:[%s167_s10] sm:$0x1]  ;;  %165 = vst.msk [vmem:[#allocation2 + $0x28] sm:$0x1] %vm124_vm1, %v164_v30  ;;  %s175_s16 = scalar_lea.vmem %s7148_s1, %s5143_s2  ;;  %v5284_v59 = vld [vmem:[#allocation8 + $0x118] sm:$0xff]  ;;  %v5288_v60 = vld [vmem:[#allocation8 + $0xe8] sm:$0xff] }
  0x56   :  { %579 = vmatpush1.msra.mxu0 %v5173_v26  ;;  %318 = vmatprep.mubr.f32.mxu0 %v7164_v6  ;;  %169 = vst.msk [vmem:[#allocation2 + $0x29] sm:$0x1] %vm124_vm1, %v168_v31  ;;  %v5212_v36 = vld [vmem:[#allocation8 + $0x180] sm:$0xff]  ;;  %s179_s15 = scalar_lea.vmem %s7148_s1, %s5160_s6  ;;  %v188_v42 = vld [vmem:[#allocation2 + $0x10] sm:$0xff]  ;;  %v5300_v0 = vld [vmem:[#allocation8 + $0xf8] sm:$0xff] }
  0x57   :  { %431 = vmatprep.mubr.f32.mxu1 %v7164_v6  ;;  %580 = vmatprep.subr.mxu0 %v5182_v27  ;;  %v172_v38 = vld [vmem:[%s171_s28] sm:$0x1]  ;;  %s183_s27 = scalar_lea.vmem %s7148_s1, %s5169_s25  ;;  %v5292_v61 = vld [vmem:[#allocation8 + $0x110] sm:$0xff]  ;;  %v5302_v1 = vld [vmem:[#allocation8 + $0xc8] sm:$0xff] }
  0x58   :  { %650 = vmatpush1.msra.mxu1 %v5184_v28  ;;  %4389 = vmatmul.mubr.msk.f32.gmra.mxu0 %vm112_vm0, %v187_v29  ;;  %v176_v39 = vld [vmem:[%s175_s16] sm:$0x1]  ;;  %173 = vst.msk [vmem:[#allocation2 + $0x30] sm:$0x1] %vm124_vm1, %v172_v38  ;;  %v189_v53 = vld [vmem:[#allocation2 + $0x18] sm:$0xff]  ;;  %v5306_v2 = vld [vmem:[#allocation8 + $0xf0] sm:$0xff] }
  0x59   :  { %4397 = vmatmul.mubr.msk.f32.gmra.mxu1 %vm112_vm0, %v187_v29  ;;  %581 = vmatpush1.msra.mxu0 %v5190_v32  ;;  %177 = vst.msk [vmem:[#allocation2 + $0x31] sm:$0x1] %vm124_vm1, %v176_v39  ;;  %v5238_v43 = vld [vmem:[#allocation8 + $0x160] sm:$0xff]  ;;  %v5312_v4 = vld [vmem:[#allocation8 + $0xd8] sm:$0xff]  ;;  %v5316_v5 = vld [vmem:[#allocation8 + $0xa8] sm:$0xff] }
  0x5a   :  { %651 = vmatprep.subr.mxu1 %v5204_v33  ;;  %582 = vmatprep.subr.mxu0 %v5206_v34  ;;  %v180_v46 = vld [vmem:[%s179_s15] sm:$0x1]  ;;  %v5320_v7 = vld [vmem:[#allocation8 + $0xd0] sm:$0xff]  ;;  %v5328_v12 = vld [vmem:[#allocation8 + $0xb8] sm:$0xff] }
  0x5b   :  { %652 = vmatpush1.msra.mxu1 %v5210_v35  ;;  %583 = vmatpush1.msra.mxu0 %v5212_v36  ;;  %v184_v47 = vld [vmem:[%s183_s27] sm:$0x1]  ;;  %181 = vst.msk [vmem:[#allocation2 + $0x38] sm:$0x1] %vm124_vm1, %v180_v46  ;;  %v5330_v13 = vld [vmem:[#allocation8 + $0x88] sm:$0xff]  ;;  %v5334_v14 = vld [vmem:[#allocation8 + $0xb0] sm:$0xff] }
  0x5c   :  { %653 = vmatprep.subr.mxu1 %v5216_v37  ;;  %324 = vmatprep.mubr.f32.mxu0 %v7164_v6  ;;  %v5250_v49 = vld [vmem:[#allocation8 + $0x140] sm:$0xff]  ;;  %185 = vst.msk [vmem:[#allocation2 + $0x39] sm:$0x1] %vm124_vm1, %v184_v47  ;;  %7340 = vst [vmem:[#allocation18_spill] sm:$0xff] %v5330_v13  ;;  %v5340_v16 = vld [vmem:[#allocation8 + $0x98] sm:$0xff] }
  0x5d   :  { %437 = vmatprep.mubr.f32.mxu1 %v7164_v6  ;;  %584 = vmatprep.subr.mxu0 %v5220_v40  ;;  %v5268_v54 = vld [vmem:[#allocation8 + $0x120] sm:$0xff]  ;;  %v191_v8 = vld [vmem:[#allocation2 + $0x28] sm:$0xff]  ;;  %7342 = vst [vmem:[#allocation20_spill] sm:$0xff] %v5340_v16  ;;  %v5348_v19 = vld [vmem:[#allocation8 + $0x90] sm:$0xff] }
  0x5e   :  { %654 = vmatpush1.msra.mxu1 %v5234_v41  ;;  %4390 = vmatmul.mubr.msk.f32.gmra.mxu0 %vm112_vm0, %v188_v42  ;;  %v5280_v58 = vld [vmem:[#allocation8 + $0x100] sm:$0xff]  ;;  %v5344_v17 = vld [vmem:[#allocation8 + $0x68] sm:$0xff]  ;;  %7344 = vst [vmem:[#allocation22_spill] sm:$0xff] %v5348_v19  ;;  %v5356_v25 = vld [vmem:[#allocation8 + $0x78] sm:$0xff] }
  0x5f   :  { %4398 = vmatmul.mubr.msk.f32.gmra.mxu1 %vm112_vm0, %v188_v42  ;;  %585 = vmatpush1.msra.mxu0 %v5238_v43  ;;  %v190_v62 = vld [vmem:[#allocation2 + $0x20] sm:$0xff]  ;;  %7343 = vst [vmem:[#allocation21_spill] sm:$0xff] %v5344_v17  ;;  %7346 = vst [vmem:[#allocation24_spill] sm:$0xff] %v5356_v25  ;;  %v5358_v29 = vld [vmem:[#allocation8 + $0x48] sm:$0xff] }
  0x60   :  { %655 = vmatprep.subr.mxu1 %v5240_v44  ;;  %586 = vmatprep.subr.mxu0 %v5244_v45  ;;  %v5296_v63 = vld [vmem:[#allocation8 + $0xe0] sm:$0xff]  ;;  %v192_v22 = vld [vmem:[#allocation2 + $0x30] sm:$0xff]  ;;  %7347 = vst [vmem:[#allocation25_spill] sm:$0xff] %v5358_v29  ;;  %v5368_v38 = vld [vmem:[#allocation8 + $0x58] sm:$0xff] }
  0x61   :  { %656 = vmatpush1.msra.mxu1 %v5248_v48  ;;  %587 = vmatpush1.msra.mxu0 %v5250_v49  ;;  %v5308_v3 = vld [vmem:[#allocation8 + $0xc0] sm:$0xff]  ;;  %v5362_v30 = vld [vmem:[#allocation8 + $0x70] sm:$0xff]  ;;  %7350 = vst [vmem:[#allocation28_spill] sm:$0xff] %v5368_v38  ;;  %v5372_v39 = vld [vmem:[#allocation8 + $0x28] sm:$0xff] }
  0x62   :  { %657 = vmatprep.subr.mxu1 %v5256_v50  ;;  %330 = vmatprep.mubr.f32.mxu0 %v7164_v6  ;;  %v5324_v11 = vld [vmem:[#allocation8 + $0xa0] sm:$0xff]  ;;  %7348 = vst [vmem:[#allocation26_spill] sm:$0xff] %v5362_v30  ;;  %7351 = vst [vmem:[#allocation29_spill] sm:$0xff] %v5372_v39  ;;  %v5376_v42 = vld [vmem:[#allocation8 + $0x50] sm:$0xff] }
  0x63   :  { %443 = vmatprep.mubr.f32.mxu1 %v7164_v6  ;;  %588 = vmatprep.subr.mxu0 %v5260_v51  ;;  %v5336_v15 = vld [vmem:[#allocation8 + $0x80] sm:$0xff]  ;;  %7352 = vst [vmem:[#allocation30_spill] sm:$0xff] %v5376_v42  ;;  %v193_v46 = vld [vmem:[#allocation2 + $0x38] sm:$0xff] }
  0x64   :  { %658 = vmatpush1.msra.mxu1 %v5264_v52  ;;  %4391 = vmatmul.mubr.msk.f32.gmra.mxu0 %vm112_vm0, %v189_v53  ;;  %7341 = vst [vmem:[#allocation19_spill] sm:$0xff] %v5336_v15  ;;  %v5352_v23 = vld [vmem:[#allocation8 + $0x60] sm:$0xff] }
  0x65   :  { %4399 = vmatmul.mubr.msk.f32.gmra.mxu1 %vm112_vm0, %v189_v53  ;;  %589 = vmatpush1.msra.mxu0 %v5268_v54  ;;  %7345 = vst [vmem:[#allocation23_spill] sm:$0xff] %v5352_v23  ;;  %v5364_v31 = vld [vmem:[#allocation8 + $0x40] sm:$0xff]  ;;  %v5384_v53 = vld [vmem:[#allocation8 + $0x38] sm:$0xff] }
  0x66   :  { %659 = vmatprep.subr.mxu1 %v5272_v55  ;;  %590 = vmatprep.subr.mxu0 %v5274_v56  ;;  %7349 = vst [vmem:[#allocation27_spill] sm:$0xff] %v5364_v31  ;;  %v5380_v47 = vld [vmem:[#allocation8 + $0x20] sm:$0xff]  ;;  %7354 = vst [vmem:[#allocation32_spill] sm:$0xff] %v5384_v53 }
  0x67   :  { %660 = vmatpush1.msra.mxu1 %v5278_v57  ;;  %591 = vmatpush1.msra.mxu0 %v5280_v58  ;;  %7353 = vst [vmem:[#allocation31_spill] sm:$0xff] %v5380_v47 }
  0x68   :  { %661 = vmatprep.subr.mxu1 %v5284_v59  ;;  %336 = vmatprep.mubr.f32.mxu0 %v7164_v6 }
  0x69   :  { %449 = vmatprep.mubr.f32.mxu1 %v7164_v6  ;;  %592 = vmatprep.subr.mxu0 %v5288_v60 }
  0x6a   :  { %662 = vmatpush1.msra.mxu1 %v5292_v61  ;;  %4392 = vmatmul.mubr.msk.f32.gmra.mxu0 %vm112_vm0, %v190_v62 }
  0x6b   :  { %4400 = vmatmul.mubr.msk.f32.gmra.mxu1 %vm112_vm0, %v190_v62  ;;  %593 = vmatpush1.msra.mxu0 %v5296_v63  ;;  %v5386_v62 = vld [vmem:[#allocation8 + $0x8] sm:$0xff] }
  0x6c   :  { %663 = vmatprep.subr.mxu1 %v5300_v0  ;;  %594 = vmatprep.subr.mxu0 %v5302_v1  ;;  %7355 = vst [vmem:[#allocation33_spill] sm:$0xff] %v5386_v62 }
  0x6d   :  { %664 = vmatpush1.msra.mxu1 %v5306_v2  ;;  %595 = vmatpush1.msra.mxu0 %v5308_v3 }
  0x6e   :  { %665 = vmatprep.subr.mxu1 %v5312_v4  ;;  %342 = vmatprep.mubr.f32.mxu0 %v7164_v6 }
  0x6f   :  { %455 = vmatprep.mubr.f32.mxu1 %v7164_v6  ;;  %596 = vmatprep.subr.mxu0 %v5316_v5 }
  0x70   :  { %666 = vmatpush1.msra.mxu1 %v5320_v7  ;;  %4393 = vmatmul.mubr.msk.f32.gmra.mxu0 %vm112_vm0, %v191_v8 }
  0x71   :  { %4401 = vmatmul.mubr.msk.f32.gmra.mxu1 %vm112_vm0, %v191_v8  ;;  %597 = vmatpush1.msra.mxu0 %v5324_v11  ;;  %v5390_v8 = vld [vmem:[#allocation8 + $0x30] sm:$0xff] }
  0x72   :  { %667 = vmatprep.subr.mxu1 %v5328_v12  ;;  %598 = vmatprep.subr.mxu0 %v5330_v13  ;;  %7356 = vst [vmem:[#allocation34_spill] sm:$0xff] %v5390_v8 }
  0x73   :  { %668 = vmatpush1.msra.mxu1 %v5334_v14  ;;  %599 = vmatpush1.msra.mxu0 %v5336_v15 }
  0x74   :  { %669 = vmatprep.subr.mxu1 %v5340_v16  ;;  %348 = vmatprep.mubr.f32.mxu0 %v7164_v6 }
  0x75   :  { %461 = vmatprep.mubr.f32.mxu1 %v7164_v6  ;;  %600 = vmatprep.subr.mxu0 %v5344_v17 }
  0x76   :  { %670 = vmatpush1.msra.mxu1 %v5348_v19  ;;  %4394 = vmatmul.mubr.msk.f32.gmra.mxu0 %vm112_vm0, %v192_v22 }
  0x77   :  { %4402 = vmatmul.mubr.msk.f32.gmra.mxu1 %vm112_vm0, %v192_v22  ;;  %601 = vmatpush1.msra.mxu0 %v5352_v23  ;;  %v5392_v22 = vld [vmem:[#allocation8] sm:$0xff] }
  0x78   :  { %671 = vmatprep.subr.mxu1 %v5356_v25  ;;  %602 = vmatprep.subr.mxu0 %v5358_v29  ;;  %7357 = vst [vmem:[#allocation35_spill] sm:$0xff] %v5392_v22 }
  0x79   :  { %672 = vmatpush1.msra.mxu1 %v5362_v30  ;;  %603 = vmatpush1.msra.mxu0 %v5364_v31  ;;  %v5396_v31 = vld [vmem:[#allocation8 + $0x18] sm:$0xff] }
  0x7a   :  { %673 = vmatprep.subr.mxu1 %v5368_v38  ;;  %354 = vmatprep.mubr.f32.mxu0 %v7164_v6  ;;  %7358 = vst [vmem:[#allocation36_spill] sm:$0xff] %v5396_v31 }
  0x7b   :  { %467 = vmatprep.mubr.f32.mxu1 %v7164_v6  ;;  %604 = vmatprep.subr.mxu0 %v5372_v39  ;;  %v5400_v6 = vld [vmem:[#allocation8 + $0x10] sm:$0xff]  ;;  %v506_v39 = vld [vmem:[%s7155_s8] sm:$0xff] }
  0x7c   :  { %674 = vmatpush1.msra.mxu1 %v5376_v42  ;;  %4395 = vmatmul.mubr.msk.f32.gmra.mxu0 %vm112_vm0, %v193_v46  ;;  %7359 = vst [vmem:[#allocation37_spill] sm:$0xff] %v5400_v6 }
  0x7d   :  { %4403 = vmatmul.mubr.msk.f32.gmra.mxu1 %vm112_vm0, %v193_v46  ;;  %605 = vmatpush1.msra.mxu0 %v5380_v47  ;;  %v7360_v46 = vmov 0.0  }
  0x7e   :  { %675 = vmatprep.subr.mxu1 %v5384_v53  ;;  %606 = vmatprep.subr.mxu0 %v5386_v62 }
  0x7f   :  { %676 = vmatpush1.msra.mxu1 %v5390_v8  ;;  %607 = vmatpush1.msra.mxu0 %v5392_v22 }
  0x80   :  { %677 = vmatprep.subr.mxu1 %v5396_v31  ;;  %640 = vmatprep.mubr.f32.mxu0 %v7360_v46 }
  0x81   :  { %678 = vmatpush1.msra.mxu1 %v5400_v6  ;;  %711 = vmatprep.mubr.f32.mxu1 %v7360_v46 }
  0x82   :  { %641 = vmatmul.mubr.f32.vlgmr.msra.gmra.mxu0 %v506_v39  ;;  %712 = vmatmul.mubr.f32.vlgmr.msra.gmra.mxu1 %v506_v39  ;;  %v7361_v39 = vld [vmem:[#allocation27_spill] sm:$0xff] }
  0x83   :  { %815 = vmatprep.subr.mxu0 %v5096_v9  ;;  %886 = vmatprep.subr.mxu1 %v5098_v10 }
  0x84   :  { %816 = vmatpush1.msra.mxu0 %v5145_v18  ;;  %887 = vmatpush1.msra.mxu1 %v5153_v21 }
  0x85   :  { %817 = vmatprep.subr.mxu0 %v5151_v20  ;;  %888 = vmatprep.subr.mxu1 %v5162_v24 }
  0x86   :  { %818 = vmatpush1.msra.mxu0 %v5173_v26  ;;  %889 = vmatpush1.msra.mxu1 %v5184_v28 }
  0x87   :  { %819 = vmatprep.subr.mxu0 %v5182_v27  ;;  %890 = vmatprep.subr.mxu1 %v5204_v33 }
  0x88   :  { %820 = vmatpush1.msra.mxu0 %v5190_v32  ;;  %891 = vmatpush1.msra.mxu1 %v5210_v35 }
  0x89   :  { %821 = vmatprep.subr.mxu0 %v5206_v34  ;;  %892 = vmatprep.subr.mxu1 %v5216_v37 }
  0x8a   :  { %822 = vmatpush1.msra.mxu0 %v5212_v36  ;;  %893 = vmatpush1.msra.mxu1 %v5234_v41 }
  0x8b   :  { %823 = vmatprep.subr.mxu0 %v5220_v40  ;;  %894 = vmatprep.subr.mxu1 %v5240_v44 }
  0x8c   :  { %824 = vmatpush1.msra.mxu0 %v5238_v43  ;;  %895 = vmatpush1.msra.mxu1 %v5248_v48 }
  0x8d   :  { %825 = vmatprep.subr.mxu0 %v5244_v45  ;;  %896 = vmatprep.subr.mxu1 %v5256_v50 }
  0x8e   :  { %826 = vmatpush1.msra.mxu0 %v5250_v49  ;;  %897 = vmatpush1.msra.mxu1 %v5264_v52 }
  0x8f   :  { %827 = vmatprep.subr.mxu0 %v5260_v51  ;;  %898 = vmatprep.subr.mxu1 %v5272_v55 }
  0x90   :  { %828 = vmatpush1.msra.mxu0 %v5268_v54  ;;  %899 = vmatpush1.msra.mxu1 %v5278_v57 }
  0x91   :  { %829 = vmatprep.subr.mxu0 %v5274_v56  ;;  %900 = vmatprep.subr.mxu1 %v5284_v59 }
  0x92   :  { %830 = vmatpush1.msra.mxu0 %v5280_v58  ;;  %901 = vmatpush1.msra.mxu1 %v5292_v61 }
  0x93   :  { %831 = vmatprep.subr.mxu0 %v5288_v60  ;;  %902 = vmatprep.subr.mxu1 %v5300_v0 }
  0x94   :  { %832 = vmatpush1.msra.mxu0 %v5296_v63  ;;  %903 = vmatpush1.msra.mxu1 %v5306_v2 }
  0x95   :  { %833 = vmatprep.subr.mxu0 %v5302_v1  ;;  %904 = vmatprep.subr.mxu1 %v5312_v4 }
  0x96   :  { %834 = vmatpush1.msra.mxu0 %v5308_v3  ;;  %905 = vmatpush1.msra.mxu1 %v5320_v7 }
  0x97   :  { %835 = vmatprep.subr.mxu0 %v5316_v5  ;;  %906 = vmatprep.subr.mxu1 %v5328_v12 }
  0x98   :  { %836 = vmatpush1.msra.mxu0 %v5324_v11  ;;  %907 = vmatpush1.msra.mxu1 %v5334_v14 }
  0x99   :  { %837 = vmatprep.subr.mxu0 %v5330_v13  ;;  %908 = vmatprep.subr.mxu1 %v5340_v16  ;;  %v7362_v16 = vld [vmem:[#allocation29_spill] sm:$0xff] }
  0x9a   :  { %838 = vmatpush1.msra.mxu0 %v5336_v15  ;;  %909 = vmatpush1.msra.mxu1 %v5348_v19 }
  0x9b   :  { %839 = vmatprep.subr.mxu0 %v5344_v17  ;;  %910 = vmatprep.subr.mxu1 %v5356_v25 }
  0x9c   :  { %840 = vmatpush1.msra.mxu0 %v5352_v23  ;;  %911 = vmatpush1.msra.mxu1 %v5362_v30 }
  0x9d   :  { %841 = vmatprep.subr.mxu0 %v5358_v29  ;;  %912 = vmatprep.subr.mxu1 %v5368_v38 }
  0x9e   :  { %842 = vmatpush1.msra.mxu0 %v7361_v39  ;;  %913 = vmatpush1.msra.mxu1 %v5376_v42 }
  0x9f   :  { %843 = vmatprep.subr.mxu0 %v7362_v16  ;;  %914 = vmatprep.subr.mxu1 %v5384_v53  ;;  %v204_v53 = vlaneseq }
  0xa0   :  { %844 = vmatpush1.msra.mxu0 %v5380_v47  ;;  %915 = vmatpush1.msra.mxu1 %v5390_v8 }
  0xa1   :  { %845 = vmatprep.subr.mxu0 %v5386_v62  ;;  %916 = vmatprep.subr.mxu1 %v5396_v31  ;;  %v5479_v47 = vshrl.u32 %v204_v53, 7 }
  0xa2   :  { %846 = vmatpush1.msra.mxu0 %v5392_v22  ;;  %879 = vmatprep.mubr.f32.mxu0 %v7360_v46  ;;  %v202_v22 = vld [vmem:[%s7151_s4] sm:$0xf] }
  0xa3   :  { %917 = vmatpush1.msra.mxu1 %v5400_v6  ;;  %950 = vmatprep.mubr.f32.mxu1 %v7360_v46  ;;  %7363 = vst [vmem:[#allocation38_spill] sm:$0xff] %v5479_v47  ;;  %v7184_v8 = vsub.s32 0, %v5479_v47  ;;  %v7186_v6 = vsub.s32 2, %v5479_v47  ;;  %v7189_v46 = vsub.s32 1, %v5479_v47  ;;  %v7192_v53 = vsub.s32 3, %v5479_v47 }
  0xa4   :  { %1054 = vmatprep.subr.mxu0 %v5096_v9  ;;  %1125 = vmatprep.subr.mxu1 %v5098_v10 }
  0xa5   :  { %v207_v16 = vrot.slane %v202_v22, %v7184_v8  ;;  %v5500_v42 = vrot.slane %v202_v22, %v7186_v6  ;;  %v211_v38 = vrot.slane %v202_v22, %v7189_v46  ;;  %v5508_v23 = vrot.slane %v202_v22, %v7192_v53 }
 0x113   :  { %v5482_v62 = vpop.f32.mrf.mxu0  ;;  %v5484_v31 = vpop.f32.mrf.mxu1 }
 0x115   :  { %v5491_v9 = vpop.f32.mrf.mxu0  ;;  %v5493_v10 = vpop.f32.mrf.mxu1 }
 0x118   :  { %v320_v39 = vpop.f32.mrf.mxu0 }
 0x119   :  { %v5504_v29 = vadd.f32 %v320_v39, %v207_v16  ;;  %v433_v30 = vpop.f32.mrf.mxu1 }
 0x11a   :  { %v5511_v25 = vadd.f32 %v433_v30, %v5500_v42  ;;  %v322_v17 = vpop.f32.mrf.mxu0 }
 0x11b   :  { %7364 = vst [vmem:[#allocation39_spill] sm:$0xff] %v5504_v29  ;;  %v5513_v8 = vadd.f32 %v322_v17, %v211_v38  ;;  %v435_v19 = vpop.f32.mrf.mxu1 }
 0x11c   :  { %7365 = vst [vmem:[#allocation40_spill] sm:$0xff] %v5511_v25  ;;  %v5516_v6 = vadd.f32 %v435_v19, %v5508_v23 }
 0x11d   :  { %7366 = vst [vmem:[#allocation41_spill] sm:$0xff] %v5513_v8 }
 0x11e   :  { %7367 = vst [vmem:[#allocation42_spill] sm:$0xff] %v5516_v6  ;;  %v326_v15 = vpop.f32.mrf.mxu0 }
 0x11f   :  { %v5518_v13 = vadd.f32 %v326_v15, %v207_v16  ;;  %v439_v39 = vpop.f32.mrf.mxu1 }
 0x120   :  { %v5521_v46 = vadd.f32 %v439_v39, %v5500_v42  ;;  %v328_v47 = vpop.f32.mrf.mxu0 }
 0x121   :  { %7368 = vst [vmem:[#allocation43_spill] sm:$0xff] %v5518_v13  ;;  %v5523_v22 = vadd.f32 %v328_v47, %v211_v38  ;;  %v441_v53 = vpop.f32.mrf.mxu1 }
 0x122   :  { %7369 = vst [vmem:[#allocation44_spill] sm:$0xff] %v5521_v46  ;;  %v5526_v30 = vadd.f32 %v441_v53, %v5508_v23 }
 0x123   :  { %7370 = vst [vmem:[#allocation45_spill] sm:$0xff] %v5523_v22 }
 0x124   :  { %7371 = vst [vmem:[#allocation46_spill] sm:$0xff] %v5526_v30  ;;  %v332_v17 = vpop.f32.mrf.mxu0 }
 0x125   :  { %v5528_v25 = vadd.f32 %v332_v17, %v207_v16  ;;  %v445_v8 = vpop.f32.mrf.mxu1 }
 0x126   :  { %v5531_v19 = vadd.f32 %v445_v8, %v5500_v42  ;;  %v334_v15 = vpop.f32.mrf.mxu0 }
 0x127   :  { %7372 = vst [vmem:[#allocation47_spill] sm:$0xff] %v5528_v25  ;;  %v5533_v13 = vadd.f32 %v334_v15, %v211_v38  ;;  %v447_v6 = vpop.f32.mrf.mxu1 }
 0x128   :  { %7373 = vst [vmem:[#allocation48_spill] sm:$0xff] %v5531_v19  ;;  %v5536_v39 = vadd.f32 %v447_v6, %v5508_v23 }
 0x129   :  { %7374 = vst [vmem:[#allocation49_spill] sm:$0xff] %v5533_v13 }
 0x12a   :  { %7375 = vst [vmem:[#allocation50_spill] sm:$0xff] %v5536_v39  ;;  %v338_v47 = vpop.f32.mrf.mxu0 }
 0x12b   :  { %v5538_v46 = vadd.f32 %v338_v47, %v207_v16  ;;  %v451_v22 = vpop.f32.mrf.mxu1 }
 0x12c   :  { %v5541_v53 = vadd.f32 %v451_v22, %v5500_v42  ;;  %v340_v17 = vpop.f32.mrf.mxu0 }
 0x12d   :  { %7376 = vst [vmem:[#allocation51_spill] sm:$0xff] %v5538_v46  ;;  %v5543_v25 = vadd.f32 %v340_v17, %v211_v38  ;;  %v453_v30 = vpop.f32.mrf.mxu1 }
 0x12e   :  { %7377 = vst [vmem:[#allocation52_spill] sm:$0xff] %v5541_v53  ;;  %v5546_v8 = vadd.f32 %v453_v30, %v5508_v23 }
 0x12f   :  { %7378 = vst [vmem:[#allocation53_spill] sm:$0xff] %v5543_v25 }
 0x130   :  { %7379 = vst [vmem:[#allocation54_spill] sm:$0xff] %v5546_v8  ;;  %v344_v15 = vpop.f32.mrf.mxu0 }
 0x131   :  { %v5548_v19 = vadd.f32 %v344_v15, %v207_v16  ;;  %v457_v13 = vpop.f32.mrf.mxu1 }
 0x132   :  { %v5551_v6 = vadd.f32 %v457_v13, %v5500_v42  ;;  %v346_v47 = vpop.f32.mrf.mxu0 }
 0x133   :  { %7380 = vst [vmem:[#allocation55_spill] sm:$0xff] %v5548_v19  ;;  %v5553_v46 = vadd.f32 %v346_v47, %v211_v38  ;;  %v459_v39 = vpop.f32.mrf.mxu1 }
 0x134   :  { %7381 = vst [vmem:[#allocation56_spill] sm:$0xff] %v5551_v6  ;;  %v5556_v22 = vadd.f32 %v459_v39, %v5508_v23 }
 0x135   :  { %7382 = vst [vmem:[#allocation57_spill] sm:$0xff] %v5553_v46 }
 0x136   :  { %7383 = vst [vmem:[#allocation58_spill] sm:$0xff] %v5556_v22  ;;  %v350_v17 = vpop.f32.mrf.mxu0 }
 0x137   :  { %v5558_v53 = vadd.f32 %v350_v17, %v207_v16  ;;  %v463_v25 = vpop.f32.mrf.mxu1 }
 0x138   :  { %v5561_v30 = vadd.f32 %v463_v25, %v5500_v42  ;;  %v352_v15 = vpop.f32.mrf.mxu0 }
 0x139   :  { %7384 = vst [vmem:[#allocation59_spill] sm:$0xff] %v5558_v53  ;;  %v5563_v19 = vadd.f32 %v352_v15, %v211_v38  ;;  %v465_v8 = vpop.f32.mrf.mxu1  ;;  %v315_v15 = vadd.f32 %v5482_v62, %v207_v16 }
 0x13a   :  { %7385 = vst [vmem:[#allocation60_spill] sm:$0xff] %v5561_v30  ;;  %v5566_v13 = vadd.f32 %v465_v8, %v5508_v23  ;;  %v317_v8 = vadd.f32 %v5491_v9, %v211_v38 }
 0x13b   :  { %7386 = vst [vmem:[#allocation61_spill] sm:$0xff] %v5563_v19 }
 0x13c   :  { %7387 = vst [vmem:[#allocation62_spill] sm:$0xff] %v5566_v13  ;;  %v356_v47 = vpop.f32.mrf.mxu0 }
 0x13d   :  { %v5568_v6 = vadd.f32 %v356_v47, %v207_v16  ;;  %v469_v46 = vpop.f32.mrf.mxu1 }
 0x13e   :  { %v5571_v39 = vadd.f32 %v469_v46, %v5500_v42  ;;  %v358_v17 = vpop.f32.mrf.mxu0 }
 0x13f   :  { %7388 = vst [vmem:[#allocation63_spill] sm:$0xff] %v5568_v6  ;;  %v5573_v53 = vadd.f32 %v358_v17, %v211_v38  ;;  %v471_v22 = vpop.f32.mrf.mxu1  ;;  %v430_v17 = vadd.f32 %v5493_v10, %v5508_v23 }
 0x140   :  { %7389 = vst [vmem:[#allocation64_spill] sm:$0xff] %v5571_v39  ;;  %v5576_v25 = vadd.f32 %v471_v22, %v5508_v23  ;;  %v428_v22 = vadd.f32 %v5484_v31, %v5500_v42  ;;  %v507_v23 = vld [vmem:[%s7156_s9] sm:$0xff] }
 0x141   :  { %7390 = vst [vmem:[#allocation65_spill] sm:$0xff] %v5573_v53 }
 0x142   :  { %7391 = vst [vmem:[#allocation66_spill] sm:$0xff] %v5576_v25  ;;  %v642_v30 = vpop.f32.mrf.mxu0  ;;  %v713_v29 = vpop.f32.mrf.mxu1 }
 0x143   :  { %v718_v13 = vadd.f32 %v642_v30, %v315_v15  ;;  %v720_v25 = vadd.f32 %v713_v29, %v428_v22 }
 0x144   :  { %v644_v19 = vpop.f32.mrf.mxu0  ;;  %v715_v39 = vpop.f32.mrf.mxu1 }
 0x145   :  { %v4404_v47 = vmul.f32 -1.442695, %v718_v13  ;;  %v719_v6 = vadd.f32 %v644_v19, %v317_v8  ;;  %v721_v53 = vadd.f32 %v715_v39, %v430_v17 }
 0x147   :  { %4520 = vpow2.f32 %v4404_v47  ;;  %v4405_v46 = vmul.f32 -1.442695, %v719_v6  ;;  %v4406_v16 = vmul.f32 -1.442695, %v721_v53 }
 0x149   :  { %4522 = vpow2.f32 %v4405_v46 }
 0x14a   :  { %4524 = vpow2.f32 %v4406_v16 }
 0x154   :  { %v4521_v62 = vpop.eup %4520 }
 0x155   :  { %v725_v38 = vadd.f32 1.0, %v4521_v62 }
 0x156   :  { %v4523_v9 = vpop.eup %4522 }
 0x157   :  { %4526 = vrcp.f32 %v725_v38  ;;  %v731_v19 = vadd.f32 1.0, %v4523_v9  ;;  %v4525_v6 = vpop.eup %4524 }
 0x158   :  { %4528 = vtanh.f32 %v720_v25  ;;  %v738_v39 = vadd.f32 1.0, %v4525_v6  ;;  %v5674_v6 = vld [vmem:[#allocation8 + $0x1f8] sm:$0xff] }
 0x159   :  { %4530 = vrcp.f32 %v731_v19  ;;  %v5672_v19 = vld [vmem:[#allocation8 + $0x1e8] sm:$0xff] }
 0x15a   :  { %4532 = vrcp.f32 %v738_v39  ;;  %v5690_v39 = vld [vmem:[#allocation8 + $0x1c0] sm:$0xff] }
 0x164   :  { %v4527_v30 = vpop.eup %4526 }
 0x165   :  { %v4529_v10 = vpop.eup %4528 }
 0x166   :  { %v4531_v13 = vpop.eup %4530  ;;  %v742_v31 = vmul.f32 %v4529_v10, %v4527_v30  ;;  %v5678_v30 = vld [vmem:[#allocation8 + $0x1e0] sm:$0xff]  ;;  %v5684_v10 = vld [vmem:[#allocation8 + $0x1c8] sm:$0xff] }
 0x167   :  { %v741_v42 = vmul.f32 %v4531_v13, %v507_v23  ;;  %v4533_v29 = vpop.eup %4532  ;;  %v5680_v23 = vld [vmem:[#allocation8 + $0x1f0] sm:$0xff]  ;;  %v5686_v13 = vld [vmem:[#allocation8 + $0x1d8] sm:$0xff] }
 0x169   :  { %v5587_v53 = vadd.f32 %v742_v31, %v741_v42  ;;  %v5692_v31 = vld [vmem:[#allocation8 + $0x1d0] sm:$0xff]  ;;  %v5696_v42 = vld [vmem:[#allocation8 + $0x1a8] sm:$0xff] }
 0x16b   :  { %4534 = vtanh.f32 %v5587_v53 }
 0x178   :  { %v4535_v15 = vpop.eup %4534 }
 0x179   :  { %v5590_v25 = vmul.f32 %v4535_v15, %v4533_v29  ;;  %v5702_v29 = vld [vmem:[#allocation8 + $0x1a0] sm:$0xff]  ;;  %v5704_v15 = vld [vmem:[#allocation8 + $0x1b0] sm:$0xff] }
 0x17b   :  { %7392 = vst [vmem:[#allocation67_spill] sm:$0xff] %v5590_v25  ;;  %880 = vmatmul.mubr.f32.vlgmr.msra.gmra.mxu0 %v5590_v25  ;;  %951 = vmatmul.mubr.f32.vlgmr.msra.gmra.mxu1 %v5590_v25  ;;  %v5850_v25 = vld [vmem:[#allocation8 + $0x18] sm:$0xff] }
 0x17c   :  { %1055 = vmatpush1.msra.mxu0 %v5145_v18  ;;  %1126 = vmatpush1.msra.mxu1 %v5153_v21  ;;  %v7393_v18 = vld [vmem:[#allocation18_spill] sm:$0xff]  ;;  %v7395_v21 = vld [vmem:[#allocation19_spill] sm:$0xff] }
 0x17d   :  { %1056 = vmatprep.subr.mxu0 %v5151_v20  ;;  %1127 = vmatprep.subr.mxu1 %v5162_v24  ;;  %v7394_v20 = vld [vmem:[#allocation20_spill] sm:$0xff]  ;;  %v7396_v24 = vld [vmem:[#allocation22_spill] sm:$0xff]  ;;  %7420 = vst [vmem:[#allocation19_spill] sm:$0xff] %v5674_v6 }
 0x17e   :  { %1057 = vmatpush1.msra.mxu0 %v5173_v26  ;;  %1128 = vmatpush1.msra.mxu1 %v5184_v28  ;;  %v7397_v26 = vld [vmem:[#allocation21_spill] sm:$0xff]  ;;  %v7399_v28 = vld [vmem:[#allocation23_spill] sm:$0xff]  ;;  %7419 = vst [vmem:[#allocation20_spill] sm:$0xff] %v5672_v19 }
 0x17f   :  { %1058 = vmatprep.subr.mxu0 %v5182_v27  ;;  %1129 = vmatprep.subr.mxu1 %v5204_v33  ;;  %v7398_v27 = vld [vmem:[#allocation24_spill] sm:$0xff]  ;;  %v7401_v33 = vld [vmem:[#allocation25_spill] sm:$0xff] }
 0x180   :  { %1059 = vmatpush1.msra.mxu0 %v5190_v32  ;;  %1130 = vmatpush1.msra.mxu1 %v5210_v35  ;;  %v7400_v32 = vld [vmem:[#allocation26_spill] sm:$0xff]  ;;  %v7403_v35 = vld [vmem:[#allocation27_spill] sm:$0xff] }
 0x181   :  { %1060 = vmatprep.subr.mxu0 %v5206_v34  ;;  %1131 = vmatprep.subr.mxu1 %v5216_v37  ;;  %v7402_v34 = vld [vmem:[#allocation28_spill] sm:$0xff]  ;;  %v7405_v37 = vld [vmem:[#allocation29_spill] sm:$0xff] }
 0x182   :  { %1061 = vmatpush1.msra.mxu0 %v5212_v36  ;;  %1132 = vmatpush1.msra.mxu1 %v5234_v41  ;;  %v7404_v36 = vld [vmem:[#allocation30_spill] sm:$0xff]  ;;  %v7407_v41 = vld [vmem:[#allocation31_spill] sm:$0xff] }
 0x183   :  { %1062 = vmatprep.subr.mxu0 %v5220_v40  ;;  %1133 = vmatprep.subr.mxu1 %v5240_v44  ;;  %v7406_v40 = vld [vmem:[#allocation32_spill] sm:$0xff]  ;;  %v7409_v44 = vld [vmem:[#allocation33_spill] sm:$0xff] }
 0x184   :  { %1063 = vmatpush1.msra.mxu0 %v5238_v43  ;;  %1134 = vmatpush1.msra.mxu1 %v5248_v48  ;;  %v7408_v43 = vld [vmem:[#allocation34_spill] sm:$0xff]  ;;  %v7411_v48 = vld [vmem:[#allocation35_spill] sm:$0xff] }
 0x185   :  { %1064 = vmatprep.subr.mxu0 %v5244_v45  ;;  %1135 = vmatprep.subr.mxu1 %v5256_v50  ;;  %v7410_v45 = vld [vmem:[#allocation36_spill] sm:$0xff]  ;;  %v7413_v50 = vld [vmem:[#allocation37_spill] sm:$0xff] }
 0x186   :  { %1065 = vmatpush1.msra.mxu0 %v5250_v49  ;;  %1136 = vmatpush1.msra.mxu1 %v5264_v52  ;;  %v7412_v49 = vmov 0.0   ;;  %v7414_v52 = vld [vmem:[#allocation39_spill] sm:$0xff]  ;;  %7435 = vst [vmem:[#allocation36_spill] sm:$0xff] %v5850_v25 }
 0x187   :  { %1066 = vmatprep.subr.mxu0 %v5260_v51  ;;  %1137 = vmatprep.subr.mxu1 %v5272_v55 }
 0x188   :  { %1067 = vmatpush1.msra.mxu0 %v5268_v54  ;;  %1138 = vmatpush1.msra.mxu1 %v5278_v57  ;;  %v7415_v57 = vld [vmem:[#allocation41_spill] sm:$0xff] }
 0x189   :  { %1068 = vmatprep.subr.mxu0 %v5274_v56  ;;  %1139 = vmatprep.subr.mxu1 %v5284_v59 }
 0x18a   :  { %1069 = vmatpush1.msra.mxu0 %v5280_v58  ;;  %1140 = vmatpush1.msra.mxu1 %v5292_v61 }
 0x18b   :  { %1070 = vmatprep.subr.mxu0 %v5288_v60  ;;  %1141 = vmatprep.subr.mxu1 %v5300_v0 }
 0x18c   :  { %1071 = vmatpush1.msra.mxu0 %v5296_v63  ;;  %1142 = vmatpush1.msra.mxu1 %v5306_v2  ;;  %v7416_v63 = vld [vmem:[#allocation42_spill] sm:$0xff] }
 0x18d   :  { %1072 = vmatprep.subr.mxu0 %v5302_v1  ;;  %1143 = vmatprep.subr.mxu1 %v5312_v4  ;;  %v7417_v1 = vld [vmem:[#allocation40_spill] sm:$0xff] }
 0x18e   :  { %1073 = vmatpush1.msra.mxu0 %v5308_v3  ;;  %1144 = vmatpush1.msra.mxu1 %v5320_v7 }
 0x18f   :  { %1074 = vmatprep.subr.mxu0 %v5316_v5  ;;  %1145 = vmatprep.subr.mxu1 %v5328_v12 }
 0x190   :  { %1075 = vmatpush1.msra.mxu0 %v5324_v11  ;;  %1146 = vmatpush1.msra.mxu1 %v5334_v14 }
 0x191   :  { %1076 = vmatprep.subr.mxu0 %v7393_v18  ;;  %1147 = vmatprep.subr.mxu1 %v7394_v20  ;;  %v5708_v18 = vld [vmem:[#allocation8 + $0x188] sm:$0xff]  ;;  %v5710_v20 = vld [vmem:[#allocation8 + $0x198] sm:$0xff] }
 0x192   :  { %1077 = vmatpush1.msra.mxu0 %v7395_v21  ;;  %1148 = vmatpush1.msra.mxu1 %v7396_v24  ;;  %v5714_v21 = vld [vmem:[#allocation8 + $0x180] sm:$0xff]  ;;  %v5716_v24 = vld [vmem:[#allocation8 + $0x190] sm:$0xff] }
 0x193   :  { %1078 = vmatprep.subr.mxu0 %v7397_v26  ;;  %1149 = vmatprep.subr.mxu1 %v7398_v27  ;;  %v5720_v26 = vld [vmem:[#allocation8 + $0x168] sm:$0xff]  ;;  %v5722_v27 = vld [vmem:[#allocation8 + $0x178] sm:$0xff] }
 0x194   :  { %1079 = vmatpush1.msra.mxu0 %v7399_v28  ;;  %1150 = vmatpush1.msra.mxu1 %v7400_v32  ;;  %v5726_v28 = vld [vmem:[#allocation8 + $0x160] sm:$0xff]  ;;  %v5728_v32 = vld [vmem:[#allocation8 + $0x170] sm:$0xff] }
 0x195   :  { %1080 = vmatprep.subr.mxu0 %v7401_v33  ;;  %1151 = vmatprep.subr.mxu1 %v7402_v34  ;;  %v5732_v33 = vld [vmem:[#allocation8 + $0x148] sm:$0xff]  ;;  %v5734_v34 = vld [vmem:[#allocation8 + $0x158] sm:$0xff] }
 0x196   :  { %1081 = vmatpush1.msra.mxu0 %v7403_v35  ;;  %1152 = vmatpush1.msra.mxu1 %v7404_v36  ;;  %v5738_v35 = vld [vmem:[#allocation8 + $0x140] sm:$0xff]  ;;  %v5740_v36 = vld [vmem:[#allocation8 + $0x150] sm:$0xff] }
 0x197   :  { %1082 = vmatprep.subr.mxu0 %v7405_v37  ;;  %1153 = vmatprep.subr.mxu1 %v7406_v40  ;;  %v5744_v37 = vld [vmem:[#allocation8 + $0x128] sm:$0xff]  ;;  %v5746_v40 = vld [vmem:[#allocation8 + $0x138] sm:$0xff] }
 0x198   :  { %1083 = vmatpush1.msra.mxu0 %v7407_v41  ;;  %1154 = vmatpush1.msra.mxu1 %v7408_v43  ;;  %v5750_v41 = vld [vmem:[#allocation8 + $0x120] sm:$0xff]  ;;  %v5752_v43 = vld [vmem:[#allocation8 + $0x130] sm:$0xff] }
 0x199   :  { %1084 = vmatprep.subr.mxu0 %v7409_v44  ;;  %1155 = vmatprep.subr.mxu1 %v7410_v45  ;;  %v5756_v44 = vld [vmem:[#allocation8 + $0x108] sm:$0xff]  ;;  %v5758_v45 = vld [vmem:[#allocation8 + $0x118] sm:$0xff] }
 0x19a   :  { %1085 = vmatpush1.msra.mxu0 %v7411_v48  ;;  %1118 = vmatprep.mubr.f32.mxu0 %v7412_v49  ;;  %v5760_v48 = vld [vmem:[#allocation8 + $0x100] sm:$0xff] }
 0x19b   :  { %1156 = vmatpush1.msra.mxu1 %v7413_v50  ;;  %1189 = vmatprep.mubr.f32.mxu1 %v7412_v49  ;;  %v5764_v50 = vld [vmem:[#allocation8 + $0x110] sm:$0xff] }
 0x19c   :  { %1293 = vmatprep.subr.mxu0 %v5672_v19  ;;  %1364 = vmatprep.subr.mxu1 %v5674_v6 }
 0x23b   :  { %v881_v51 = vpop.f32.mrf.mxu0  ;;  %v952_v59 = vpop.f32.mrf.mxu1 }
 0x23c   :  { %v957_v54 = vadd.f32 %v881_v51, %v7414_v52  ;;  %v959_v2 = vadd.f32 %v952_v59, %v7417_v1  ;;  %v5766_v51 = vld [vmem:[#allocation8 + $0xe8] sm:$0xff]  ;;  %v5768_v52 = vld [vmem:[#allocation8 + $0xf8] sm:$0xff]  ;;  %v5784_v59 = vld [vmem:[#allocation8 + $0xd0] sm:$0xff] }
 0x23d   :  { %v883_v55 = vpop.f32.mrf.mxu0  ;;  %v954_v61 = vpop.f32.mrf.mxu1  ;;  %v5800_v1 = vld [vmem:[#allocation8 + $0x88] sm:$0xff] }
 0x23e   :  { %v4407_v56 = vmul.f32 -1.442695, %v957_v54  ;;  %v958_v58 = vadd.f32 %v883_v55, %v7415_v57  ;;  %v960_v0 = vadd.f32 %v954_v61, %v7416_v63  ;;  %v5772_v54 = vld [vmem:[#allocation8 + $0xe0] sm:$0xff]  ;;  %v5774_v55 = vld [vmem:[#allocation8 + $0xf0] sm:$0xff]  ;;  %v5780_v57 = vld [vmem:[#allocation8 + $0xd8] sm:$0xff] }
 0x23f   :  { %v5790_v61 = vld [vmem:[#allocation8 + $0xb8] sm:$0xff]  ;;  %v5794_v63 = vld [vmem:[#allocation8 + $0xa0] sm:$0xff] }
 0x240   :  { %4536 = vpow2.f32 %v4407_v56  ;;  %v4408_v60 = vmul.f32 -1.442695, %v958_v58  ;;  %v4409_v3 = vmul.f32 -1.442695, %v960_v0  ;;  %v5776_v56 = vld [vmem:[#allocation8 + $0xc8] sm:$0xff]  ;;  %v5782_v58 = vld [vmem:[#allocation8 + $0xc0] sm:$0xff] }
 0x241   :  { %v5796_v0 = vld [vmem:[#allocation8 + $0xb0] sm:$0xff] }
 0x242   :  { %4538 = vpow2.f32 %v4408_v60  ;;  %v5788_v60 = vld [vmem:[#allocation8 + $0xa8] sm:$0xff] }
 0x243   :  { %4540 = vtanh.f32 %v959_v2  ;;  %v5802_v2 = vld [vmem:[#allocation8 + $0x98] sm:$0xff] }
 0x244   :  { %4542 = vpow2.f32 %v4409_v3  ;;  %v5806_v3 = vld [vmem:[#allocation8 + $0x80] sm:$0xff] }
 0x24d   :  { %v4537_v4 = vpop.eup %4536 }
 0x24e   :  { %v964_v5 = vadd.f32 1.0, %v4537_v4  ;;  %v5808_v4 = vld [vmem:[#allocation8 + $0x90] sm:$0xff] }
 0x24f   :  { %v4539_v7 = vpop.eup %4538  ;;  %7421 = vst [vmem:[#allocation22_spill] sm:$0xff] %v5808_v4 }
 0x250   :  { %4544 = vrcp.f32 %v964_v5  ;;  %v970_v11 = vadd.f32 1.0, %v4539_v7  ;;  %v4541_v12 = vpop.eup %4540  ;;  %v5812_v5 = vld [vmem:[#allocation8 + $0x68] sm:$0xff]  ;;  %v5814_v7 = vld [vmem:[#allocation8 + $0x78] sm:$0xff] }
 0x251   :  { %v4543_v14 = vpop.eup %4542  ;;  %7422 = vst [vmem:[#allocation21_spill] sm:$0xff] %v5812_v5  ;;  %7423 = vst [vmem:[#allocation24_spill] sm:$0xff] %v5814_v7 }
 0x252   :  { %4546 = vrcp.f32 %v970_v11  ;;  %v977_v17 = vadd.f32 1.0, %v4543_v14  ;;  %v5818_v11 = vld [vmem:[#allocation8 + $0x60] sm:$0xff]  ;;  %v5824_v14 = vld [vmem:[#allocation8 + $0x48] sm:$0xff] }
 0x253   :  { %7424 = vst [vmem:[#allocation23_spill] sm:$0xff] %v5818_v11  ;;  %7426 = vst [vmem:[#allocation25_spill] sm:$0xff] %v5824_v14 }
 0x254   :  { %4548 = vrcp.f32 %v977_v17  ;;  %v5836_v17 = vld [vmem:[#allocation8 + $0x28] sm:$0xff] }
 0x255   :  { %7430 = vst [vmem:[#allocation29_spill] sm:$0xff] %v5836_v17 }
 0x25d   :  { %v4545_v8 = vpop.eup %4544 }
 0x25e   :  { %v981_v47 = vmul.f32 %v4545_v8, %v4541_v12  ;;  %v5820_v12 = vld [vmem:[#allocation8 + $0x70] sm:$0xff]  ;;  %v5826_v8 = vld [vmem:[#allocation8 + $0x58] sm:$0xff] }
 0x25f   :  { %v4547_v46 = vpop.eup %4546  ;;  %7425 = vst [vmem:[#allocation26_spill] sm:$0xff] %v5820_v12  ;;  %7427 = vst [vmem:[#allocation28_spill] sm:$0xff] %v5826_v8 }
 0x260   :  { %v980_v22 = vmul.f32 %v4547_v46, %v5587_v53  ;;  %v5698_v53 = vld [vmem:[#allocation8 + $0x1b8] sm:$0xff]  ;;  %v5832_v46 = vld [vmem:[#allocation8 + $0x50] sm:$0xff] }
 0x261   :  { %v4549_v62 = vpop.eup %4548  ;;  %7429 = vst [vmem:[#allocation30_spill] sm:$0xff] %v5832_v46 }
 0x262   :  { %v5663_v16 = vadd.f32 %v981_v47, %v980_v22  ;;  %v5830_v47 = vld [vmem:[#allocation8 + $0x40] sm:$0xff]  ;;  %v5838_v22 = vld [vmem:[#allocation8 + $0x38] sm:$0xff] }
 0x263   :  { %7428 = vst [vmem:[#allocation27_spill] sm:$0xff] %v5830_v47  ;;  %7431 = vst [vmem:[#allocation32_spill] sm:$0xff] %v5838_v22 }
 0x264   :  { %4550 = vtanh.f32 %v5663_v16 }
 0x271   :  { %v4551_v38 = vpop.eup %4550 }
 0x272   :  { %v5666_v9 = vmul.f32 %v4551_v38, %v4549_v62  ;;  %v5842_v62 = vld [vmem:[#allocation8 + $0x20] sm:$0xff]  ;;  %v5844_v38 = vld [vmem:[#allocation8 + $0x30] sm:$0xff] }
 0x273   :  { %7432 = vst [vmem:[#allocation31_spill] sm:$0xff] %v5842_v62  ;;  %7433 = vst [vmem:[#allocation34_spill] sm:$0xff] %v5844_v38 }
 0x274   :  { %7418 = vst [vmem:[#allocation18_spill] sm:$0xff] %v5666_v9  ;;  %1119 = vmatmul.mubr.f32.vlgmr.msra.gmra.mxu0 %v5666_v9  ;;  %1190 = vmatmul.mubr.f32.vlgmr.msra.gmra.mxu1 %v5666_v9  ;;  %v5848_v9 = vld [vmem:[#allocation8 + $0x8] sm:$0xff] }
 0x275   :  { %1357 = vmatprep.mubr.f32.mxu0 %v7412_v49  ;;  %1428 = vmatprep.mubr.f32.mxu1 %v7412_v49  ;;  %7434 = vst [vmem:[#allocation33_spill] sm:$0xff] %v5848_v9  ;;  %v5854_v49 = vld [vmem:[#allocation8] sm:$0xff] }
 0x276   :  { %1294 = vmatpush1.msra.mxu0 %v5678_v30  ;;  %1365 = vmatpush1.msra.mxu1 %v5680_v23  ;;  %7436 = vst [vmem:[#allocation35_spill] sm:$0xff] %v5854_v49 }
 0x277   :  { %1295 = vmatprep.subr.mxu0 %v5684_v10  ;;  %1366 = vmatprep.subr.mxu1 %v5686_v13 }
 0x278   :  { %1296 = vmatpush1.msra.mxu0 %v5690_v39  ;;  %1367 = vmatpush1.msra.mxu1 %v5692_v31 }
 0x279   :  { %1297 = vmatprep.subr.mxu0 %v5696_v42  ;;  %1368 = vmatprep.subr.mxu1 %v5698_v53 }
 0x27a   :  { %1298 = vmatpush1.msra.mxu0 %v5702_v29  ;;  %1369 = vmatpush1.msra.mxu1 %v5704_v15 }
 0x27b   :  { %1299 = vmatprep.subr.mxu0 %v5708_v18  ;;  %1370 = vmatprep.subr.mxu1 %v5710_v20 }
 0x27c   :  { %1300 = vmatpush1.msra.mxu0 %v5714_v21  ;;  %1371 = vmatpush1.msra.mxu1 %v5716_v24 }
 0x27d   :  { %1301 = vmatprep.subr.mxu0 %v5720_v26  ;;  %1372 = vmatprep.subr.mxu1 %v5722_v27 }
 0x27e   :  { %1302 = vmatpush1.msra.mxu0 %v5726_v28  ;;  %1373 = vmatpush1.msra.mxu1 %v5728_v32 }
 0x27f   :  { %1303 = vmatprep.subr.mxu0 %v5732_v33  ;;  %1374 = vmatprep.subr.mxu1 %v5734_v34 }
 0x280   :  { %1304 = vmatpush1.msra.mxu0 %v5738_v35  ;;  %1375 = vmatpush1.msra.mxu1 %v5740_v36 }
 0x281   :  { %1305 = vmatprep.subr.mxu0 %v5744_v37  ;;  %1376 = vmatprep.subr.mxu1 %v5746_v40 }
 0x282   :  { %1306 = vmatpush1.msra.mxu0 %v5750_v41  ;;  %1377 = vmatpush1.msra.mxu1 %v5752_v43 }
 0x283   :  { %1307 = vmatprep.subr.mxu0 %v5756_v44  ;;  %1378 = vmatprep.subr.mxu1 %v5758_v45 }
 0x284   :  { %1308 = vmatpush1.msra.mxu0 %v5760_v48  ;;  %1379 = vmatpush1.msra.mxu1 %v5764_v50 }
 0x285   :  { %1309 = vmatprep.subr.mxu0 %v5766_v51  ;;  %1380 = vmatprep.subr.mxu1 %v5768_v52 }
 0x286   :  { %1310 = vmatpush1.msra.mxu0 %v5772_v54  ;;  %1381 = vmatpush1.msra.mxu1 %v5774_v55 }
 0x287   :  { %1311 = vmatprep.subr.mxu0 %v5776_v56  ;;  %1382 = vmatprep.subr.mxu1 %v5780_v57 }
 0x288   :  { %1312 = vmatpush1.msra.mxu0 %v5782_v58  ;;  %1383 = vmatpush1.msra.mxu1 %v5784_v59 }
 0x289   :  { %1313 = vmatprep.subr.mxu0 %v5788_v60  ;;  %1384 = vmatprep.subr.mxu1 %v5790_v61 }
 0x28a   :  { %1314 = vmatpush1.msra.mxu0 %v5794_v63  ;;  %1385 = vmatpush1.msra.mxu1 %v5796_v0 }
 0x28b   :  { %1315 = vmatprep.subr.mxu0 %v5800_v1  ;;  %1386 = vmatprep.subr.mxu1 %v5802_v2 }
 0x28c   :  { %1316 = vmatpush1.msra.mxu0 %v5806_v3  ;;  %1387 = vmatpush1.msra.mxu1 %v5808_v4 }
 0x28d   :  { %1317 = vmatprep.subr.mxu0 %v5812_v5  ;;  %1388 = vmatprep.subr.mxu1 %v5814_v7  ;;  %v7441_v7 = vld [vmem:[#allocation44_spill] sm:$0xff] }
 0x28e   :  { %1318 = vmatpush1.msra.mxu0 %v5818_v11  ;;  %1389 = vmatpush1.msra.mxu1 %v5820_v12  ;;  %v7440_v11 = vld [vmem:[#allocation46_spill] sm:$0xff] }
 0x28f   :  { %1319 = vmatprep.subr.mxu0 %v5824_v14  ;;  %1390 = vmatprep.subr.mxu1 %v5826_v8  ;;  %v5856_v14 = vld [vmem:[#allocation8 + $0x10] sm:$0xff] }
 0x290   :  { %1320 = vmatpush1.msra.mxu0 %v5830_v47  ;;  %1391 = vmatpush1.msra.mxu1 %v5832_v46  ;;  %7437 = vst [vmem:[#allocation37_spill] sm:$0xff] %v5856_v14 }
 0x291   :  { %1321 = vmatprep.subr.mxu0 %v5836_v17  ;;  %1392 = vmatprep.subr.mxu1 %v5838_v22  ;;  %v7438_v17 = vld [vmem:[#allocation43_spill] sm:$0xff] }
 0x292   :  { %1322 = vmatpush1.msra.mxu0 %v5842_v62  ;;  %1393 = vmatpush1.msra.mxu1 %v5844_v38  ;;  %v7439_v62 = vld [vmem:[#allocation45_spill] sm:$0xff] }
 0x293   :  { %1323 = vmatprep.subr.mxu0 %v5848_v9  ;;  %1394 = vmatprep.subr.mxu1 %v5850_v25 }
 0x294   :  { %1324 = vmatpush1.msra.mxu0 %v5854_v49  ;;  %1395 = vmatpush1.msra.mxu1 %v5856_v14 }
 0x295   :  { %1532 = vmatprep.subr.mxu0 %v5672_v19  ;;  %1603 = vmatprep.subr.mxu1 %v5674_v6 }
 0x334   :  { %v1120_v22 = vpop.f32.mrf.mxu0  ;;  %v1191_v38 = vpop.f32.mrf.mxu1 }
 0x335   :  { %v1196_v46 = vadd.f32 %v1120_v22, %v7438_v17  ;;  %v1198_v14 = vadd.f32 %v1191_v38, %v7441_v7  ;;  %v7449_v38 = vld [vmem:[#allocation28_spill] sm:$0xff] }
 0x336   :  { %v1122_v47 = vpop.f32.mrf.mxu0  ;;  %v1193_v25 = vpop.f32.mrf.mxu1 }
 0x337   :  { %v4410_v8 = vmul.f32 -1.442695, %v1196_v46  ;;  %v1197_v12 = vadd.f32 %v1122_v47, %v7439_v62  ;;  %v1199_v49 = vadd.f32 %v1193_v25, %v7440_v11  ;;  %v7447_v11 = vld [vmem:[#allocation26_spill] sm:$0xff] }
 0x339   :  { %4552 = vpow2.f32 %v4410_v8  ;;  %v4411_v9 = vmul.f32 -1.442695, %v1197_v12  ;;  %v4412_v5 = vmul.f32 -1.442695, %v1199_v49 }
 0x33b   :  { %4554 = vpow2.f32 %v4411_v9 }
 0x33c   :  { %4556 = vtanh.f32 %v1198_v14  ;;  %v7448_v14 = vld [vmem:[#allocation25_spill] sm:$0xff] }
 0x33d   :  { %4558 = vpow2.f32 %v4412_v5  ;;  %v7446_v5 = vld [vmem:[#allocation23_spill] sm:$0xff] }
 0x346   :  { %v4553_v19 = vpop.eup %4552 }
 0x347   :  { %v1203_v4 = vadd.f32 1.0, %v4553_v19 }
 0x348   :  { %v4555_v6 = vpop.eup %4554 }
 0x349   :  { %4560 = vrcp.f32 %v1203_v4  ;;  %v1209_v17 = vadd.f32 1.0, %v4555_v6  ;;  %v4557_v46 = vpop.eup %4556  ;;  %v7444_v6 = vld [vmem:[#allocation21_spill] sm:$0xff]  ;;  %v7445_v4 = vld [vmem:[#allocation24_spill] sm:$0xff] }
 0x34a   :  { %v4559_v47 = vpop.eup %4558 }
 0x34b   :  { %4562 = vrcp.f32 %v1209_v17  ;;  %v1216_v9 = vadd.f32 1.0, %v4559_v47  ;;  %v7450_v17 = vld [vmem:[#allocation27_spill] sm:$0xff]  ;;  %v7452_v47 = vld [vmem:[#allocation29_spill] sm:$0xff] }
 0x34d   :  { %4564 = vrcp.f32 %v1216_v9  ;;  %v7456_v9 = vld [vmem:[#allocation33_spill] sm:$0xff] }
 0x356   :  { %v4561_v8 = vpop.eup %4560 }
 0x357   :  { %v1220_v22 = vmul.f32 %v4561_v8, %v4557_v46  ;;  %v7451_v46 = vld [vmem:[#allocation30_spill] sm:$0xff]  ;;  %v7453_v8 = vld [vmem:[#allocation32_spill] sm:$0xff] }
 0x358   :  { %v4563_v12 = vpop.eup %4562 }
 0x359   :  { %v1219_v62 = vmul.f32 %v4563_v12, %v5663_v16  ;;  %v7443_v16 = vld [vmem:[#allocation22_spill] sm:$0xff] }
 0x35a   :  { %v4565_v49 = vpop.eup %4564  ;;  %v7455_v12 = vld [vmem:[#allocation34_spill] sm:$0xff] }
 0x35b   :  { %v5871_v25 = vadd.f32 %v1220_v22, %v1219_v62  ;;  %v7454_v22 = vld [vmem:[#allocation31_spill] sm:$0xff]  ;;  %v7457_v62 = vld [vmem:[#allocation36_spill] sm:$0xff] }
 0x35d   :  { %4566 = vtanh.f32 %v5871_v25 }
 0x36a   :  { %v4567_v19 = vpop.eup %4566 }
 0x36b   :  { %v5874_v7 = vmul.f32 %v4567_v19, %v4565_v49  ;;  %v7458_v49 = vld [vmem:[#allocation35_spill] sm:$0xff]  ;;  %v7459_v19 = vmov 0.0  }
 0x36d   :  { %7442 = vst [vmem:[#allocation39_spill] sm:$0xff] %v5874_v7  ;;  %1358 = vmatmul.mubr.f32.vlgmr.msra.gmra.mxu0 %v5874_v7  ;;  %1429 = vmatmul.mubr.f32.vlgmr.msra.gmra.mxu1 %v5874_v7  ;;  %v7460_v7 = vld [vmem:[#allocation37_spill] sm:$0xff] }
 0x36e   :  { %1533 = vmatpush1.msra.mxu0 %v5678_v30  ;;  %1604 = vmatpush1.msra.mxu1 %v5680_v23 }
 0x36f   :  { %1534 = vmatprep.subr.mxu0 %v5684_v10  ;;  %1605 = vmatprep.subr.mxu1 %v5686_v13 }
 0x370   :  { %1535 = vmatpush1.msra.mxu0 %v5690_v39  ;;  %1606 = vmatpush1.msra.mxu1 %v5692_v31 }
 0x371   :  { %1536 = vmatprep.subr.mxu0 %v5696_v42  ;;  %1607 = vmatprep.subr.mxu1 %v5698_v53 }
 0x372   :  { %1537 = vmatpush1.msra.mxu0 %v5702_v29  ;;  %1608 = vmatpush1.msra.mxu1 %v5704_v15 }
 0x373   :  { %1538 = vmatprep.subr.mxu0 %v5708_v18  ;;  %1609 = vmatprep.subr.mxu1 %v5710_v20 }
 0x374   :  { %1539 = vmatpush1.msra.mxu0 %v5714_v21  ;;  %1610 = vmatpush1.msra.mxu1 %v5716_v24 }
 0x375   :  { %1540 = vmatprep.subr.mxu0 %v5720_v26  ;;  %1611 = vmatprep.subr.mxu1 %v5722_v27 }
 0x376   :  { %1541 = vmatpush1.msra.mxu0 %v5726_v28  ;;  %1612 = vmatpush1.msra.mxu1 %v5728_v32 }
 0x377   :  { %1542 = vmatprep.subr.mxu0 %v5732_v33  ;;  %1613 = vmatprep.subr.mxu1 %v5734_v34 }
 0x378   :  { %1543 = vmatpush1.msra.mxu0 %v5738_v35  ;;  %1614 = vmatpush1.msra.mxu1 %v5740_v36 }
 0x379   :  { %1544 = vmatprep.subr.mxu0 %v5744_v37  ;;  %1615 = vmatprep.subr.mxu1 %v5746_v40 }
 0x37a   :  { %1545 = vmatpush1.msra.mxu0 %v5750_v41  ;;  %1616 = vmatpush1.msra.mxu1 %v5752_v43 }
 0x37b   :  { %1546 = vmatprep.subr.mxu0 %v5756_v44  ;;  %1617 = vmatprep.subr.mxu1 %v5758_v45 }
 0x37c   :  { %1547 = vmatpush1.msra.mxu0 %v5760_v48  ;;  %1618 = vmatpush1.msra.mxu1 %v5764_v50 }
 0x37d   :  { %1548 = vmatprep.subr.mxu0 %v5766_v51  ;;  %1619 = vmatprep.subr.mxu1 %v5768_v52 }
 0x37e   :  { %1549 = vmatpush1.msra.mxu0 %v5772_v54  ;;  %1620 = vmatpush1.msra.mxu1 %v5774_v55 }
 0x37f   :  { %1550 = vmatprep.subr.mxu0 %v5776_v56  ;;  %1621 = vmatprep.subr.mxu1 %v5780_v57 }
 0x380   :  { %1551 = vmatpush1.msra.mxu0 %v5782_v58  ;;  %1622 = vmatpush1.msra.mxu1 %v5784_v59 }
 0x381   :  { %1552 = vmatprep.subr.mxu0 %v5788_v60  ;;  %1623 = vmatprep.subr.mxu1 %v5790_v61 }
 0x382   :  { %1553 = vmatpush1.msra.mxu0 %v5794_v63  ;;  %1624 = vmatpush1.msra.mxu1 %v5796_v0 }
 0x383   :  { %1554 = vmatprep.subr.mxu0 %v5800_v1  ;;  %1625 = vmatprep.subr.mxu1 %v5802_v2 }
 0x384   :  { %1555 = vmatpush1.msra.mxu0 %v5806_v3  ;;  %1626 = vmatpush1.msra.mxu1 %v7443_v16 }
 0x385   :  { %1556 = vmatprep.subr.mxu0 %v7444_v6  ;;  %1627 = vmatprep.subr.mxu1 %v7445_v4  ;;  %v7466_v4 = vld [vmem:[#allocation48_spill] sm:$0xff] }
 0x386   :  { %1557 = vmatpush1.msra.mxu0 %v7446_v5  ;;  %1628 = vmatpush1.msra.mxu1 %v7447_v11  ;;  %v7465_v5 = vld [vmem:[#allocation50_spill] sm:$0xff] }
 0x387   :  { %1558 = vmatprep.subr.mxu0 %v7448_v14  ;;  %1629 = vmatprep.subr.mxu1 %v7449_v38 }
 0x388   :  { %1559 = vmatpush1.msra.mxu0 %v7450_v17  ;;  %1630 = vmatpush1.msra.mxu1 %v7451_v46  ;;  %v7461_v46 = vld [vmem:[#allocation20_spill] sm:$0xff] }
 0x389   :  { %1560 = vmatprep.subr.mxu0 %v7452_v47  ;;  %1631 = vmatprep.subr.mxu1 %v7453_v8  ;;  %v7462_v47 = vld [vmem:[#allocation19_spill] sm:$0xff] }
 0x38a   :  { %1561 = vmatpush1.msra.mxu0 %v7454_v22  ;;  %1632 = vmatpush1.msra.mxu1 %v7455_v12  ;;  %v7463_v22 = vld [vmem:[#allocation47_spill] sm:$0xff] }
 0x38b   :  { %1562 = vmatprep.subr.mxu0 %v7456_v9  ;;  %1633 = vmatprep.subr.mxu1 %v7457_v62  ;;  %v7464_v9 = vld [vmem:[#allocation49_spill] sm:$0xff] }
 0x38c   :  { %1563 = vmatpush1.msra.mxu0 %v7458_v49  ;;  %1596 = vmatprep.mubr.f32.mxu0 %v7459_v19 }
 0x38d   :  { %1634 = vmatpush1.msra.mxu1 %v7460_v7  ;;  %1667 = vmatprep.mubr.f32.mxu1 %v7459_v19 }
 0x38e   :  { %1771 = vmatprep.subr.mxu0 %v7461_v46  ;;  %1842 = vmatprep.subr.mxu1 %v7462_v47 }
 0x42d   :  { %v1359_v8 = vpop.f32.mrf.mxu0  ;;  %v1430_v62 = vpop.f32.mrf.mxu1 }
 0x42e   :  { %v1435_v17 = vadd.f32 %v1359_v8, %v7463_v22  ;;  %v1437_v19 = vadd.f32 %v1430_v62, %v7466_v4  ;;  %v7473_v62 = vld [vmem:[#allocation25_spill] sm:$0xff] }
 0x42f   :  { %v1361_v12 = vpop.f32.mrf.mxu0  ;;  %v1432_v11 = vpop.f32.mrf.mxu1 }
 0x430   :  { %v4413_v38 = vmul.f32 -1.442695, %v1435_v17  ;;  %v1436_v14 = vadd.f32 %v1361_v12, %v7464_v9  ;;  %v1438_v7 = vadd.f32 %v1432_v11, %v7465_v5 }
 0x432   :  { %4568 = vpow2.f32 %v4413_v38  ;;  %v4414_v49 = vmul.f32 -1.442695, %v1436_v14  ;;  %v4415_v6 = vmul.f32 -1.442695, %v1438_v7 }
 0x434   :  { %4570 = vpow2.f32 %v4414_v49 }
 0x435   :  { %4572 = vtanh.f32 %v1437_v19  ;;  %v7474_v19 = vld [vmem:[#allocation28_spill] sm:$0xff] }
 0x436   :  { %4574 = vpow2.f32 %v4415_v6  ;;  %v7470_v6 = vld [vmem:[#allocation24_spill] sm:$0xff] }
 0x43f   :  { %v4569_v46 = vpop.eup %4568 }
 0x440   :  { %v1442_v16 = vadd.f32 1.0, %v4569_v46  ;;  %v7471_v46 = vld [vmem:[#allocation23_spill] sm:$0xff] }
 0x441   :  { %v4571_v47 = vpop.eup %4570 }
 0x442   :  { %4576 = vrcp.f32 %v1442_v16  ;;  %v1448_v8 = vadd.f32 1.0, %v4571_v47  ;;  %v4573_v17 = vpop.eup %4572  ;;  %v7469_v16 = vld [vmem:[#allocation21_spill] sm:$0xff]  ;;  %v7472_v47 = vld [vmem:[#allocation26_spill] sm:$0xff] }
 0x443   :  { %v4575_v22 = vpop.eup %4574 }
 0x444   :  { %4578 = vrcp.f32 %v1448_v8  ;;  %v1455_v9 = vadd.f32 1.0, %v4575_v22  ;;  %v7475_v8 = vld [vmem:[#allocation27_spill] sm:$0xff]  ;;  %v7477_v22 = vld [vmem:[#allocation29_spill] sm:$0xff] }
 0x446   :  { %4580 = vrcp.f32 %v1455_v9  ;;  %v7481_v9 = vld [vmem:[#allocation33_spill] sm:$0xff] }
 0x44f   :  { %v4577_v38 = vpop.eup %4576 }
 0x450   :  { %v1459_v12 = vmul.f32 %v4577_v38, %v4573_v17  ;;  %v7476_v17 = vld [vmem:[#allocation30_spill] sm:$0xff]  ;;  %v7478_v38 = vld [vmem:[#allocation32_spill] sm:$0xff] }
 0x451   :  { %v4579_v14 = vpop.eup %4578 }
 0x452   :  { %v1458_v49 = vmul.f32 %v4579_v14, %v5871_v25  ;;  %v7468_v25 = vld [vmem:[#allocation22_spill] sm:$0xff] }
 0x453   :  { %v4581_v7 = vpop.eup %4580  ;;  %v7480_v14 = vld [vmem:[#allocation34_spill] sm:$0xff] }
 0x454   :  { %v5949_v5 = vadd.f32 %v1459_v12, %v1458_v49  ;;  %v7479_v12 = vld [vmem:[#allocation31_spill] sm:$0xff]  ;;  %v7482_v49 = vld [vmem:[#allocation36_spill] sm:$0xff] }
 0x456   :  { %4582 = vtanh.f32 %v5949_v5 }
 0x463   :  { %v4583_v4 = vpop.eup %4582 }
 0x464   :  { %v5952_v11 = vmul.f32 %v4583_v4, %v4581_v7  ;;  %v7483_v7 = vld [vmem:[#allocation35_spill] sm:$0xff]  ;;  %v7484_v4 = vmov 0.0  }
 0x466   :  { %7467 = vst [vmem:[#allocation41_spill] sm:$0xff] %v5952_v11  ;;  %1597 = vmatmul.mubr.f32.vlgmr.msra.gmra.mxu0 %v5952_v11  ;;  %1668 = vmatmul.mubr.f32.vlgmr.msra.gmra.mxu1 %v5952_v11  ;;  %v7485_v11 = vld [vmem:[#allocation37_spill] sm:$0xff] }
 0x467   :  { %1772 = vmatpush1.msra.mxu0 %v5678_v30  ;;  %1843 = vmatpush1.msra.mxu1 %v5680_v23 }
 0x468   :  { %1773 = vmatprep.subr.mxu0 %v5684_v10  ;;  %1844 = vmatprep.subr.mxu1 %v5686_v13 }
 0x469   :  { %1774 = vmatpush1.msra.mxu0 %v5690_v39  ;;  %1845 = vmatpush1.msra.mxu1 %v5692_v31 }
 0x46a   :  { %1775 = vmatprep.subr.mxu0 %v5696_v42  ;;  %1846 = vmatprep.subr.mxu1 %v5698_v53 }
 0x46b   :  { %1776 = vmatpush1.msra.mxu0 %v5702_v29  ;;  %1847 = vmatpush1.msra.mxu1 %v5704_v15 }
 0x46c   :  { %1777 = vmatprep.subr.mxu0 %v5708_v18  ;;  %1848 = vmatprep.subr.mxu1 %v5710_v20 }
 0x46d   :  { %1778 = vmatpush1.msra.mxu0 %v5714_v21  ;;  %1849 = vmatpush1.msra.mxu1 %v5716_v24 }
 0x46e   :  { %1779 = vmatprep.subr.mxu0 %v5720_v26  ;;  %1850 = vmatprep.subr.mxu1 %v5722_v27 }
 0x46f   :  { %1780 = vmatpush1.msra.mxu0 %v5726_v28  ;;  %1851 = vmatpush1.msra.mxu1 %v5728_v32 }
 0x470   :  { %1781 = vmatprep.subr.mxu0 %v5732_v33  ;;  %1852 = vmatprep.subr.mxu1 %v5734_v34 }
 0x471   :  { %1782 = vmatpush1.msra.mxu0 %v5738_v35  ;;  %1853 = vmatpush1.msra.mxu1 %v5740_v36 }
 0x472   :  { %1783 = vmatprep.subr.mxu0 %v5744_v37  ;;  %1854 = vmatprep.subr.mxu1 %v5746_v40 }
 0x473   :  { %1784 = vmatpush1.msra.mxu0 %v5750_v41  ;;  %1855 = vmatpush1.msra.mxu1 %v5752_v43 }
 0x474   :  { %1785 = vmatprep.subr.mxu0 %v5756_v44  ;;  %1856 = vmatprep.subr.mxu1 %v5758_v45 }
 0x475   :  { %1786 = vmatpush1.msra.mxu0 %v5760_v48  ;;  %1857 = vmatpush1.msra.mxu1 %v5764_v50 }
 0x476   :  { %1787 = vmatprep.subr.mxu0 %v5766_v51  ;;  %1858 = vmatprep.subr.mxu1 %v5768_v52 }
 0x477   :  { %1788 = vmatpush1.msra.mxu0 %v5772_v54  ;;  %1859 = vmatpush1.msra.mxu1 %v5774_v55 }
 0x478   :  { %1789 = vmatprep.subr.mxu0 %v5776_v56  ;;  %1860 = vmatprep.subr.mxu1 %v5780_v57 }
 0x479   :  { %1790 = vmatpush1.msra.mxu0 %v5782_v58  ;;  %1861 = vmatpush1.msra.mxu1 %v5784_v59 }
 0x47a   :  { %1791 = vmatprep.subr.mxu0 %v5788_v60  ;;  %1862 = vmatprep.subr.mxu1 %v5790_v61 }
 0x47b   :  { %1792 = vmatpush1.msra.mxu0 %v5794_v63  ;;  %1863 = vmatpush1.msra.mxu1 %v5796_v0 }
 0x47c   :  { %1793 = vmatprep.subr.mxu0 %v5800_v1  ;;  %1864 = vmatprep.subr.mxu1 %v5802_v2 }
 0x47d   :  { %1794 = vmatpush1.msra.mxu0 %v5806_v3  ;;  %1865 = vmatpush1.msra.mxu1 %v7468_v25 }
 0x47e   :  { %1795 = vmatprep.subr.mxu0 %v7469_v16  ;;  %1866 = vmatprep.subr.mxu1 %v7470_v6  ;;  %v7491_v6 = vld [vmem:[#allocation52_spill] sm:$0xff] }
 0x47f   :  { %1796 = vmatpush1.msra.mxu0 %v7471_v46  ;;  %1867 = vmatpush1.msra.mxu1 %v7472_v47  ;;  %v7490_v46 = vld [vmem:[#allocation54_spill] sm:$0xff] }
 0x480   :  { %1797 = vmatprep.subr.mxu0 %v7473_v62  ;;  %1868 = vmatprep.subr.mxu1 %v7474_v19 }
 0x481   :  { %1798 = vmatpush1.msra.mxu0 %v7475_v8  ;;  %1869 = vmatpush1.msra.mxu1 %v7476_v17  ;;  %v7486_v17 = vld [vmem:[#allocation20_spill] sm:$0xff] }
 0x482   :  { %1799 = vmatprep.subr.mxu0 %v7477_v22  ;;  %1870 = vmatprep.subr.mxu1 %v7478_v38  ;;  %v7487_v22 = vld [vmem:[#allocation19_spill] sm:$0xff] }
 0x483   :  { %1800 = vmatpush1.msra.mxu0 %v7479_v12  ;;  %1871 = vmatpush1.msra.mxu1 %v7480_v14  ;;  %v7488_v12 = vld [vmem:[#allocation51_spill] sm:$0xff] }
 0x484   :  { %1801 = vmatprep.subr.mxu0 %v7481_v9  ;;  %1872 = vmatprep.subr.mxu1 %v7482_v49  ;;  %v7489_v9 = vld [vmem:[#allocation53_spill] sm:$0xff] }
 0x485   :  { %1802 = vmatpush1.msra.mxu0 %v7483_v7  ;;  %1835 = vmatprep.mubr.f32.mxu0 %v7484_v4 }
 0x486   :  { %1873 = vmatpush1.msra.mxu1 %v7485_v11  ;;  %1906 = vmatprep.mubr.f32.mxu1 %v7484_v4 }
 0x487   :  { %2010 = vmatprep.subr.mxu0 %v7486_v17  ;;  %2081 = vmatprep.subr.mxu1 %v7487_v22 }
 0x526   :  { %v1598_v38 = vpop.f32.mrf.mxu0  ;;  %v1669_v49 = vpop.f32.mrf.mxu1 }
 0x527   :  { %v1674_v8 = vadd.f32 %v1598_v38, %v7488_v12  ;;  %v1676_v4 = vadd.f32 %v1669_v49, %v7491_v6  ;;  %v2246_v49 = vld [vmem:[#allocation8 + $0x1e8] sm:$0xff] }
 0x528   :  { %v1600_v14 = vpop.f32.mrf.mxu0  ;;  %v1671_v47 = vpop.f32.mrf.mxu1 }
 0x529   :  { %v4416_v19 = vmul.f32 -1.442695, %v1674_v8  ;;  %v1675_v62 = vadd.f32 %v1600_v14, %v7489_v9  ;;  %v1677_v11 = vadd.f32 %v1671_v47, %v7490_v46 }
 0x52b   :  { %4584 = vpow2.f32 %v4416_v19  ;;  %v4417_v7 = vmul.f32 -1.442695, %v1675_v62  ;;  %v4418_v16 = vmul.f32 -1.442695, %v1677_v11 }
 0x52d   :  { %4586 = vpow2.f32 %v4417_v7 }
 0x52e   :  { %4588 = vtanh.f32 %v1676_v4  ;;  %v2248_v4 = vld [vmem:[#allocation8 + $0x1f8] sm:$0xff] }
 0x52f   :  { %4590 = vpow2.f32 %v4418_v16 }
 0x538   :  { %v4585_v17 = vpop.eup %4584 }
 0x539   :  { %v1681_v25 = vadd.f32 1.0, %v4585_v17  ;;  %v2245_v17 = vld [vmem:[#allocation8 + $0x1e0] sm:$0xff] }
 0x53a   :  { %v4587_v22 = vpop.eup %4586 }
 0x53b   :  { %4592 = vrcp.f32 %v1681_v25  ;;  %v1687_v38 = vadd.f32 1.0, %v4587_v22  ;;  %v4589_v8 = vpop.eup %4588  ;;  %v2247_v22 = vld [vmem:[#allocation8 + $0x1f0] sm:$0xff] }
 0x53c   :  { %v4591_v12 = vpop.eup %4590 }
 0x53d   :  { %4594 = vrcp.f32 %v1687_v38  ;;  %v1694_v9 = vadd.f32 1.0, %v4591_v12  ;;  %v2242_v38 = vld [vmem:[#allocation8 + $0x1c8] sm:$0xff]  ;;  %v2241_v12 = vld [vmem:[#allocation8 + $0x1c0] sm:$0xff] }
 0x53f   :  { %4596 = vrcp.f32 %v1694_v9  ;;  %v2237_v9 = vld [vmem:[#allocation8 + $0x1a0] sm:$0xff] }
 0x548   :  { %v4593_v19 = vpop.eup %4592 }
 0x549   :  { %v1698_v14 = vmul.f32 %v4593_v19, %v4589_v8  ;;  %v2244_v8 = vld [vmem:[#allocation8 + $0x1d8] sm:$0xff]  ;;  %v2243_v19 = vld [vmem:[#allocation8 + $0x1d0] sm:$0xff] }
 0x54a   :  { %v4595_v62 = vpop.eup %4594 }
 0x54b   :  { %v1697_v7 = vmul.f32 %v4595_v62, %v5949_v5  ;;  %v2240_v62 = vld [vmem:[#allocation8 + $0x1b8] sm:$0xff] }
 0x54c   :  { %v4597_v11 = vpop.eup %4596 }
 0x54d   :  { %v6027_v46 = vadd.f32 %v1698_v14, %v1697_v7  ;;  %v2238_v14 = vld [vmem:[#allocation8 + $0x1a8] sm:$0xff]  ;;  %v2239_v7 = vld [vmem:[#allocation8 + $0x1b0] sm:$0xff] }
 0x54f   :  { %4598 = vtanh.f32 %v6027_v46 }
 0x55c   :  { %v4599_v6 = vpop.eup %4598 }
 0x55d   :  { %v6030_v47 = vmul.f32 %v4599_v6, %v4597_v11  ;;  %v2236_v11 = vld [vmem:[#allocation8 + $0x198] sm:$0xff]  ;;  %v2233_v6 = vld [vmem:[#allocation8 + $0x180] sm:$0xff] }
 0x55f   :  { %1836 = vmatmul.mubr.f32.vlgmr.msra.gmra.mxu0 %v6030_v47  ;;  %1907 = vmatmul.mubr.f32.vlgmr.msra.gmra.mxu1 %v6030_v47 }
 0x560   :  { %2011 = vmatpush1.msra.mxu0 %v5678_v30  ;;  %2082 = vmatpush1.msra.mxu1 %v5680_v23  ;;  %v7492_v30 = vld [vmem:[#allocation22_spill] sm:$0xff]  ;;  %v7493_v23 = vld [vmem:[#allocation21_spill] sm:$0xff] }
 0x561   :  { %2012 = vmatprep.subr.mxu0 %v5684_v10  ;;  %2083 = vmatprep.subr.mxu1 %v5686_v13  ;;  %v7494_v10 = vld [vmem:[#allocation24_spill] sm:$0xff]  ;;  %v7495_v13 = vld [vmem:[#allocation23_spill] sm:$0xff] }
 0x562   :  { %2013 = vmatpush1.msra.mxu0 %v5690_v39  ;;  %2084 = vmatpush1.msra.mxu1 %v5692_v31  ;;  %v7496_v39 = vld [vmem:[#allocation26_spill] sm:$0xff]  ;;  %v7497_v31 = vld [vmem:[#allocation25_spill] sm:$0xff] }
 0x563   :  { %2014 = vmatprep.subr.mxu0 %v5696_v42  ;;  %2085 = vmatprep.subr.mxu1 %v5698_v53  ;;  %v7498_v42 = vld [vmem:[#allocation28_spill] sm:$0xff]  ;;  %v7499_v53 = vld [vmem:[#allocation27_spill] sm:$0xff] }
 0x564   :  { %2015 = vmatpush1.msra.mxu0 %v5702_v29  ;;  %2086 = vmatpush1.msra.mxu1 %v5704_v15  ;;  %v7500_v29 = vld [vmem:[#allocation30_spill] sm:$0xff]  ;;  %v7501_v15 = vld [vmem:[#allocation29_spill] sm:$0xff] }
 0x565   :  { %2016 = vmatprep.subr.mxu0 %v5708_v18  ;;  %2087 = vmatprep.subr.mxu1 %v5710_v20  ;;  %v7502_v18 = vld [vmem:[#allocation32_spill] sm:$0xff]  ;;  %v7503_v20 = vld [vmem:[#allocation31_spill] sm:$0xff] }
 0x566   :  { %2017 = vmatpush1.msra.mxu0 %v5714_v21  ;;  %2088 = vmatpush1.msra.mxu1 %v5716_v24  ;;  %v7504_v21 = vld [vmem:[#allocation34_spill] sm:$0xff]  ;;  %v7505_v24 = vld [vmem:[#allocation33_spill] sm:$0xff] }
 0x567   :  { %2018 = vmatprep.subr.mxu0 %v5720_v26  ;;  %2089 = vmatprep.subr.mxu1 %v5722_v27  ;;  %v7506_v26 = vld [vmem:[#allocation36_spill] sm:$0xff]  ;;  %v7507_v27 = vld [vmem:[#allocation35_spill] sm:$0xff] }
 0x568   :  { %2019 = vmatpush1.msra.mxu0 %v5726_v28  ;;  %2090 = vmatpush1.msra.mxu1 %v5728_v32  ;;  %v7508_v28 = vmov 0.0   ;;  %v7509_v32 = vld [vmem:[#allocation37_spill] sm:$0xff] }
 0x569   :  { %2020 = vmatprep.subr.mxu0 %v5732_v33  ;;  %2091 = vmatprep.subr.mxu1 %v5734_v34  ;;  %v7510_v34 = vld [vmem:[#allocation55_spill] sm:$0xff] }
 0x56a   :  { %2021 = vmatpush1.msra.mxu0 %v5738_v35  ;;  %2092 = vmatpush1.msra.mxu1 %v5740_v36 }
 0x56b   :  { %2022 = vmatprep.subr.mxu0 %v5744_v37  ;;  %2093 = vmatprep.subr.mxu1 %v5746_v40  ;;  %v7511_v40 = vld [vmem:[#allocation57_spill] sm:$0xff] }
 0x56c   :  { %2023 = vmatpush1.msra.mxu0 %v5750_v41  ;;  %2094 = vmatpush1.msra.mxu1 %v5752_v43 }
 0x56d   :  { %2024 = vmatprep.subr.mxu0 %v5756_v44  ;;  %2095 = vmatprep.subr.mxu1 %v5758_v45 }
 0x56e   :  { %2025 = vmatpush1.msra.mxu0 %v5760_v48  ;;  %2096 = vmatpush1.msra.mxu1 %v5764_v50  ;;  %v7512_v48 = vld [vmem:[#allocation58_spill] sm:$0xff] }
 0x56f   :  { %2026 = vmatprep.subr.mxu0 %v5766_v51  ;;  %2097 = vmatprep.subr.mxu1 %v5768_v52  ;;  %v7513_v51 = vld [vmem:[#allocation56_spill] sm:$0xff] }
 0x570   :  { %2027 = vmatpush1.msra.mxu0 %v5772_v54  ;;  %2098 = vmatpush1.msra.mxu1 %v5774_v55 }
 0x571   :  { %2028 = vmatprep.subr.mxu0 %v5776_v56  ;;  %2099 = vmatprep.subr.mxu1 %v5780_v57 }
 0x572   :  { %2029 = vmatpush1.msra.mxu0 %v5782_v58  ;;  %2100 = vmatpush1.msra.mxu1 %v5784_v59 }
 0x573   :  { %2030 = vmatprep.subr.mxu0 %v5788_v60  ;;  %2101 = vmatprep.subr.mxu1 %v5790_v61 }
 0x574   :  { %2031 = vmatpush1.msra.mxu0 %v5794_v63  ;;  %2102 = vmatpush1.msra.mxu1 %v5796_v0 }
 0x575   :  { %2032 = vmatprep.subr.mxu0 %v5800_v1  ;;  %2103 = vmatprep.subr.mxu1 %v5802_v2 }
 0x576   :  { %2033 = vmatpush1.msra.mxu0 %v5806_v3  ;;  %2104 = vmatpush1.msra.mxu1 %v7492_v30  ;;  %v2235_v30 = vld [vmem:[#allocation8 + $0x190] sm:$0xff] }
 0x577   :  { %2034 = vmatprep.subr.mxu0 %v7493_v23  ;;  %2105 = vmatprep.subr.mxu1 %v7494_v10  ;;  %v2230_v23 = vld [vmem:[#allocation8 + $0x168] sm:$0xff]  ;;  %v2232_v10 = vld [vmem:[#allocation8 + $0x178] sm:$0xff] }
 0x578   :  { %2035 = vmatpush1.msra.mxu0 %v7495_v13  ;;  %2106 = vmatpush1.msra.mxu1 %v7496_v39  ;;  %v2229_v13 = vld [vmem:[#allocation8 + $0x160] sm:$0xff]  ;;  %v2231_v39 = vld [vmem:[#allocation8 + $0x170] sm:$0xff] }
 0x579   :  { %2036 = vmatprep.subr.mxu0 %v7497_v31  ;;  %2107 = vmatprep.subr.mxu1 %v7498_v42  ;;  %v2226_v31 = vld [vmem:[#allocation8 + $0x148] sm:$0xff]  ;;  %v2228_v42 = vld [vmem:[#allocation8 + $0x158] sm:$0xff] }
 0x57a   :  { %2037 = vmatpush1.msra.mxu0 %v7499_v53  ;;  %2108 = vmatpush1.msra.mxu1 %v7500_v29  ;;  %v2225_v53 = vld [vmem:[#allocation8 + $0x140] sm:$0xff]  ;;  %v2227_v29 = vld [vmem:[#allocation8 + $0x150] sm:$0xff] }
 0x57b   :  { %2038 = vmatprep.subr.mxu0 %v7501_v15  ;;  %2109 = vmatprep.subr.mxu1 %v7502_v18  ;;  %v2222_v15 = vld [vmem:[#allocation8 + $0x128] sm:$0xff]  ;;  %v2224_v18 = vld [vmem:[#allocation8 + $0x138] sm:$0xff] }
 0x57c   :  { %2039 = vmatpush1.msra.mxu0 %v7503_v20  ;;  %2110 = vmatpush1.msra.mxu1 %v7504_v21  ;;  %v2221_v20 = vld [vmem:[#allocation8 + $0x120] sm:$0xff]  ;;  %v2223_v21 = vld [vmem:[#allocation8 + $0x130] sm:$0xff] }
 0x57d   :  { %2040 = vmatprep.subr.mxu0 %v7505_v24  ;;  %2111 = vmatprep.subr.mxu1 %v7506_v26  ;;  %v2218_v24 = vld [vmem:[#allocation8 + $0x108] sm:$0xff]  ;;  %v2220_v26 = vld [vmem:[#allocation8 + $0x118] sm:$0xff] }
 0x57e   :  { %2041 = vmatpush1.msra.mxu0 %v7507_v27  ;;  %2074 = vmatprep.mubr.f32.mxu0 %v7508_v28  ;;  %v2217_v27 = vld [vmem:[#allocation8 + $0x100] sm:$0xff] }
 0x57f   :  { %2112 = vmatpush1.msra.mxu1 %v7509_v32  ;;  %2145 = vmatprep.mubr.f32.mxu1 %v7508_v28  ;;  %v2219_v32 = vld [vmem:[#allocation8 + $0x110] sm:$0xff] }
 0x580   :  { %2249 = vmatprep.subr.mxu0 %v2246_v49  ;;  %2320 = vmatprep.subr.mxu1 %v2248_v4  ;;  %v2186_v49 = vld [vmem:[#allocation8 + $0x8] sm:$0xff]  ;;  %v2188_v4 = vld [vmem:[#allocation8 + $0x18] sm:$0xff] }
 0x61f   :  { %v1837_v33 = vpop.f32.mrf.mxu0  ;;  %v1908_v43 = vpop.f32.mrf.mxu1 }
 0x620   :  { %v1913_v35 = vadd.f32 %v1837_v33, %v7510_v34  ;;  %v1915_v52 = vadd.f32 %v1908_v43, %v7513_v51  ;;  %v2214_v33 = vld [vmem:[#allocation8 + $0xe8] sm:$0xff]  ;;  %v2216_v34 = vld [vmem:[#allocation8 + $0xf8] sm:$0xff]  ;;  %v2211_v43 = vld [vmem:[#allocation8 + $0xd0] sm:$0xff] }
 0x621   :  { %v1839_v36 = vpop.f32.mrf.mxu0  ;;  %v1910_v45 = vpop.f32.mrf.mxu1  ;;  %v2202_v51 = vld [vmem:[#allocation8 + $0x88] sm:$0xff] }
 0x622   :  { %v4419_v37 = vmul.f32 -1.442695, %v1913_v35  ;;  %v1914_v41 = vadd.f32 %v1839_v36, %v7511_v40  ;;  %v1916_v50 = vadd.f32 %v1910_v45, %v7512_v48  ;;  %v2213_v35 = vld [vmem:[#allocation8 + $0xe0] sm:$0xff]  ;;  %v2215_v36 = vld [vmem:[#allocation8 + $0xf0] sm:$0xff]  ;;  %v2212_v40 = vld [vmem:[#allocation8 + $0xd8] sm:$0xff] }
 0x623   :  { %v2208_v45 = vld [vmem:[#allocation8 + $0xb8] sm:$0xff]  ;;  %v2205_v48 = vld [vmem:[#allocation8 + $0xa0] sm:$0xff] }
 0x624   :  { %4600 = vpow2.f32 %v4419_v37  ;;  %v4420_v44 = vmul.f32 -1.442695, %v1914_v41  ;;  %v4421_v54 = vmul.f32 -1.442695, %v1916_v50  ;;  %v2210_v37 = vld [vmem:[#allocation8 + $0xc8] sm:$0xff]  ;;  %v2209_v41 = vld [vmem:[#allocation8 + $0xc0] sm:$0xff] }
 0x625   :  { %v2207_v50 = vld [vmem:[#allocation8 + $0xb0] sm:$0xff] }
 0x626   :  { %4602 = vpow2.f32 %v4420_v44  ;;  %v2206_v44 = vld [vmem:[#allocation8 + $0xa8] sm:$0xff] }
 0x627   :  { %4604 = vtanh.f32 %v1915_v52  ;;  %v2204_v52 = vld [vmem:[#allocation8 + $0x98] sm:$0xff] }
 0x628   :  { %4606 = vpow2.f32 %v4421_v54  ;;  %v2201_v54 = vld [vmem:[#allocation8 + $0x80] sm:$0xff] }
 0x631   :  { %v4601_v55 = vpop.eup %4600 }
 0x632   :  { %v1920_v56 = vadd.f32 1.0, %v4601_v55  ;;  %v2203_v55 = vld [vmem:[#allocation8 + $0x90] sm:$0xff] }
 0x633   :  { %v4603_v57 = vpop.eup %4602 }
 0x634   :  { %4608 = vrcp.f32 %v1920_v56  ;;  %v1926_v58 = vadd.f32 1.0, %v4603_v57  ;;  %v4605_v59 = vpop.eup %4604  ;;  %v2198_v56 = vld [vmem:[#allocation8 + $0x68] sm:$0xff]  ;;  %v2200_v57 = vld [vmem:[#allocation8 + $0x78] sm:$0xff] }
 0x635   :  { %v4607_v60 = vpop.eup %4606 }
 0x636   :  { %4610 = vrcp.f32 %v1926_v58  ;;  %v1933_v1 = vadd.f32 1.0, %v4607_v60  ;;  %v2197_v58 = vld [vmem:[#allocation8 + $0x60] sm:$0xff]  ;;  %v2194_v60 = vld [vmem:[#allocation8 + $0x48] sm:$0xff] }
 0x638   :  { %4612 = vrcp.f32 %v1933_v1  ;;  %v2190_v1 = vld [vmem:[#allocation8 + $0x28] sm:$0xff] }
 0x641   :  { %v4609_v61 = vpop.eup %4608 }
 0x642   :  { %v1937_v63 = vmul.f32 %v4609_v61, %v4605_v59  ;;  %v2199_v59 = vld [vmem:[#allocation8 + $0x70] sm:$0xff]  ;;  %v2196_v61 = vld [vmem:[#allocation8 + $0x58] sm:$0xff] }
 0x643   :  { %v4611_v0 = vpop.eup %4610 }
 0x644   :  { %v1936_v2 = vmul.f32 %v4611_v0, %v6027_v46  ;;  %v2234_v46 = vld [vmem:[#allocation8 + $0x188] sm:$0xff]  ;;  %v2195_v0 = vld [vmem:[#allocation8 + $0x50] sm:$0xff] }
 0x645   :  { %v4613_v5 = vpop.eup %4612 }
 0x646   :  { %v6103_v3 = vadd.f32 %v1937_v63, %v1936_v2  ;;  %v2193_v63 = vld [vmem:[#allocation8 + $0x40] sm:$0xff]  ;;  %v2192_v2 = vld [vmem:[#allocation8 + $0x38] sm:$0xff] }
 0x648   :  { %4614 = vtanh.f32 %v6103_v3 }
 0x655   :  { %v4615_v25 = vpop.eup %4614 }
 0x656   :  { %v6106_v16 = vmul.f32 %v4615_v25, %v4613_v5  ;;  %v2189_v5 = vld [vmem:[#allocation8 + $0x20] sm:$0xff]  ;;  %v2191_v25 = vld [vmem:[#allocation8 + $0x30] sm:$0xff] }
 0x658   :  { %2075 = vmatmul.mubr.f32.vlgmr.msra.gmra.mxu0 %v6106_v16  ;;  %2146 = vmatmul.mubr.f32.vlgmr.msra.gmra.mxu1 %v6106_v16 }
 0x659   :  { %2313 = vmatprep.mubr.f32.mxu0 %v7508_v28  ;;  %2384 = vmatprep.mubr.f32.mxu1 %v7508_v28 }
 0x65a   :  { %2250 = vmatpush1.msra.mxu0 %v2245_v17  ;;  %2321 = vmatpush1.msra.mxu1 %v2247_v22  ;;  %v2185_v17 = vld [vmem:[#allocation8] sm:$0xff]  ;;  %v2187_v22 = vld [vmem:[#allocation8 + $0x10] sm:$0xff] }
 0x65b   :  { %2251 = vmatprep.subr.mxu0 %v2242_v38  ;;  %2322 = vmatprep.subr.mxu1 %v2244_v8  ;;  %v2491_v38 = vld [vmem:[#allocation9 + $0x1e8] sm:$0xff]  ;;  %v2493_v8 = vld [vmem:[#allocation9 + $0x1f8] sm:$0xff] }
 0x65c   :  { %2252 = vmatpush1.msra.mxu0 %v2241_v12  ;;  %2323 = vmatpush1.msra.mxu1 %v2243_v19  ;;  %v7514_v19 = vld [vmem:[#allocation59_spill] sm:$0xff] }
 0x65d   :  { %2253 = vmatprep.subr.mxu0 %v2238_v14  ;;  %2324 = vmatprep.subr.mxu1 %v2240_v62 }
 0x65e   :  { %2254 = vmatpush1.msra.mxu0 %v2237_v9  ;;  %2325 = vmatpush1.msra.mxu1 %v2239_v7  ;;  %v7515_v7 = vld [vmem:[#allocation61_spill] sm:$0xff] }
 0x65f   :  { %2255 = vmatprep.subr.mxu0 %v2234_v46  ;;  %2326 = vmatprep.subr.mxu1 %v2236_v11 }
 0x660   :  { %2256 = vmatpush1.msra.mxu0 %v2233_v6  ;;  %2327 = vmatpush1.msra.mxu1 %v2235_v30 }
 0x661   :  { %2257 = vmatprep.subr.mxu0 %v2230_v23  ;;  %2328 = vmatprep.subr.mxu1 %v2232_v10  ;;  %v7516_v23 = vld [vmem:[#allocation62_spill] sm:$0xff] }
 0x662   :  { %2258 = vmatpush1.msra.mxu0 %v2229_v13  ;;  %2329 = vmatpush1.msra.mxu1 %v2231_v39  ;;  %v7517_v13 = vld [vmem:[#allocation60_spill] sm:$0xff] }
 0x663   :  { %2259 = vmatprep.subr.mxu0 %v2226_v31  ;;  %2330 = vmatprep.subr.mxu1 %v2228_v42 }
 0x664   :  { %2260 = vmatpush1.msra.mxu0 %v2225_v53  ;;  %2331 = vmatpush1.msra.mxu1 %v2227_v29 }
 0x665   :  { %2261 = vmatprep.subr.mxu0 %v2222_v15  ;;  %2332 = vmatprep.subr.mxu1 %v2224_v18 }
 0x666   :  { %2262 = vmatpush1.msra.mxu0 %v2221_v20  ;;  %2333 = vmatpush1.msra.mxu1 %v2223_v21 }
 0x667   :  { %2263 = vmatprep.subr.mxu0 %v2218_v24  ;;  %2334 = vmatprep.subr.mxu1 %v2220_v26 }
 0x668   :  { %2264 = vmatpush1.msra.mxu0 %v2217_v27  ;;  %2335 = vmatpush1.msra.mxu1 %v2219_v32 }
 0x669   :  { %2265 = vmatprep.subr.mxu0 %v2214_v33  ;;  %2336 = vmatprep.subr.mxu1 %v2216_v34 }
 0x66a   :  { %2266 = vmatpush1.msra.mxu0 %v2213_v35  ;;  %2337 = vmatpush1.msra.mxu1 %v2215_v36 }
 0x66b   :  { %2267 = vmatprep.subr.mxu0 %v2210_v37  ;;  %2338 = vmatprep.subr.mxu1 %v2212_v40  ;;  %v2490_v37 = vld [vmem:[#allocation9 + $0x1e0] sm:$0xff]  ;;  %v2492_v40 = vld [vmem:[#allocation9 + $0x1f0] sm:$0xff] }
 0x66c   :  { %2268 = vmatpush1.msra.mxu0 %v2209_v41  ;;  %2339 = vmatpush1.msra.mxu1 %v2211_v43  ;;  %v2487_v41 = vld [vmem:[#allocation9 + $0x1c8] sm:$0xff]  ;;  %v2489_v43 = vld [vmem:[#allocation9 + $0x1d8] sm:$0xff] }
 0x66d   :  { %2269 = vmatprep.subr.mxu0 %v2206_v44  ;;  %2340 = vmatprep.subr.mxu1 %v2208_v45  ;;  %v2486_v44 = vld [vmem:[#allocation9 + $0x1c0] sm:$0xff]  ;;  %v2488_v45 = vld [vmem:[#allocation9 + $0x1d0] sm:$0xff] }
 0x66e   :  { %2270 = vmatpush1.msra.mxu0 %v2205_v48  ;;  %2341 = vmatpush1.msra.mxu1 %v2207_v50  ;;  %v2485_v48 = vld [vmem:[#allocation9 + $0x1b8] sm:$0xff]  ;;  %v2482_v50 = vld [vmem:[#allocation9 + $0x1a0] sm:$0xff] }
 0x66f   :  { %2271 = vmatprep.subr.mxu0 %v2202_v51  ;;  %2342 = vmatprep.subr.mxu1 %v2204_v52  ;;  %v2484_v51 = vld [vmem:[#allocation9 + $0x1b0] sm:$0xff]  ;;  %v2479_v52 = vld [vmem:[#allocation9 + $0x188] sm:$0xff] }
 0x670   :  { %2272 = vmatpush1.msra.mxu0 %v2201_v54  ;;  %2343 = vmatpush1.msra.mxu1 %v2203_v55  ;;  %v2481_v54 = vld [vmem:[#allocation9 + $0x198] sm:$0xff]  ;;  %v2478_v55 = vld [vmem:[#allocation9 + $0x180] sm:$0xff] }
 0x671   :  { %2273 = vmatprep.subr.mxu0 %v2198_v56  ;;  %2344 = vmatprep.subr.mxu1 %v2200_v57  ;;  %v2480_v56 = vld [vmem:[#allocation9 + $0x190] sm:$0xff]  ;;  %v2475_v57 = vld [vmem:[#allocation9 + $0x168] sm:$0xff] }
 0x672   :  { %2274 = vmatpush1.msra.mxu0 %v2197_v58  ;;  %2345 = vmatpush1.msra.mxu1 %v2199_v59  ;;  %v2477_v58 = vld [vmem:[#allocation9 + $0x178] sm:$0xff]  ;;  %v2474_v59 = vld [vmem:[#allocation9 + $0x160] sm:$0xff] }
 0x673   :  { %2275 = vmatprep.subr.mxu0 %v2194_v60  ;;  %2346 = vmatprep.subr.mxu1 %v2196_v61  ;;  %v2476_v60 = vld [vmem:[#allocation9 + $0x170] sm:$0xff]  ;;  %v2471_v61 = vld [vmem:[#allocation9 + $0x148] sm:$0xff] }
 0x674   :  { %2276 = vmatpush1.msra.mxu0 %v2193_v63  ;;  %2347 = vmatpush1.msra.mxu1 %v2195_v0  ;;  %v2473_v63 = vld [vmem:[#allocation9 + $0x158] sm:$0xff]  ;;  %v2470_v0 = vld [vmem:[#allocation9 + $0x140] sm:$0xff] }
 0x675   :  { %2277 = vmatprep.subr.mxu0 %v2190_v1  ;;  %2348 = vmatprep.subr.mxu1 %v2192_v2  ;;  %v2472_v1 = vld [vmem:[#allocation9 + $0x150] sm:$0xff]  ;;  %v2467_v2 = vld [vmem:[#allocation9 + $0x128] sm:$0xff] }
 0x676   :  { %2278 = vmatpush1.msra.mxu0 %v2189_v5  ;;  %2349 = vmatpush1.msra.mxu1 %v2191_v25  ;;  %v2469_v5 = vld [vmem:[#allocation9 + $0x138] sm:$0xff]  ;;  %v2466_v25 = vld [vmem:[#allocation9 + $0x120] sm:$0xff] }
 0x677   :  { %2279 = vmatprep.subr.mxu0 %v2186_v49  ;;  %2350 = vmatprep.subr.mxu1 %v2188_v4  ;;  %v2468_v49 = vld [vmem:[#allocation9 + $0x130] sm:$0xff]  ;;  %v2463_v4 = vld [vmem:[#allocation9 + $0x108] sm:$0xff] }
 0x678   :  { %2280 = vmatpush1.msra.mxu0 %v2185_v17  ;;  %2351 = vmatpush1.msra.mxu1 %v2187_v22  ;;  %v2465_v17 = vld [vmem:[#allocation9 + $0x118] sm:$0xff]  ;;  %v2462_v22 = vld [vmem:[#allocation9 + $0x100] sm:$0xff] }
 0x679   :  { %2516 = vmatprep.subr.mxu0 %v2491_v38  ;;  %2629 = vmatprep.subr.mxu1 %v2493_v8  ;;  %v2464_v38 = vld [vmem:[#allocation9 + $0x110] sm:$0xff]  ;;  %v2459_v8 = vld [vmem:[#allocation9 + $0xe8] sm:$0xff] }
 0x718   :  { %v2076_v12 = vpop.f32.mrf.mxu0  ;;  %v2147_v11 = vpop.f32.mrf.mxu1 }
 0x719   :  { %v2152_v14 = vadd.f32 %v2076_v12, %v7514_v19  ;;  %v2154_v39 = vadd.f32 %v2147_v11, %v7517_v13  ;;  %v2461_v12 = vld [vmem:[#allocation9 + $0xf8] sm:$0xff]  ;;  %v2458_v19 = vld [vmem:[#allocation9 + $0xe0] sm:$0xff]  ;;  %v2451_v11 = vld [vmem:[#allocation9 + $0xa8] sm:$0xff] }
 0x71a   :  { %v2078_v62 = vpop.f32.mrf.mxu0  ;;  %v2149_v30 = vpop.f32.mrf.mxu1  ;;  %v2449_v13 = vld [vmem:[#allocation9 + $0x98] sm:$0xff] }
 0x71b   :  { %v4422_v9 = vmul.f32 -1.442695, %v2152_v14  ;;  %v2153_v46 = vadd.f32 %v2078_v62, %v7515_v7  ;;  %v2155_v10 = vadd.f32 %v2149_v30, %v7516_v23  ;;  %v2460_v14 = vld [vmem:[#allocation9 + $0xf0] sm:$0xff]  ;;  %v2455_v62 = vld [vmem:[#allocation9 + $0xc8] sm:$0xff]  ;;  %v2454_v7 = vld [vmem:[#allocation9 + $0xc0] sm:$0xff] }
 0x71c   :  { %v2450_v30 = vld [vmem:[#allocation9 + $0xa0] sm:$0xff]  ;;  %v2452_v23 = vld [vmem:[#allocation9 + $0xb0] sm:$0xff] }
 0x71d   :  { %4616 = vpow2.f32 %v4422_v9  ;;  %v4423_v6 = vmul.f32 -1.442695, %v2153_v46  ;;  %v4424_v31 = vmul.f32 -1.442695, %v2155_v10  ;;  %v2457_v9 = vld [vmem:[#allocation9 + $0xd8] sm:$0xff]  ;;  %v2456_v46 = vld [vmem:[#allocation9 + $0xd0] sm:$0xff] }
 0x71e   :  { %v2447_v10 = vld [vmem:[#allocation9 + $0x88] sm:$0xff] }
 0x71f   :  { %4618 = vpow2.f32 %v4423_v6  ;;  %v2453_v6 = vld [vmem:[#allocation9 + $0xb8] sm:$0xff] }
 0x720   :  { %4620 = vtanh.f32 %v2154_v39  ;;  %v2446_v39 = vld [vmem:[#allocation9 + $0x80] sm:$0xff] }
 0x721   :  { %4622 = vpow2.f32 %v4424_v31  ;;  %v2448_v31 = vld [vmem:[#allocation9 + $0x90] sm:$0xff] }
 0x72a   :  { %v4617_v42 = vpop.eup %4616 }
 0x72b   :  { %v2159_v53 = vadd.f32 1.0, %v4617_v42  ;;  %v2443_v42 = vld [vmem:[#allocation9 + $0x68] sm:$0xff] }
 0x72c   :  { %v4619_v29 = vpop.eup %4618 }
 0x72d   :  { %4624 = vrcp.f32 %v2159_v53  ;;  %v2165_v15 = vadd.f32 1.0, %v4619_v29  ;;  %v4621_v18 = vpop.eup %4620  ;;  %v2445_v53 = vld [vmem:[#allocation9 + $0x78] sm:$0xff]  ;;  %v2442_v29 = vld [vmem:[#allocation9 + $0x60] sm:$0xff] }
 0x72e   :  { %v4623_v20 = vpop.eup %4622 }
 0x72f   :  { %4626 = vrcp.f32 %v2165_v15  ;;  %v2172_v27 = vadd.f32 1.0, %v4623_v20  ;;  %v2444_v15 = vld [vmem:[#allocation9 + $0x70] sm:$0xff]  ;;  %v2441_v20 = vld [vmem:[#allocation9 + $0x58] sm:$0xff] }
 0x731   :  { %4628 = vrcp.f32 %v2172_v27  ;;  %v2437_v27 = vld [vmem:[#allocation9 + $0x38] sm:$0xff] }
 0x73a   :  { %v4625_v21 = vpop.eup %4624 }
 0x73b   :  { %v2176_v24 = vmul.f32 %v4625_v21, %v4621_v18  ;;  %v2439_v18 = vld [vmem:[#allocation9 + $0x48] sm:$0xff]  ;;  %v2438_v21 = vld [vmem:[#allocation9 + $0x40] sm:$0xff] }
 0x73c   :  { %v4627_v26 = vpop.eup %4626 }
 0x73d   :  { %v2175_v32 = vmul.f32 %v4627_v26, %v6103_v3  ;;  %v2483_v3 = vld [vmem:[#allocation9 + $0x1a8] sm:$0xff] }
 0x73e   :  { %v4629_v34 = vpop.eup %4628  ;;  %v2435_v26 = vld [vmem:[#allocation9 + $0x28] sm:$0xff] }
 0x73f   :  { %v6117_v33 = vadd.f32 %v2176_v24, %v2175_v32  ;;  %v2440_v24 = vld [vmem:[#allocation9 + $0x50] sm:$0xff]  ;;  %v2434_v32 = vld [vmem:[#allocation9 + $0x20] sm:$0xff] }
 0x741   :  { %4630 = vtanh.f32 %v6117_v33 }
 0x74e   :  { %v4631_v35 = vpop.eup %4630 }
 0x74f   :  { %v6120_v36 = vmul.f32 %v4631_v35, %v4629_v34  ;;  %v2436_v34 = vld [vmem:[#allocation9 + $0x30] sm:$0xff]  ;;  %v2431_v35 = vld [vmem:[#allocation9 + $0x8] sm:$0xff] }
 0x751   :  { %2314 = vmatmul.mubr.f32.vlgmr.msra.gmra.mxu0 %v6120_v36  ;;  %2385 = vmatmul.mubr.f32.vlgmr.msra.gmra.mxu1 %v6120_v36 }
 0x752   :  { %2517 = vmatpush1.msra.mxu0 %v2490_v37  ;;  %2630 = vmatpush1.msra.mxu1 %v2492_v40  ;;  %v2433_v37 = vld [vmem:[#allocation9 + $0x18] sm:$0xff]  ;;  %v2430_v40 = vld [vmem:[#allocation9] sm:$0xff] }
 0x753   :  { %2518 = vmatprep.subr.mxu0 %v2487_v41  ;;  %2631 = vmatprep.subr.mxu1 %v2489_v43  ;;  %v2432_v41 = vld [vmem:[#allocation9 + $0x10] sm:$0xff]  ;;  %v7518_v43 = vld [vmem:[#allocation67_spill] sm:$0xff] }
 0x754   :  { %2519 = vmatpush1.msra.mxu0 %v2486_v44  ;;  %2632 = vmatpush1.msra.mxu1 %v2488_v45  ;;  %v7519_v44 = vld [vmem:[#allocation18_spill] sm:$0xff]  ;;  %v7520_v45 = vld [vmem:[#allocation39_spill] sm:$0xff] }
 0x755   :  { %2520 = vmatprep.subr.mxu0 %v2483_v3  ;;  %2633 = vmatprep.subr.mxu1 %v2485_v48  ;;  %v7521_v3 = vld [vmem:[#allocation41_spill] sm:$0xff] }
 0x756   :  { %2521 = vmatpush1.msra.mxu0 %v2482_v50  ;;  %2634 = vmatpush1.msra.mxu1 %v2484_v51  ;;  %v6156_v48 = vld [vmem:[#allocation11 + $0x1f8] sm:$0xff]  ;;  %v6159_v50 = vld [vmem:[#allocation11 + $0x1e0] sm:$0xff]  ;;  %v6165_v51 = vld [vmem:[#allocation11 + $0x1c8] sm:$0xff] }
 0x757   :  { %2522 = vmatprep.subr.mxu0 %v2479_v52  ;;  %2635 = vmatprep.subr.mxu1 %v2481_v54  ;;  %7523 = vst [vmem:[#allocation40_spill] sm:$0xff] %v6156_v48  ;;  %v6171_v52 = vld [vmem:[#allocation11 + $0x1c0] sm:$0xff]  ;;  %v6174_v54 = vld [vmem:[#allocation11 + $0x1d0] sm:$0xff] }
 0x758   :  { %2523 = vmatpush1.msra.mxu0 %v2478_v55  ;;  %2636 = vmatpush1.msra.mxu1 %v2480_v56  ;;  %v6177_v55 = vld [vmem:[#allocation11 + $0x1a8] sm:$0xff]  ;;  %v6180_v56 = vld [vmem:[#allocation11 + $0x1b8] sm:$0xff] }
 0x759   :  { %2524 = vmatprep.subr.mxu0 %v2475_v57  ;;  %2637 = vmatprep.subr.mxu1 %v2477_v58  ;;  %v6183_v57 = vld [vmem:[#allocation11 + $0x1a0] sm:$0xff]  ;;  %v6186_v58 = vld [vmem:[#allocation11 + $0x1b0] sm:$0xff] }
 0x75a   :  { %2525 = vmatpush1.msra.mxu0 %v2474_v59  ;;  %2638 = vmatpush1.msra.mxu1 %v2476_v60  ;;  %v6189_v59 = vld [vmem:[#allocation11 + $0x188] sm:$0xff]  ;;  %v6192_v60 = vld [vmem:[#allocation11 + $0x198] sm:$0xff] }
 0x75b   :  { %2526 = vmatprep.subr.mxu0 %v2471_v61  ;;  %2639 = vmatprep.subr.mxu1 %v2473_v63  ;;  %v6195_v61 = vld [vmem:[#allocation11 + $0x180] sm:$0xff]  ;;  %v6198_v63 = vld [vmem:[#allocation11 + $0x190] sm:$0xff] }
 0x75c   :  { %2527 = vmatpush1.msra.mxu0 %v2470_v0  ;;  %2640 = vmatpush1.msra.mxu1 %v2472_v1  ;;  %v6201_v0 = vld [vmem:[#allocation11 + $0x168] sm:$0xff]  ;;  %v6204_v1 = vld [vmem:[#allocation11 + $0x178] sm:$0xff] }
 0x75d   :  { %2528 = vmatprep.subr.mxu0 %v2467_v2  ;;  %2641 = vmatprep.subr.mxu1 %v2469_v5  ;;  %v6207_v2 = vld [vmem:[#allocation11 + $0x160] sm:$0xff]  ;;  %v6210_v5 = vld [vmem:[#allocation11 + $0x170] sm:$0xff] }
 0x75e   :  { %2529 = vmatpush1.msra.mxu0 %v2466_v25  ;;  %2642 = vmatpush1.msra.mxu1 %v2468_v49  ;;  %v6213_v25 = vld [vmem:[#allocation11 + $0x148] sm:$0xff]  ;;  %v6216_v49 = vld [vmem:[#allocation11 + $0x158] sm:$0xff] }
 0x75f   :  { %2530 = vmatprep.subr.mxu0 %v2463_v4  ;;  %2643 = vmatprep.subr.mxu1 %v2465_v17  ;;  %v6219_v4 = vld [vmem:[#allocation11 + $0x140] sm:$0xff]  ;;  %v6222_v17 = vld [vmem:[#allocation11 + $0x150] sm:$0xff] }
 0x760   :  { %2531 = vmatpush1.msra.mxu0 %v2462_v22  ;;  %2644 = vmatpush1.msra.mxu1 %v2464_v38  ;;  %v6225_v22 = vld [vmem:[#allocation11 + $0x128] sm:$0xff]  ;;  %v6228_v38 = vld [vmem:[#allocation11 + $0x138] sm:$0xff] }
 0x761   :  { %2532 = vmatprep.subr.mxu0 %v2459_v8  ;;  %2645 = vmatprep.subr.mxu1 %v2461_v12  ;;  %v6231_v8 = vld [vmem:[#allocation11 + $0x120] sm:$0xff]  ;;  %v6234_v12 = vld [vmem:[#allocation11 + $0x130] sm:$0xff] }
 0x762   :  { %2533 = vmatpush1.msra.mxu0 %v2458_v19  ;;  %2646 = vmatpush1.msra.mxu1 %v2460_v14  ;;  %v6237_v19 = vld [vmem:[#allocation11 + $0x108] sm:$0xff]  ;;  %v6240_v14 = vld [vmem:[#allocation11 + $0x118] sm:$0xff] }
 0x763   :  { %2534 = vmatprep.subr.mxu0 %v2455_v62  ;;  %2647 = vmatprep.subr.mxu1 %v2457_v9  ;;  %v6243_v62 = vld [vmem:[#allocation11 + $0x100] sm:$0xff]  ;;  %v6246_v9 = vld [vmem:[#allocation11 + $0x110] sm:$0xff] }
 0x764   :  { %2535 = vmatpush1.msra.mxu0 %v2454_v7  ;;  %2648 = vmatpush1.msra.mxu1 %v2456_v46  ;;  %v6249_v7 = vld [vmem:[#allocation11 + $0xe8] sm:$0xff]  ;;  %v6252_v46 = vld [vmem:[#allocation11 + $0xf8] sm:$0xff] }
 0x765   :  { %2536 = vmatprep.subr.mxu0 %v2451_v11  ;;  %2649 = vmatprep.subr.mxu1 %v2453_v6  ;;  %v6255_v11 = vld [vmem:[#allocation11 + $0xe0] sm:$0xff]  ;;  %v6258_v6 = vld [vmem:[#allocation11 + $0xf0] sm:$0xff] }
 0x766   :  { %2537 = vmatpush1.msra.mxu0 %v2450_v30  ;;  %2650 = vmatpush1.msra.mxu1 %v2452_v23  ;;  %v6261_v30 = vld [vmem:[#allocation11 + $0xc8] sm:$0xff]  ;;  %v6264_v23 = vld [vmem:[#allocation11 + $0xd8] sm:$0xff] }
 0x767   :  { %2538 = vmatprep.subr.mxu0 %v2447_v10  ;;  %2651 = vmatprep.subr.mxu1 %v2449_v13  ;;  %v6267_v10 = vld [vmem:[#allocation11 + $0xc0] sm:$0xff]  ;;  %v6270_v13 = vld [vmem:[#allocation11 + $0xd0] sm:$0xff] }
 0x768   :  { %2539 = vmatpush1.msra.mxu0 %v2446_v39  ;;  %2652 = vmatpush1.msra.mxu1 %v2448_v31  ;;  %v6273_v39 = vld [vmem:[#allocation11 + $0xa8] sm:$0xff]  ;;  %v6276_v31 = vld [vmem:[#allocation11 + $0xb8] sm:$0xff] }
 0x769   :  { %2540 = vmatprep.subr.mxu0 %v2443_v42  ;;  %2653 = vmatprep.subr.mxu1 %v2445_v53  ;;  %v6279_v42 = vld [vmem:[#allocation11 + $0xa0] sm:$0xff]  ;;  %v6282_v53 = vld [vmem:[#allocation11 + $0xb0] sm:$0xff] }
 0x76a   :  { %2541 = vmatpush1.msra.mxu0 %v2442_v29  ;;  %2654 = vmatpush1.msra.mxu1 %v2444_v15  ;;  %7524 = vst [vmem:[#allocation43_spill] sm:$0xff] %v6282_v53  ;;  %v6285_v29 = vld [vmem:[#allocation11 + $0x88] sm:$0xff]  ;;  %v6288_v15 = vld [vmem:[#allocation11 + $0x98] sm:$0xff] }
 0x76b   :  { %2542 = vmatprep.subr.mxu0 %v2439_v18  ;;  %2655 = vmatprep.subr.mxu1 %v2441_v20  ;;  %7525 = vst [vmem:[#allocation45_spill] sm:$0xff] %v6285_v29  ;;  %7526 = vst [vmem:[#allocation46_spill] sm:$0xff] %v6288_v15  ;;  %v6291_v18 = vld [vmem:[#allocation11 + $0x80] sm:$0xff]  ;;  %v6294_v20 = vld [vmem:[#allocation11 + $0x90] sm:$0xff] }
 0x76c   :  { %2543 = vmatpush1.msra.mxu0 %v2438_v21  ;;  %2656 = vmatpush1.msra.mxu1 %v2440_v24  ;;  %7527 = vst [vmem:[#allocation44_spill] sm:$0xff] %v6291_v18  ;;  %7528 = vst [vmem:[#allocation47_spill] sm:$0xff] %v6294_v20  ;;  %v6297_v21 = vld [vmem:[#allocation11 + $0x68] sm:$0xff]  ;;  %v6300_v24 = vld [vmem:[#allocation11 + $0x78] sm:$0xff] }
 0x76d   :  { %2544 = vmatprep.subr.mxu0 %v2435_v26  ;;  %2657 = vmatprep.subr.mxu1 %v2437_v27  ;;  %7529 = vst [vmem:[#allocation49_spill] sm:$0xff] %v6297_v21  ;;  %7530 = vst [vmem:[#allocation50_spill] sm:$0xff] %v6300_v24  ;;  %v6303_v26 = vld [vmem:[#allocation11 + $0x60] sm:$0xff]  ;;  %v6306_v27 = vld [vmem:[#allocation11 + $0x70] sm:$0xff] }
 0x76e   :  { %2545 = vmatpush1.msra.mxu0 %v2434_v32  ;;  %2658 = vmatpush1.msra.mxu1 %v2436_v34  ;;  %7531 = vst [vmem:[#allocation48_spill] sm:$0xff] %v6303_v26  ;;  %7532 = vst [vmem:[#allocation20_spill] sm:$0xff] %v6306_v27  ;;  %v6309_v32 = vld [vmem:[#allocation11 + $0x48] sm:$0xff]  ;;  %v6312_v34 = vld [vmem:[#allocation11 + $0x58] sm:$0xff] }
 0x76f   :  { %2546 = vmatprep.subr.mxu0 %v2431_v35  ;;  %2659 = vmatprep.subr.mxu1 %v2433_v37  ;;  %7533 = vst [vmem:[#allocation19_spill] sm:$0xff] %v6309_v32  ;;  %7534 = vst [vmem:[#allocation51_spill] sm:$0xff] %v6312_v34  ;;  %v6315_v35 = vld [vmem:[#allocation11 + $0x40] sm:$0xff]  ;;  %v6318_v37 = vld [vmem:[#allocation11 + $0x50] sm:$0xff] }
 0x770   :  { %2547 = vmatpush1.msra.mxu0 %v2430_v40  ;;  %2580 = vmatprep.mubr.f32.mxu0 %v7508_v28  ;;  %7535 = vst [vmem:[#allocation53_spill] sm:$0xff] %v6315_v35  ;;  %7536 = vst [vmem:[#allocation54_spill] sm:$0xff] %v6318_v37  ;;  %v6321_v40 = vld [vmem:[#allocation11 + $0x28] sm:$0xff] }
 0x771   :  { %2660 = vmatpush1.msra.mxu1 %v2432_v41  ;;  %2693 = vmatprep.mubr.f32.mxu1 %v7508_v28  ;;  %7537 = vst [vmem:[#allocation52_spill] sm:$0xff] %v6321_v40  ;;  %v6324_v41 = vld [vmem:[#allocation11 + $0x38] sm:$0xff] }
 0x772   :  { %2581 = vmatmul.mubr.f32.vlgmr.msra.gmra.mxu0 %v7518_v43  ;;  %2694 = vmatmul.mubr.f32.vlgmr.msra.gmra.mxu1 %v7518_v43  ;;  %7538 = vst [vmem:[#allocation22_spill] sm:$0xff] %v6324_v41  ;;  %v6327_v43 = vld [vmem:[#allocation11 + $0x20] sm:$0xff] }
 0x773   :  { %2586 = vmatprep.mubr.f32.mxu0 %v7508_v28  ;;  %2699 = vmatprep.mubr.f32.mxu1 %v7508_v28  ;;  %7539 = vst [vmem:[#allocation21_spill] sm:$0xff] %v6327_v43 }
 0x774   :  { %2917 = vmatprep.subr.mxu1 %v6156_v48 }
 0x776   :  { %2587 = vmatmul.mubr.f32.gmra.mxu0 %v7519_v44  ;;  %2700 = vmatmul.mubr.f32.gmra.mxu1 %v7519_v44  ;;  %v6330_v44 = vld [vmem:[#allocation11 + $0x30] sm:$0xff] }
 0x777   :  { %2592 = vmatprep.mubr.f32.mxu0 %v7508_v28  ;;  %2705 = vmatprep.mubr.f32.mxu1 %v7508_v28  ;;  %7540 = vst [vmem:[#allocation24_spill] sm:$0xff] %v6330_v44 }
 0x77a   :  { %2593 = vmatmul.mubr.f32.gmra.mxu0 %v7520_v45  ;;  %2706 = vmatmul.mubr.f32.gmra.mxu1 %v7520_v45  ;;  %v6333_v45 = vld [vmem:[#allocation11 + $0x8] sm:$0xff] }
 0x77b   :  { %2598 = vmatprep.mubr.f32.mxu0 %v7508_v28  ;;  %2711 = vmatprep.mubr.f32.mxu1 %v7508_v28  ;;  %7541 = vst [vmem:[#allocation23_spill] sm:$0xff] %v6333_v45 }
 0x77e   :  { %2599 = vmatmul.mubr.f32.gmra.mxu0 %v7521_v3  ;;  %2712 = vmatmul.mubr.f32.gmra.mxu1 %v7521_v3  ;;  %v6336_v3 = vld [vmem:[#allocation11] sm:$0xff] }
 0x77f   :  { %2604 = vmatprep.mubr.f32.mxu0 %v7508_v28  ;;  %2717 = vmatprep.mubr.f32.mxu1 %v7508_v28  ;;  %7542 = vst [vmem:[#allocation26_spill] sm:$0xff] %v6336_v3 }
 0x782   :  { %2605 = vmatmul.mubr.f32.gmra.mxu0 %v6030_v47  ;;  %2718 = vmatmul.mubr.f32.gmra.mxu1 %v6030_v47  ;;  %v6154_v47 = vld [vmem:[#allocation11 + $0x1e8] sm:$0xff] }
 0x783   :  { %2610 = vmatprep.mubr.f32.mxu0 %v7508_v28  ;;  %2723 = vmatprep.mubr.f32.mxu1 %v7508_v28  ;;  %7522 = vst [vmem:[#allocation42_spill] sm:$0xff] %v6154_v47 }
 0x784   :  { %2846 = vmatprep.subr.mxu0 %v6154_v47 }
 0x785   :  { %2847 = vmatpush1.msra.mxu0 %v6159_v50 }
 0x786   :  { %2611 = vmatmul.mubr.f32.gmra.mxu0 %v6106_v16  ;;  %2724 = vmatmul.mubr.f32.gmra.mxu1 %v6106_v16  ;;  %v6162_v16 = vld [vmem:[#allocation11 + $0x1f0] sm:$0xff] }
 0x787   :  { %2616 = vmatprep.mubr.f32.mxu0 %v7508_v28  ;;  %2729 = vmatprep.mubr.f32.mxu1 %v7508_v28 }
 0x788   :  { %2918 = vmatpush1.msra.mxu1 %v6162_v16  ;;  %2848 = vmatprep.subr.mxu0 %v6165_v51 }
 0x789   :  { %2849 = vmatpush1.msra.mxu0 %v6171_v52 }
 0x78a   :  { %2617 = vmatmul.mubr.f32.gmra.mxu0 %v6120_v36  ;;  %2730 = vmatmul.mubr.f32.gmra.mxu1 %v6120_v36  ;;  %v6168_v36 = vld [vmem:[#allocation11 + $0x1d8] sm:$0xff] }
 0x78b   :  { %2622 = vmatprep.mubr.f32.mxu0 %v7508_v28  ;;  %2735 = vmatprep.mubr.f32.mxu1 %v7508_v28 }
 0x78c   :  { %2919 = vmatprep.subr.mxu1 %v6168_v36  ;;  %2850 = vmatprep.subr.mxu0 %v6177_v55 }
 0x78d   :  { %2920 = vmatpush1.msra.mxu1 %v6174_v54  ;;  %2851 = vmatpush1.msra.mxu0 %v6183_v57 }
 0x78e   :  { %2921 = vmatprep.subr.mxu1 %v6180_v56  ;;  %2852 = vmatprep.subr.mxu0 %v6189_v59 }
 0x78f   :  { %2922 = vmatpush1.msra.mxu1 %v6186_v58  ;;  %2853 = vmatpush1.msra.mxu0 %v6195_v61 }
 0x790   :  { %2923 = vmatprep.subr.mxu1 %v6192_v60  ;;  %2854 = vmatprep.subr.mxu0 %v6201_v0 }
 0x791   :  { %2924 = vmatpush1.msra.mxu1 %v6198_v63  ;;  %2855 = vmatpush1.msra.mxu0 %v6207_v2 }
 0x792   :  { %2925 = vmatprep.subr.mxu1 %v6204_v1  ;;  %2856 = vmatprep.subr.mxu0 %v6213_v25 }
 0x793   :  { %2926 = vmatpush1.msra.mxu1 %v6210_v5  ;;  %2857 = vmatpush1.msra.mxu0 %v6219_v4 }
 0x794   :  { %2927 = vmatprep.subr.mxu1 %v6216_v49  ;;  %2858 = vmatprep.subr.mxu0 %v6225_v22 }
 0x795   :  { %2928 = vmatpush1.msra.mxu1 %v6222_v17  ;;  %2859 = vmatpush1.msra.mxu0 %v6231_v8 }
 0x796   :  { %2929 = vmatprep.subr.mxu1 %v6228_v38  ;;  %2860 = vmatprep.subr.mxu0 %v6237_v19 }
 0x797   :  { %2930 = vmatpush1.msra.mxu1 %v6234_v12  ;;  %2861 = vmatpush1.msra.mxu0 %v6243_v62 }
 0x798   :  { %2931 = vmatprep.subr.mxu1 %v6240_v14  ;;  %2862 = vmatprep.subr.mxu0 %v6249_v7 }
 0x799   :  { %2932 = vmatpush1.msra.mxu1 %v6246_v9  ;;  %2863 = vmatpush1.msra.mxu0 %v6255_v11 }
 0x79a   :  { %2933 = vmatprep.subr.mxu1 %v6252_v46  ;;  %2864 = vmatprep.subr.mxu0 %v6261_v30 }
 0x79b   :  { %2934 = vmatpush1.msra.mxu1 %v6258_v6  ;;  %2865 = vmatpush1.msra.mxu0 %v6267_v10 }
 0x79c   :  { %2935 = vmatprep.subr.mxu1 %v6264_v23  ;;  %2866 = vmatprep.subr.mxu0 %v6273_v39 }
 0x79d   :  { %2936 = vmatpush1.msra.mxu1 %v6270_v13  ;;  %2867 = vmatpush1.msra.mxu0 %v6279_v42 }
 0x79e   :  { %2937 = vmatprep.subr.mxu1 %v6276_v31  ;;  %2868 = vmatprep.subr.mxu0 %v6285_v29 }
 0x79f   :  { %2938 = vmatpush1.msra.mxu1 %v6282_v53  ;;  %2869 = vmatpush1.msra.mxu0 %v6291_v18 }
 0x7a0   :  { %2939 = vmatprep.subr.mxu1 %v6288_v15  ;;  %2870 = vmatprep.subr.mxu0 %v6297_v21  ;;  %v7548_v21 = vld [vmem:[#allocation64_spill] sm:$0xff] }
 0x7a1   :  { %2940 = vmatpush1.msra.mxu1 %v6294_v20  ;;  %2871 = vmatpush1.msra.mxu0 %v6303_v26 }
 0x7a2   :  { %2941 = vmatprep.subr.mxu1 %v6300_v24  ;;  %2872 = vmatprep.subr.mxu0 %v6309_v32  ;;  %v7546_v32 = vld [vmem:[#allocation65_spill] sm:$0xff]  ;;  %v7547_v24 = vld [vmem:[#allocation66_spill] sm:$0xff] }
 0x7a3   :  { %2942 = vmatpush1.msra.mxu1 %v6306_v27  ;;  %2873 = vmatpush1.msra.mxu0 %v6315_v35  ;;  %v6338_v35 = vld [vmem:[#allocation11 + $0x18] sm:$0xff] }
 0x7a4   :  { %2943 = vmatprep.subr.mxu1 %v6312_v34  ;;  %2874 = vmatprep.subr.mxu0 %v6321_v40  ;;  %7543 = vst [vmem:[#allocation25_spill] sm:$0xff] %v6338_v35  ;;  %v6342_v40 = vld [vmem:[#allocation11 + $0x10] sm:$0xff] }
 0x7a5   :  { %2944 = vmatpush1.msra.mxu1 %v6318_v37  ;;  %2875 = vmatpush1.msra.mxu0 %v6327_v43  ;;  %7544 = vst [vmem:[#allocation28_spill] sm:$0xff] %v6342_v40 }
 0x7a6   :  { %2945 = vmatprep.subr.mxu1 %v6324_v41  ;;  %2876 = vmatprep.subr.mxu0 %v6333_v45 }
 0x7a7   :  { %2946 = vmatpush1.msra.mxu1 %v6330_v44  ;;  %2877 = vmatpush1.msra.mxu0 %v6336_v3  ;;  %v7545_v44 = vld [vmem:[#allocation63_spill] sm:$0xff] }
 0x7a8   :  { %2947 = vmatprep.subr.mxu1 %v6338_v35  ;;  %3020 = vmatprep.subr.mxu0 %v6154_v47 }
 0x7a9   :  { %2948 = vmatpush1.msra.mxu1 %v6342_v40 }
 0x7aa   :  { %3091 = vmatprep.subr.mxu1 %v6156_v48 }
 0x811   :  { %v2315_v43 = vpop.f32.mrf.mxu0  ;;  %v2386_v45 = vpop.f32.mrf.mxu1 }
 0x812   :  { %v2391_v41 = vadd.f32 %v2315_v43, %v7545_v44  ;;  %v2393_v40 = vadd.f32 %v2386_v45, %v7548_v21  ;;  %v7550_v21 = vld [vmem:[#allocation47_spill] sm:$0xff]  ;;  %v7553_v45 = vld [vmem:[#allocation48_spill] sm:$0xff] }
 0x813   :  { %v2317_v37 = vpop.f32.mrf.mxu0  ;;  %v2388_v26 = vpop.f32.mrf.mxu1 }
 0x814   :  { %v4425_v34 = vmul.f32 -1.442695, %v2391_v41  ;;  %v2392_v27 = vadd.f32 %v2317_v37, %v7546_v32  ;;  %v2394_v3 = vadd.f32 %v2388_v26, %v7547_v24  ;;  %v7551_v26 = vld [vmem:[#allocation49_spill] sm:$0xff] }
 0x816   :  { %4632 = vpow2.f32 %v4425_v34  ;;  %v4426_v35 = vmul.f32 -1.442695, %v2392_v27  ;;  %v4427_v20 = vmul.f32 -1.442695, %v2394_v3  ;;  %v7554_v3 = vld [vmem:[#allocation20_spill] sm:$0xff] }
 0x818   :  { %4634 = vpow2.f32 %v4426_v35 }
 0x819   :  { %4636 = vtanh.f32 %v2393_v40  ;;  %v7552_v40 = vld [vmem:[#allocation50_spill] sm:$0xff] }
 0x81a   :  { %4638 = vpow2.f32 %v4427_v20 }
 0x823   :  { %v4633_v47 = vpop.eup %4632 }
 0x824   :  { %v2398_v18 = vadd.f32 1.0, %v4633_v47 }
 0x825   :  { %v4635_v48 = vpop.eup %4634 }
 0x826   :  { %4640 = vrcp.f32 %v2398_v18  ;;  %v2404_v43 = vadd.f32 1.0, %v4635_v48  ;;  %v4637_v41 = vpop.eup %4636  ;;  %v7549_v48 = vld [vmem:[#allocation44_spill] sm:$0xff] }
 0x827   :  { %v4639_v32 = vpop.eup %4638 }
 0x828   :  { %4642 = vrcp.f32 %v2404_v43  ;;  %v2411_v35 = vadd.f32 1.0, %v4639_v32  ;;  %v7555_v43 = vld [vmem:[#allocation19_spill] sm:$0xff]  ;;  %v7557_v32 = vld [vmem:[#allocation53_spill] sm:$0xff] }
 0x82a   :  { %4644 = vrcp.f32 %v2411_v35  ;;  %v7561_v35 = vld [vmem:[#allocation21_spill] sm:$0xff] }
 0x833   :  { %v4641_v34 = vpop.eup %4640 }
 0x834   :  { %v2415_v37 = vmul.f32 %v4641_v34, %v4637_v41  ;;  %v7556_v41 = vld [vmem:[#allocation51_spill] sm:$0xff]  ;;  %v7558_v34 = vld [vmem:[#allocation54_spill] sm:$0xff] }
 0x835   :  { %v4643_v27 = vpop.eup %4642 }
 0x836   :  { %v2414_v44 = vmul.f32 %v4643_v27, %v6117_v33  ;;  %v4428_v33 = vld [vmem:[%s7155_s8 + $0x8] sm:$0xff]  ;;  %v7560_v27 = vld [vmem:[#allocation22_spill] sm:$0xff] }
 0x837   :  { %v4645_v47 = vpop.eup %4644 }
 0x838   :  { %v2416_v24 = vadd.f32 %v2415_v37, %v2414_v44  ;;  %v7559_v37 = vld [vmem:[#allocation52_spill] sm:$0xff] }
 0x839   :  { %v7562_v44 = vld [vmem:[#allocation24_spill] sm:$0xff] }
 0x83a   :  { %4646 = vtanh.f32 %v2416_v24  ;;  %2421 = vst [vmem:[%s7161_s14] sm:$0xff] %v2416_v24  ;;  %v7563_v24 = vld [vmem:[#allocation23_spill] sm:$0xff] }
 0x847   :  { %v4647_v20 = vpop.eup %4646 }
 0x848   :  { %v2418_v18 = vmul.f32 %v4647_v20, %v4645_v47  ;;  %v7564_v47 = vld [vmem:[#allocation25_spill] sm:$0xff]  ;;  %v7565_v20 = vld [vmem:[#allocation26_spill] sm:$0xff] }
 0x84a   :  { %2420 = vst [vmem:[%s7160_s13] sm:$0xff] %v2418_v18  ;;  %2623 = vmatmul.mubr.f32.gmra.mxu0 %v2418_v18  ;;  %2736 = vmatmul.mubr.f32.gmra.mxu1 %v2418_v18  ;;  %v7566_v18 = vld [vmem:[#allocation28_spill] sm:$0xff] }
 0x84b   :  { %2910 = vmatprep.mubr.f32.mxu0 %v7508_v28  ;;  %2981 = vmatprep.mubr.f32.mxu1 %v7508_v28 }
 0x84e   :  { %2911 = vmatmul.mubr.f32.vlgmr.msra.gmra.mxu0 %v4428_v33  ;;  %2982 = vmatmul.mubr.f32.vlgmr.msra.gmra.mxu1 %v4428_v33  ;;  %v7567_v33 = vld [vmem:[#allocation42_spill] sm:$0xff] }
 0x84f   :  { %3021 = vmatpush1.msra.mxu0 %v6159_v50  ;;  %3092 = vmatpush1.msra.mxu1 %v6162_v16 }
 0x850   :  { %3022 = vmatprep.subr.mxu0 %v6165_v51  ;;  %3093 = vmatprep.subr.mxu1 %v6168_v36 }
 0x851   :  { %3023 = vmatpush1.msra.mxu0 %v6171_v52  ;;  %3094 = vmatpush1.msra.mxu1 %v6174_v54 }
 0x852   :  { %3024 = vmatprep.subr.mxu0 %v6177_v55  ;;  %3095 = vmatprep.subr.mxu1 %v6180_v56 }
 0x853   :  { %3025 = vmatpush1.msra.mxu0 %v6183_v57  ;;  %3096 = vmatpush1.msra.mxu1 %v6186_v58 }
 0x854   :  { %3026 = vmatprep.subr.mxu0 %v6189_v59  ;;  %3097 = vmatprep.subr.mxu1 %v6192_v60 }
 0x855   :  { %3027 = vmatpush1.msra.mxu0 %v6195_v61  ;;  %3098 = vmatpush1.msra.mxu1 %v6198_v63 }
 0x856   :  { %3028 = vmatprep.subr.mxu0 %v6201_v0  ;;  %3099 = vmatprep.subr.mxu1 %v6204_v1 }
 0x857   :  { %3029 = vmatpush1.msra.mxu0 %v6207_v2  ;;  %3100 = vmatpush1.msra.mxu1 %v6210_v5 }
 0x858   :  { %3030 = vmatprep.subr.mxu0 %v6213_v25  ;;  %3101 = vmatprep.subr.mxu1 %v6216_v49 }
 0x859   :  { %3031 = vmatpush1.msra.mxu0 %v6219_v4  ;;  %3102 = vmatpush1.msra.mxu1 %v6222_v17 }
 0x85a   :  { %3032 = vmatprep.subr.mxu0 %v6225_v22  ;;  %3103 = vmatprep.subr.mxu1 %v6228_v38 }
 0x85b   :  { %3033 = vmatpush1.msra.mxu0 %v6231_v8  ;;  %3104 = vmatpush1.msra.mxu1 %v6234_v12 }
 0x85c   :  { %3034 = vmatprep.subr.mxu0 %v6237_v19  ;;  %3105 = vmatprep.subr.mxu1 %v6240_v14 }
 0x85d   :  { %3035 = vmatpush1.msra.mxu0 %v6243_v62  ;;  %3106 = vmatpush1.msra.mxu1 %v6246_v9 }
 0x85e   :  { %3036 = vmatprep.subr.mxu0 %v6249_v7  ;;  %3107 = vmatprep.subr.mxu1 %v6252_v46 }
 0x85f   :  { %3037 = vmatpush1.msra.mxu0 %v6255_v11  ;;  %3108 = vmatpush1.msra.mxu1 %v6258_v6 }
 0x860   :  { %3038 = vmatprep.subr.mxu0 %v6261_v30  ;;  %3109 = vmatprep.subr.mxu1 %v6264_v23 }
 0x861   :  { %3039 = vmatpush1.msra.mxu0 %v6267_v10  ;;  %3110 = vmatpush1.msra.mxu1 %v6270_v13 }
 0x862   :  { %3040 = vmatprep.subr.mxu0 %v6273_v39  ;;  %3111 = vmatprep.subr.mxu1 %v6276_v31 }
 0x863   :  { %3041 = vmatpush1.msra.mxu0 %v6279_v42  ;;  %3112 = vmatpush1.msra.mxu1 %v6282_v53 }
 0x864   :  { %3042 = vmatprep.subr.mxu0 %v6285_v29  ;;  %3113 = vmatprep.subr.mxu1 %v6288_v15 }
 0x865   :  { %3043 = vmatpush1.msra.mxu0 %v7549_v48  ;;  %3114 = vmatpush1.msra.mxu1 %v7550_v21 }
 0x866   :  { %3044 = vmatprep.subr.mxu0 %v7551_v26  ;;  %3115 = vmatprep.subr.mxu1 %v7552_v40 }
 0x867   :  { %3045 = vmatpush1.msra.mxu0 %v7553_v45  ;;  %3116 = vmatpush1.msra.mxu1 %v7554_v3 }
 0x868   :  { %3046 = vmatprep.subr.mxu0 %v7555_v43  ;;  %3117 = vmatprep.subr.mxu1 %v7556_v41 }
 0x869   :  { %3047 = vmatpush1.msra.mxu0 %v7557_v32  ;;  %3118 = vmatpush1.msra.mxu1 %v7558_v34 }
 0x86a   :  { %3048 = vmatprep.subr.mxu0 %v7559_v37  ;;  %3119 = vmatprep.subr.mxu1 %v7560_v27  ;;  %v7568_v37 = vld [vmem:[#allocation40_spill] sm:$0xff]  ;;  %v2582_v27 = vpop.f32.mrf.mxu0 }
 0x86b   :  { %3049 = vmatpush1.msra.mxu0 %v7561_v35  ;;  %3120 = vmatpush1.msra.mxu1 %v7562_v44  ;;  %v2695_v35 = vpop.f32.mrf.mxu1 }
 0x86c   :  { %3050 = vmatprep.subr.mxu0 %v7563_v24  ;;  %3121 = vmatprep.subr.mxu1 %v7564_v47  ;;  %v2584_v34 = vpop.f32.mrf.mxu0 }
 0x86d   :  { %3051 = vmatpush1.msra.mxu0 %v7565_v20  ;;  %3084 = vmatprep.mubr.f32.mxu0 %v7508_v28  ;;  %v2697_v44 = vpop.f32.mrf.mxu1 }
 0x86e   :  { %3122 = vmatpush1.msra.mxu1 %v7566_v18  ;;  %3155 = vmatprep.mubr.f32.mxu1 %v7508_v28  ;;  %v6430_v32 = vpop.f32.mrf.mxu0 }
 0x86f   :  { %3194 = vmatprep.subr.mxu0 %v7567_v33  ;;  %3265 = vmatprep.subr.mxu1 %v7568_v37  ;;  %7569 = vst [vmem:[#allocation27_spill] sm:$0xff] %v6430_v32  ;;  %v6432_v24 = vpop.f32.mrf.mxu1 }
 0x870   :  { %7570 = vst [vmem:[#allocation30_spill] sm:$0xff] %v6432_v24  ;;  %v6434_v47 = vpop.f32.mrf.mxu0 }
 0x871   :  { %7571 = vst [vmem:[#allocation29_spill] sm:$0xff] %v6434_v47  ;;  %v6436_v20 = vpop.f32.mrf.mxu1 }
 0x872   :  { %7572 = vst [vmem:[#allocation32_spill] sm:$0xff] %v6436_v20  ;;  %v6438_v41 = vpop.f32.mrf.mxu0 }
 0x873   :  { %7573 = vst [vmem:[#allocation31_spill] sm:$0xff] %v6438_v41  ;;  %v6440_v18 = vpop.f32.mrf.mxu1 }
 0x874   :  { %7574 = vst [vmem:[#allocation34_spill] sm:$0xff] %v6440_v18  ;;  %v6442_v28 = vpop.f32.mrf.mxu0 }
 0x875   :  { %7575 = vst [vmem:[#allocation33_spill] sm:$0xff] %v6442_v28  ;;  %v6444_v33 = vpop.f32.mrf.mxu1 }
 0x876   :  { %7576 = vst [vmem:[#allocation36_spill] sm:$0xff] %v6444_v33  ;;  %v6446_v37 = vpop.f32.mrf.mxu0 }
 0x877   :  { %7577 = vst [vmem:[#allocation35_spill] sm:$0xff] %v6446_v37  ;;  %v6448_v43 = vpop.f32.mrf.mxu1 }
 0x878   :  { %7578 = vst [vmem:[#allocation37_spill] sm:$0xff] %v6448_v43  ;;  %v6450_v3 = vpop.f32.mrf.mxu0 }
 0x879   :  { %7579 = vst [vmem:[#allocation55_spill] sm:$0xff] %v6450_v3  ;;  %v6452_v32 = vpop.f32.mrf.mxu1 }
 0x87a   :  { %7580 = vst [vmem:[#allocation57_spill] sm:$0xff] %v6452_v32  ;;  %v6454_v24 = vpop.f32.mrf.mxu0 }
 0x87b   :  { %7581 = vst [vmem:[#allocation58_spill] sm:$0xff] %v6454_v24  ;;  %v6456_v47 = vpop.f32.mrf.mxu1 }
 0x87c   :  { %7582 = vst [vmem:[#allocation56_spill] sm:$0xff] %v6456_v47  ;;  %v6458_v20 = vpop.f32.mrf.mxu0  ;;  %v2494_v47 = vld [vmem:[%s7154_s7] sm:$0xf] }
 0x87d   :  { %7583 = vst [vmem:[#allocation59_spill] sm:$0xff] %v6458_v20  ;;  %v6460_v41 = vpop.f32.mrf.mxu1  ;;  %v7592_v20 = vld [vmem:[#allocation38_spill] sm:$0xff] }
 0x87e   :  { %7584 = vst [vmem:[#allocation61_spill] sm:$0xff] %v6460_v41  ;;  %v6462_v18 = vpop.f32.mrf.mxu0  ;;  %v7593_v41 = vsub.s32 0, %v7592_v20 }
 0x87f   :  { %7585 = vst [vmem:[#allocation62_spill] sm:$0xff] %v6462_v18  ;;  %v6464_v28 = vpop.f32.mrf.mxu1 }
 0x880   :  { %7586 = vst [vmem:[#allocation60_spill] sm:$0xff] %v6464_v28  ;;  %v6466_v33 = vpop.f32.mrf.mxu0  ;;  %v6481_v32 = vrot.slane %v2494_v47, %v7593_v41 }
 0x881   :  { %7587 = vst [vmem:[#allocation67_spill] sm:$0xff] %v6466_v33  ;;  %v6468_v37 = vpop.f32.mrf.mxu1 }
 0x882   :  { %7588 = vst [vmem:[#allocation18_spill] sm:$0xff] %v6468_v37  ;;  %v6470_v43 = vpop.f32.mrf.mxu0  ;;  %7594 = vst [vmem:[#allocation65_spill] sm:$0xff] %v6481_v32  ;;  %v7597_v37 = vsub.s32 1, %v7592_v20  ;;  %v2583_v45 = vadd.f32 %v2582_v27, %v6481_v32 }
 0x883   :  { %7589 = vst [vmem:[#allocation39_spill] sm:$0xff] %v6470_v43  ;;  %v6472_v3 = vpop.f32.mrf.mxu1 }
 0x884   :  { %7590 = vst [vmem:[#allocation41_spill] sm:$0xff] %v6472_v3  ;;  %v6477_v24 = vpop.f32.mrf.mxu0  ;;  %v6489_v33 = vrot.slane %v2494_v47, %v7597_v37  ;;  %v7601_v37 = vsub.s32 3, %v7592_v20 }
 0x885   :  { %7591 = vst [vmem:[#allocation63_spill] sm:$0xff] %v6477_v24  ;;  %v6483_v18 = vpop.f32.mrf.mxu1 }
 0x886   :  { %7595 = vst [vmem:[#allocation66_spill] sm:$0xff] %v6483_v18  ;;  %v2585_v24 = vadd.f32 %v2584_v34, %v6489_v33  ;;  %v6501_v29 = vrot.slane %v2494_v47, %v7601_v37 }
 0x888   :  { %v2698_v27 = vadd.f32 %v2697_v44, %v6501_v29 }
 0x90a   :  { %v6485_v28 = vpop.f32.mrf.mxu0  ;;  %v6491_v43 = vpop.f32.mrf.mxu1 }
 0x90b   :  { %7596 = vst [vmem:[#allocation64_spill] sm:$0xff] %v6485_v28  ;;  %7598 = vst [vmem:[#allocation38_spill] sm:$0xff] %v6491_v43 }
 0x90c   :  { %v6493_v3 = vpop.f32.mrf.mxu0  ;;  %v6497_v26 = vpop.f32.mrf.mxu1 }
 0x90d   :  { %7599 = vst [vmem:[#allocation68_spill] sm:$0xff] %v6493_v3  ;;  %7600 = vst [vmem:[#allocation69_spill] sm:$0xff] %v6497_v26  ;;  %v7602_v3 = vsub.s32 2, %v7592_v20 }
 0x90e   :  { %v2912_v40 = vpop.f32.mrf.mxu0  ;;  %v2983_v28 = vpop.f32.mrf.mxu1 }
 0x90f   :  { %v2988_v41 = vadd.f32 %v2912_v40, %v2583_v45  ;;  %v6506_v34 = vrot.slane %v2494_v47, %v7602_v3  ;;  %v4429_v3 = vld [vmem:[%s7156_s9 + $0x8] sm:$0xff] }
 0x910   :  { %v2914_v21 = vpop.f32.mrf.mxu0  ;;  %v2985_v43 = vpop.f32.mrf.mxu1 }
 0x911   :  { %v4430_v18 = vmul.f32 -1.442695, %v2988_v41  ;;  %v2989_v48 = vadd.f32 %v2914_v21, %v2585_v24  ;;  %v2991_v26 = vadd.f32 %v2985_v43, %v2698_v27  ;;  %v2696_v40 = vadd.f32 %v2695_v35, %v6506_v34 }
 0x913   :  { %4648 = vpow2.f32 %v4430_v18  ;;  %v4431_v15 = vmul.f32 -1.442695, %v2989_v48  ;;  %v4432_v45 = vmul.f32 -1.442695, %v2991_v26  ;;  %v2990_v24 = vadd.f32 %v2983_v28, %v2696_v40 }
 0x915   :  { %4650 = vpow2.f32 %v4431_v15 }
 0x916   :  { %4652 = vpow2.f32 %v4432_v45  ;;  %v7603_v45 = vld [vmem:[#allocation45_spill] sm:$0xff] }
 0x920   :  { %v4649_v21 = vpop.eup %4648 }
 0x921   :  { %v2995_v18 = vadd.f32 1.0, %v4649_v21  ;;  %v7604_v21 = vld [vmem:[#allocation46_spill] sm:$0xff] }
 0x922   :  { %v4651_v48 = vpop.eup %4650 }
 0x923   :  { %4654 = vrcp.f32 %v2995_v18  ;;  %v3001_v41 = vadd.f32 1.0, %v4651_v48  ;;  %v4653_v15 = vpop.eup %4652  ;;  %v7606_v18 = vld [vmem:[#allocation47_spill] sm:$0xff]  ;;  %v7607_v48 = vld [vmem:[#allocation49_spill] sm:$0xff] }
 0x924   :  { %4656 = vtanh.f32 %v2990_v24  ;;  %v3008_v47 = vadd.f32 1.0, %v4653_v15  ;;  %v7605_v24 = vld [vmem:[#allocation44_spill] sm:$0xff] }
 0x925   :  { %4658 = vrcp.f32 %v3001_v41  ;;  %v7608_v41 = vld [vmem:[#allocation50_spill] sm:$0xff]  ;;  %v7609_v15 = vld [vmem:[#allocation48_spill] sm:$0xff] }
 0x926   :  { %4660 = vrcp.f32 %v3008_v47  ;;  %v7614_v47 = vld [vmem:[#allocation54_spill] sm:$0xff] }
 0x930   :  { %v4655_v37 = vpop.eup %4654 }
 0x931   :  { %v4657_v44 = vpop.eup %4656 }
 0x932   :  { %v4659_v43 = vpop.eup %4658  ;;  %v3012_v35 = vmul.f32 %v4657_v44, %v4655_v37  ;;  %v7610_v37 = vld [vmem:[#allocation20_spill] sm:$0xff]  ;;  %v7612_v44 = vld [vmem:[#allocation51_spill] sm:$0xff] }
 0x933   :  { %v3011_v26 = vmul.f32 %v4659_v43, %v4429_v3  ;;  %v4661_v28 = vpop.eup %4660  ;;  %v7611_v3 = vld [vmem:[#allocation19_spill] sm:$0xff]  ;;  %v7613_v43 = vld [vmem:[#allocation53_spill] sm:$0xff] }
 0x935   :  { %v6512_v20 = vadd.f32 %v3012_v35, %v3011_v26  ;;  %v7615_v35 = vld [vmem:[#allocation52_spill] sm:$0xff]  ;;  %v7616_v26 = vld [vmem:[#allocation22_spill] sm:$0xff] }
 0x937   :  { %4662 = vtanh.f32 %v6512_v20 }
 0x944   :  { %v4663_v27 = vpop.eup %4662 }
 0x945   :  { %v3015_v40 = vmul.f32 %v4663_v27, %v4661_v28  ;;  %v7617_v28 = vld [vmem:[#allocation21_spill] sm:$0xff]  ;;  %v7618_v27 = vld [vmem:[#allocation24_spill] sm:$0xff] }
 0x947   :  { %3085 = vmatmul.mubr.f32.vlgmr.msra.gmra.mxu0 %v3015_v40  ;;  %3156 = vmatmul.mubr.f32.vlgmr.msra.gmra.mxu1 %v3015_v40  ;;  %v7619_v40 = vld [vmem:[#allocation23_spill] sm:$0xff] }
 0x948   :  { %3195 = vmatpush1.msra.mxu0 %v6159_v50  ;;  %3266 = vmatpush1.msra.mxu1 %v6162_v16 }
 0x949   :  { %3196 = vmatprep.subr.mxu0 %v6165_v51  ;;  %3267 = vmatprep.subr.mxu1 %v6168_v36 }
 0x94a   :  { %3197 = vmatpush1.msra.mxu0 %v6171_v52  ;;  %3268 = vmatpush1.msra.mxu1 %v6174_v54 }
 0x94b   :  { %3198 = vmatprep.subr.mxu0 %v6177_v55  ;;  %3269 = vmatprep.subr.mxu1 %v6180_v56 }
 0x94c   :  { %3199 = vmatpush1.msra.mxu0 %v6183_v57  ;;  %3270 = vmatpush1.msra.mxu1 %v6186_v58 }
 0x94d   :  { %3200 = vmatprep.subr.mxu0 %v6189_v59  ;;  %3271 = vmatprep.subr.mxu1 %v6192_v60 }
 0x94e   :  { %3201 = vmatpush1.msra.mxu0 %v6195_v61  ;;  %3272 = vmatpush1.msra.mxu1 %v6198_v63 }
 0x94f   :  { %3202 = vmatprep.subr.mxu0 %v6201_v0  ;;  %3273 = vmatprep.subr.mxu1 %v6204_v1 }
 0x950   :  { %3203 = vmatpush1.msra.mxu0 %v6207_v2  ;;  %3274 = vmatpush1.msra.mxu1 %v6210_v5 }
 0x951   :  { %3204 = vmatprep.subr.mxu0 %v6213_v25  ;;  %3275 = vmatprep.subr.mxu1 %v6216_v49 }
 0x952   :  { %3205 = vmatpush1.msra.mxu0 %v6219_v4  ;;  %3276 = vmatpush1.msra.mxu1 %v6222_v17 }
 0x953   :  { %3206 = vmatprep.subr.mxu0 %v6225_v22  ;;  %3277 = vmatprep.subr.mxu1 %v6228_v38 }
 0x954   :  { %3207 = vmatpush1.msra.mxu0 %v6231_v8  ;;  %3278 = vmatpush1.msra.mxu1 %v6234_v12 }
 0x955   :  { %3208 = vmatprep.subr.mxu0 %v6237_v19  ;;  %3279 = vmatprep.subr.mxu1 %v6240_v14 }
 0x956   :  { %3209 = vmatpush1.msra.mxu0 %v6243_v62  ;;  %3280 = vmatpush1.msra.mxu1 %v6246_v9 }
 0x957   :  { %3210 = vmatprep.subr.mxu0 %v6249_v7  ;;  %3281 = vmatprep.subr.mxu1 %v6252_v46 }
 0x958   :  { %3211 = vmatpush1.msra.mxu0 %v6255_v11  ;;  %3282 = vmatpush1.msra.mxu1 %v6258_v6 }
 0x959   :  { %3212 = vmatprep.subr.mxu0 %v6261_v30  ;;  %3283 = vmatprep.subr.mxu1 %v6264_v23 }
 0x95a   :  { %3213 = vmatpush1.msra.mxu0 %v6267_v10  ;;  %3284 = vmatpush1.msra.mxu1 %v6270_v13 }
 0x95b   :  { %3214 = vmatprep.subr.mxu0 %v6273_v39  ;;  %3285 = vmatprep.subr.mxu1 %v6276_v31 }
 0x95c   :  { %3215 = vmatpush1.msra.mxu0 %v6279_v42  ;;  %3286 = vmatpush1.msra.mxu1 %v6282_v53 }
 0x95d   :  { %3216 = vmatprep.subr.mxu0 %v7603_v45  ;;  %3287 = vmatprep.subr.mxu1 %v7604_v21  ;;  %v7629_v21 = vld [vmem:[#allocation30_spill] sm:$0xff] }
 0x95e   :  { %3217 = vmatpush1.msra.mxu0 %v7605_v24  ;;  %3288 = vmatpush1.msra.mxu1 %v7606_v18 }
 0x95f   :  { %3218 = vmatprep.subr.mxu0 %v7607_v48  ;;  %3289 = vmatprep.subr.mxu1 %v7608_v41 }
 0x960   :  { %3219 = vmatpush1.msra.mxu0 %v7609_v15  ;;  %3290 = vmatpush1.msra.mxu1 %v7610_v37  ;;  %v7620_v15 = vld [vmem:[#allocation25_spill] sm:$0xff]  ;;  %v7621_v37 = vld [vmem:[#allocation26_spill] sm:$0xff] }
 0x961   :  { %3220 = vmatprep.subr.mxu0 %v7611_v3  ;;  %3291 = vmatprep.subr.mxu1 %v7612_v44  ;;  %v7622_v3 = vmov 0.0   ;;  %v7623_v44 = vld [vmem:[#allocation28_spill] sm:$0xff] }
 0x962   :  { %3221 = vmatpush1.msra.mxu0 %v7613_v43  ;;  %3292 = vmatpush1.msra.mxu1 %v7614_v47  ;;  %v7624_v47 = vld [vmem:[#allocation42_spill] sm:$0xff] }
 0x963   :  { %3222 = vmatprep.subr.mxu0 %v7615_v35  ;;  %3293 = vmatprep.subr.mxu1 %v7616_v26  ;;  %v7625_v35 = vld [vmem:[#allocation40_spill] sm:$0xff] }
 0x964   :  { %3223 = vmatpush1.msra.mxu0 %v7617_v28  ;;  %3294 = vmatpush1.msra.mxu1 %v7618_v27  ;;  %v7626_v28 = vld [vmem:[#allocation27_spill] sm:$0xff] }
 0x965   :  { %3224 = vmatprep.subr.mxu0 %v7619_v40  ;;  %3295 = vmatprep.subr.mxu1 %v7620_v15  ;;  %v2589_v26 = vadd.f32 %v7626_v28, %v6481_v32  ;;  %v7627_v40 = vld [vmem:[#allocation29_spill] sm:$0xff]  ;;  %v2702_v28 = vadd.f32 %v7629_v21, %v6506_v34 }
 0x966   :  { %3225 = vmatpush1.msra.mxu0 %v7621_v37  ;;  %3258 = vmatprep.mubr.f32.mxu0 %v7622_v3  ;;  %v2591_v43 = vadd.f32 %v7627_v40, %v6489_v33 }
 0x967   :  { %3296 = vmatpush1.msra.mxu1 %v7623_v44  ;;  %3329 = vmatprep.mubr.f32.mxu1 %v7622_v3 }
 0x968   :  { %3368 = vmatprep.subr.mxu0 %v7624_v47  ;;  %3439 = vmatprep.subr.mxu1 %v7625_v35  ;;  %v7628_v47 = vld [vmem:[#allocation32_spill] sm:$0xff] }
 0x969   :  { %v2704_v24 = vadd.f32 %v7628_v47, %v6501_v29 }
 0xa07   :  { %v3086_v27 = vpop.f32.mrf.mxu0  ;;  %v3157_v18 = vpop.f32.mrf.mxu1 }
 0xa08   :  { %v3162_v15 = vadd.f32 %v3086_v27, %v2589_v26  ;;  %v3164_v32 = vadd.f32 %v3157_v18, %v2702_v28  ;;  %v7647_v18 = vld [vmem:[#allocation23_spill] sm:$0xff]  ;;  %v7649_v27 = vld [vmem:[#allocation26_spill] sm:$0xff]  ;;  %v7650_v28 = vmov 0.0  }
 0xa09   :  { %v3088_v41 = vpop.f32.mrf.mxu0  ;;  %v3159_v3 = vpop.f32.mrf.mxu1 }
 0xa0a   :  { %v4433_v37 = vmul.f32 -1.442695, %v3162_v15  ;;  %v3163_v48 = vadd.f32 %v3088_v41, %v2591_v43  ;;  %v3165_v35 = vadd.f32 %v3159_v3, %v2704_v24 }
 0xa0c   :  { %4664 = vpow2.f32 %v4433_v37  ;;  %v4434_v44 = vmul.f32 -1.442695, %v3163_v48  ;;  %v4435_v45 = vmul.f32 -1.442695, %v3165_v35  ;;  %v7648_v35 = vld [vmem:[#allocation25_spill] sm:$0xff] }
 0xa0e   :  { %4666 = vpow2.f32 %v4434_v44 }
 0xa0f   :  { %4668 = vtanh.f32 %v3164_v32 }
 0xa10   :  { %4670 = vpow2.f32 %v4435_v45  ;;  %v7646_v45 = vld [vmem:[#allocation24_spill] sm:$0xff] }
 0xa19   :  { %v4665_v53 = vpop.eup %4664 }
 0xa1a   :  { %v3169_v40 = vadd.f32 1.0, %v4665_v53 }
 0xa1b   :  { %v4667_v26 = vpop.eup %4666 }
 0xa1c   :  { %4672 = vrcp.f32 %v3169_v40  ;;  %v3175_v41 = vadd.f32 1.0, %v4667_v26  ;;  %v4669_v48 = vpop.eup %4668  ;;  %v7651_v40 = vld [vmem:[#allocation28_spill] sm:$0xff]  ;;  %v7652_v26 = vld [vmem:[#allocation42_spill] sm:$0xff] }
 0xa1d   :  { %v4671_v15 = vpop.eup %4670 }
 0xa1e   :  { %4674 = vrcp.f32 %v3175_v41  ;;  %v3182_v47 = vadd.f32 1.0, %v4671_v15  ;;  %v7653_v41 = vld [vmem:[#allocation40_spill] sm:$0xff]  ;;  %v7655_v15 = vld [vmem:[#allocation31_spill] sm:$0xff] }
 0xa20   :  { %4676 = vrcp.f32 %v3182_v47 }
 0xa29   :  { %v4673_v37 = vpop.eup %4672 }
 0xa2a   :  { %v3186_v44 = vmul.f32 %v4673_v37, %v4669_v48  ;;  %v7654_v48 = vld [vmem:[#allocation65_spill] sm:$0xff] }
 0xa2b   :  { %v4675_v43 = vpop.eup %4674  ;;  %v2595_v37 = vadd.f32 %v7655_v15, %v7654_v48 }
 0xa2c   :  { %v3185_v24 = vmul.f32 %v4675_v43, %v6512_v20  ;;  %v7645_v20 = vld [vmem:[#allocation21_spill] sm:$0xff] }
 0xa2d   :  { %v4677_v53 = vpop.eup %4676  ;;  %v7656_v43 = vld [vmem:[#allocation33_spill] sm:$0xff] }
 0xa2e   :  { %v6590_v3 = vadd.f32 %v3186_v44, %v3185_v24  ;;  %v2597_v47 = vadd.f32 %v7656_v43, %v6489_v33 }
 0xa30   :  { %4678 = vtanh.f32 %v6590_v3 }
 0xa3d   :  { %v4679_v32 = vpop.eup %4678 }
 0xa3e   :  { %v3189_v21 = vmul.f32 %v4679_v32, %v4677_v53 }
 0xa40   :  { %3259 = vmatmul.mubr.f32.vlgmr.msra.gmra.mxu0 %v3189_v21  ;;  %3330 = vmatmul.mubr.f32.vlgmr.msra.gmra.mxu1 %v3189_v21 }
 0xa41   :  { %3369 = vmatpush1.msra.mxu0 %v6159_v50  ;;  %3440 = vmatpush1.msra.mxu1 %v6162_v16  ;;  %v7630_v50 = vld [vmem:[#allocation43_spill] sm:$0xff]  ;;  %v7631_v16 = vld [vmem:[#allocation45_spill] sm:$0xff] }
 0xa42   :  { %3370 = vmatprep.subr.mxu0 %v6165_v51  ;;  %3441 = vmatprep.subr.mxu1 %v6168_v36  ;;  %v7632_v51 = vld [vmem:[#allocation46_spill] sm:$0xff]  ;;  %v7633_v36 = vld [vmem:[#allocation44_spill] sm:$0xff] }
 0xa43   :  { %3371 = vmatpush1.msra.mxu0 %v6171_v52  ;;  %3442 = vmatpush1.msra.mxu1 %v6174_v54  ;;  %v7634_v52 = vld [vmem:[#allocation47_spill] sm:$0xff]  ;;  %v7635_v54 = vld [vmem:[#allocation49_spill] sm:$0xff] }
 0xa44   :  { %3372 = vmatprep.subr.mxu0 %v6177_v55  ;;  %3443 = vmatprep.subr.mxu1 %v6180_v56  ;;  %v7636_v55 = vld [vmem:[#allocation50_spill] sm:$0xff]  ;;  %v7637_v56 = vld [vmem:[#allocation48_spill] sm:$0xff] }
 0xa45   :  { %3373 = vmatpush1.msra.mxu0 %v6183_v57  ;;  %3444 = vmatpush1.msra.mxu1 %v6186_v58  ;;  %v7638_v57 = vld [vmem:[#allocation20_spill] sm:$0xff]  ;;  %v7639_v58 = vld [vmem:[#allocation19_spill] sm:$0xff] }
 0xa46   :  { %3374 = vmatprep.subr.mxu0 %v6189_v59  ;;  %3445 = vmatprep.subr.mxu1 %v6192_v60  ;;  %v7640_v59 = vld [vmem:[#allocation51_spill] sm:$0xff]  ;;  %v7641_v60 = vld [vmem:[#allocation53_spill] sm:$0xff] }
 0xa47   :  { %3375 = vmatpush1.msra.mxu0 %v6195_v61  ;;  %3446 = vmatpush1.msra.mxu1 %v6198_v63  ;;  %v7642_v61 = vld [vmem:[#allocation54_spill] sm:$0xff]  ;;  %v7643_v63 = vld [vmem:[#allocation52_spill] sm:$0xff] }
 0xa48   :  { %3376 = vmatprep.subr.mxu0 %v6201_v0  ;;  %3447 = vmatprep.subr.mxu1 %v6204_v1  ;;  %v7644_v0 = vld [vmem:[#allocation22_spill] sm:$0xff] }
 0xa49   :  { %3377 = vmatpush1.msra.mxu0 %v6207_v2  ;;  %3448 = vmatpush1.msra.mxu1 %v6210_v5 }
 0xa4a   :  { %3378 = vmatprep.subr.mxu0 %v6213_v25  ;;  %3449 = vmatprep.subr.mxu1 %v6216_v49 }
 0xa4b   :  { %3379 = vmatpush1.msra.mxu0 %v6219_v4  ;;  %3450 = vmatpush1.msra.mxu1 %v6222_v17 }
 0xa4c   :  { %3380 = vmatprep.subr.mxu0 %v6225_v22  ;;  %3451 = vmatprep.subr.mxu1 %v6228_v38 }
 0xa4d   :  { %3381 = vmatpush1.msra.mxu0 %v6231_v8  ;;  %3452 = vmatpush1.msra.mxu1 %v6234_v12 }
 0xa4e   :  { %3382 = vmatprep.subr.mxu0 %v6237_v19  ;;  %3453 = vmatprep.subr.mxu1 %v6240_v14 }
 0xa4f   :  { %3383 = vmatpush1.msra.mxu0 %v6243_v62  ;;  %3454 = vmatpush1.msra.mxu1 %v6246_v9 }
 0xa50   :  { %3384 = vmatprep.subr.mxu0 %v6249_v7  ;;  %3455 = vmatprep.subr.mxu1 %v6252_v46 }
 0xa51   :  { %3385 = vmatpush1.msra.mxu0 %v6255_v11  ;;  %3456 = vmatpush1.msra.mxu1 %v6258_v6 }
 0xa52   :  { %3386 = vmatprep.subr.mxu0 %v6261_v30  ;;  %3457 = vmatprep.subr.mxu1 %v6264_v23 }
 0xa53   :  { %3387 = vmatpush1.msra.mxu0 %v6267_v10  ;;  %3458 = vmatpush1.msra.mxu1 %v6270_v13 }
 0xa54   :  { %3388 = vmatprep.subr.mxu0 %v6273_v39  ;;  %3459 = vmatprep.subr.mxu1 %v6276_v31 }
 0xa55   :  { %3389 = vmatpush1.msra.mxu0 %v6279_v42  ;;  %3460 = vmatpush1.msra.mxu1 %v7630_v50 }
 0xa56   :  { %3390 = vmatprep.subr.mxu0 %v7631_v16  ;;  %3461 = vmatprep.subr.mxu1 %v7632_v51 }
 0xa57   :  { %3391 = vmatpush1.msra.mxu0 %v7633_v36  ;;  %3462 = vmatpush1.msra.mxu1 %v7634_v52 }
 0xa58   :  { %3392 = vmatprep.subr.mxu0 %v7635_v54  ;;  %3463 = vmatprep.subr.mxu1 %v7636_v55 }
 0xa59   :  { %3393 = vmatpush1.msra.mxu0 %v7637_v56  ;;  %3464 = vmatpush1.msra.mxu1 %v7638_v57 }
 0xa5a   :  { %3394 = vmatprep.subr.mxu0 %v7639_v58  ;;  %3465 = vmatprep.subr.mxu1 %v7640_v59 }
 0xa5b   :  { %3395 = vmatpush1.msra.mxu0 %v7641_v60  ;;  %3466 = vmatpush1.msra.mxu1 %v7642_v61 }
 0xa5c   :  { %3396 = vmatprep.subr.mxu0 %v7643_v63  ;;  %3467 = vmatprep.subr.mxu1 %v7644_v0 }
 0xa5d   :  { %3397 = vmatpush1.msra.mxu0 %v7645_v20  ;;  %3468 = vmatpush1.msra.mxu1 %v7646_v45 }
 0xa5e   :  { %3398 = vmatprep.subr.mxu0 %v7647_v18  ;;  %3469 = vmatprep.subr.mxu1 %v7648_v35  ;;  %v7658_v18 = vld [vmem:[#allocation34_spill] sm:$0xff] }
 0xa5f   :  { %3399 = vmatpush1.msra.mxu0 %v7649_v27  ;;  %3432 = vmatprep.mubr.f32.mxu0 %v7650_v28  ;;  %v2708_v15 = vadd.f32 %v7658_v18, %v6506_v34 }
 0xa60   :  { %3470 = vmatpush1.msra.mxu1 %v7651_v40  ;;  %3503 = vmatprep.mubr.f32.mxu1 %v7650_v28 }
 0xa61   :  { %3542 = vmatprep.subr.mxu0 %v7652_v26  ;;  %3613 = vmatprep.subr.mxu1 %v7653_v41  ;;  %v7657_v26 = vld [vmem:[#allocation36_spill] sm:$0xff] }
 0xa62   :  { %v2710_v35 = vadd.f32 %v7657_v26, %v6501_v29  ;;  %v6677_v26 = vld [vmem:[#allocation11 + $0x1c8] sm:$0xff] }
 0xb00   :  { %v3260_v44 = vpop.f32.mrf.mxu0  ;;  %v3331_v27 = vpop.f32.mrf.mxu1 }
 0xb01   :  { %v3336_v24 = vadd.f32 %v3260_v44, %v2595_v37  ;;  %v3338_v48 = vadd.f32 %v3331_v27, %v2708_v15  ;;  %v6686_v15 = vld [vmem:[#allocation11 + $0x1d0] sm:$0xff] }
 0xb02   :  { %v3262_v53 = vpop.f32.mrf.mxu0  ;;  %v3333_v28 = vpop.f32.mrf.mxu1 }
 0xb03   :  { %v4436_v32 = vmul.f32 -1.442695, %v3336_v24  ;;  %v3337_v21 = vadd.f32 %v3262_v53, %v2597_v47  ;;  %v3339_v41 = vadd.f32 %v3333_v28, %v2710_v35 }
 0xb05   :  { %4680 = vpow2.f32 %v4436_v32  ;;  %v4437_v40 = vmul.f32 -1.442695, %v3337_v21  ;;  %v4438_v45 = vmul.f32 -1.442695, %v3339_v41  ;;  %v6683_v41 = vld [vmem:[#allocation11 + $0x1c0] sm:$0xff] }
 0xb07   :  { %4682 = vpow2.f32 %v4437_v40 }
 0xb08   :  { %4684 = vtanh.f32 %v3338_v48  ;;  %v6674_v48 = vld [vmem:[#allocation11 + $0x1f0] sm:$0xff] }
 0xb09   :  { %4686 = vpow2.f32 %v4438_v45  ;;  %v6671_v45 = vld [vmem:[#allocation11 + $0x1e0] sm:$0xff] }
 0xb12   :  { %v4681_v20 = vpop.eup %4680 }
 0xb13   :  { %v3343_v43 = vadd.f32 1.0, %v4681_v20 }
 0xb14   :  { %v4683_v37 = vpop.eup %4682 }
 0xb15   :  { %4688 = vrcp.f32 %v3343_v43  ;;  %v3349_v44 = vadd.f32 1.0, %v4683_v37  ;;  %v4685_v47 = vpop.eup %4684  ;;  %v6689_v43 = vld [vmem:[#allocation11 + $0x1a8] sm:$0xff]  ;;  %v6692_v37 = vld [vmem:[#allocation11 + $0x1b8] sm:$0xff] }
 0xb16   :  { %v4687_v40 = vpop.eup %4686 }
 0xb17   :  { %4690 = vrcp.f32 %v3349_v44  ;;  %v3356_v21 = vadd.f32 1.0, %v4687_v40  ;;  %v6695_v44 = vld [vmem:[#allocation11 + $0x1a0] sm:$0xff]  ;;  %v6701_v40 = vld [vmem:[#allocation11 + $0x188] sm:$0xff] }
 0xb19   :  { %4692 = vrcp.f32 %v3356_v21  ;;  %v6713_v21 = vld [vmem:[#allocation11 + $0x168] sm:$0xff] }
 0xb22   :  { %v4689_v24 = vpop.eup %4688 }
 0xb23   :  { %v3360_v53 = vmul.f32 %v4689_v24, %v4685_v47  ;;  %v6698_v47 = vld [vmem:[#allocation11 + $0x1b0] sm:$0xff]  ;;  %v6704_v24 = vld [vmem:[#allocation11 + $0x198] sm:$0xff] }
 0xb24   :  { %v4691_v32 = vpop.eup %4690 }
 0xb25   :  { %v3359_v35 = vmul.f32 %v4691_v32, %v6590_v3  ;;  %v6680_v3 = vld [vmem:[#allocation11 + $0x1d8] sm:$0xff]  ;;  %v6710_v32 = vld [vmem:[#allocation11 + $0x190] sm:$0xff] }
 0xb26   :  { %v4693_v20 = vpop.eup %4692 }
 0xb27   :  { %v6668_v28 = vadd.f32 %v3360_v53, %v3359_v35  ;;  %v6707_v53 = vld [vmem:[#allocation11 + $0x180] sm:$0xff] }
 0xb29   :  { %4694 = vtanh.f32 %v6668_v28 }
 0xb36   :  { %v4695_v18 = vpop.eup %4694 }
 0xb37   :  { %v3363_v27 = vmul.f32 %v4695_v18, %v4693_v20 }
 0xb39   :  { %3433 = vmatmul.mubr.f32.vlgmr.msra.gmra.mxu0 %v3363_v27  ;;  %3504 = vmatmul.mubr.f32.vlgmr.msra.gmra.mxu1 %v3363_v27  ;;  %v6801_v27 = vld [vmem:[#allocation11 + $0x160] sm:$0xff] }
 0xb3a   :  { %3543 = vmatpush1.msra.mxu0 %v6671_v45  ;;  %3614 = vmatpush1.msra.mxu1 %v6674_v48 }
 0xb3b   :  { %3544 = vmatprep.subr.mxu0 %v6677_v26  ;;  %3615 = vmatprep.subr.mxu1 %v6680_v3 }
 0xb3c   :  { %3545 = vmatpush1.msra.mxu0 %v6683_v41  ;;  %3616 = vmatpush1.msra.mxu1 %v6686_v15 }
 0xb3d   :  { %3546 = vmatprep.subr.mxu0 %v6689_v43  ;;  %3617 = vmatprep.subr.mxu1 %v6692_v37 }
 0xb3e   :  { %3547 = vmatpush1.msra.mxu0 %v6695_v44  ;;  %3618 = vmatpush1.msra.mxu1 %v6698_v47 }
 0xb3f   :  { %3548 = vmatprep.subr.mxu0 %v6701_v40  ;;  %3619 = vmatprep.subr.mxu1 %v6704_v24 }
 0xb40   :  { %3549 = vmatpush1.msra.mxu0 %v6707_v53  ;;  %3620 = vmatpush1.msra.mxu1 %v6710_v32 }
 0xb41   :  { %3550 = vmatprep.subr.mxu0 %v6713_v21  ;;  %3621 = vmatprep.subr.mxu1 %v6204_v1  ;;  %v7659_v1 = vld [vmem:[#allocation21_spill] sm:$0xff] }
 0xb42   :  { %3551 = vmatpush1.msra.mxu0 %v6207_v2  ;;  %3622 = vmatpush1.msra.mxu1 %v6210_v5  ;;  %v7660_v2 = vld [vmem:[#allocation24_spill] sm:$0xff]  ;;  %v7661_v5 = vld [vmem:[#allocation23_spill] sm:$0xff] }
 0xb43   :  { %3552 = vmatprep.subr.mxu0 %v6213_v25  ;;  %3623 = vmatprep.subr.mxu1 %v6216_v49  ;;  %v7662_v25 = vld [vmem:[#allocation25_spill] sm:$0xff]  ;;  %v7663_v49 = vld [vmem:[#allocation26_spill] sm:$0xff] }
 0xb44   :  { %3553 = vmatpush1.msra.mxu0 %v6219_v4  ;;  %3624 = vmatpush1.msra.mxu1 %v6222_v17  ;;  %v7664_v4 = vmov 0.0   ;;  %v7665_v17 = vld [vmem:[#allocation28_spill] sm:$0xff] }
 0xb45   :  { %3554 = vmatprep.subr.mxu0 %v6225_v22  ;;  %3625 = vmatprep.subr.mxu1 %v6228_v38  ;;  %v6765_v22 = vld [vmem:[#allocation11 + $0x1e8] sm:$0xff]  ;;  %v6768_v38 = vld [vmem:[#allocation11 + $0x1f8] sm:$0xff] }
 0xb46   :  { %3555 = vmatpush1.msra.mxu0 %v6231_v8  ;;  %3626 = vmatpush1.msra.mxu1 %v6234_v12  ;;  %7666 = vst [vmem:[#allocation27_spill] sm:$0xff] %v6765_v22  ;;  %7667 = vst [vmem:[#allocation29_spill] sm:$0xff] %v6768_v38  ;;  %v7668_v8 = vld [vmem:[#allocation65_spill] sm:$0xff]  ;;  %v7669_v12 = vld [vmem:[#allocation35_spill] sm:$0xff] }
 0xb47   :  { %3556 = vmatprep.subr.mxu0 %v6237_v19  ;;  %3627 = vmatprep.subr.mxu1 %v6240_v14  ;;  %v2601_v19 = vadd.f32 %v7669_v12, %v7668_v8  ;;  %v6822_v12 = vld [vmem:[#allocation11 + $0x138] sm:$0xff] }
 0xb48   :  { %3557 = vmatpush1.msra.mxu0 %v6243_v62  ;;  %3628 = vmatpush1.msra.mxu1 %v6246_v9  ;;  %v7670_v62 = vld [vmem:[#allocation55_spill] sm:$0xff] }
 0xb49   :  { %3558 = vmatprep.subr.mxu0 %v6249_v7  ;;  %3629 = vmatprep.subr.mxu1 %v6252_v46  ;;  %v2603_v9 = vadd.f32 %v7670_v62, %v6489_v33  ;;  %v6831_v62 = vld [vmem:[#allocation11 + $0x108] sm:$0xff] }
 0xb4a   :  { %3559 = vmatpush1.msra.mxu0 %v6255_v11  ;;  %3630 = vmatpush1.msra.mxu1 %v6258_v6 }
 0xb4b   :  { %3560 = vmatprep.subr.mxu0 %v6261_v30  ;;  %3631 = vmatprep.subr.mxu1 %v6264_v23 }
 0xb4c   :  { %3561 = vmatpush1.msra.mxu0 %v6267_v10  ;;  %3632 = vmatpush1.msra.mxu1 %v6270_v13  ;;  %v7671_v13 = vld [vmem:[#allocation57_spill] sm:$0xff] }
 0xb4d   :  { %3562 = vmatprep.subr.mxu0 %v6273_v39  ;;  %3633 = vmatprep.subr.mxu1 %v6276_v31  ;;  %v2716_v39 = vadd.f32 %v7671_v13, %v6501_v29  ;;  %v6858_v13 = vld [vmem:[#allocation11 + $0xd8] sm:$0xff] }
 0xb4e   :  { %3563 = vmatpush1.msra.mxu0 %v6279_v42  ;;  %3634 = vmatpush1.msra.mxu1 %v7630_v50  ;;  %v7672_v42 = vld [vmem:[#allocation37_spill] sm:$0xff] }
 0xb4f   :  { %3564 = vmatprep.subr.mxu0 %v7631_v16  ;;  %3635 = vmatprep.subr.mxu1 %v7632_v51  ;;  %v2714_v50 = vadd.f32 %v7672_v42, %v6506_v34  ;;  %v6867_v42 = vld [vmem:[#allocation11 + $0xa8] sm:$0xff] }
 0xb50   :  { %3565 = vmatpush1.msra.mxu0 %v7633_v36  ;;  %3636 = vmatpush1.msra.mxu1 %v7634_v52 }
 0xb51   :  { %3566 = vmatprep.subr.mxu0 %v7635_v54  ;;  %3637 = vmatprep.subr.mxu1 %v7636_v55 }
 0xb52   :  { %3567 = vmatpush1.msra.mxu0 %v7637_v56  ;;  %3638 = vmatpush1.msra.mxu1 %v7638_v57 }
 0xb53   :  { %3568 = vmatprep.subr.mxu0 %v7639_v58  ;;  %3639 = vmatprep.subr.mxu1 %v7640_v59 }
 0xb54   :  { %3569 = vmatpush1.msra.mxu0 %v7641_v60  ;;  %3640 = vmatpush1.msra.mxu1 %v7642_v61 }
 0xb55   :  { %3570 = vmatprep.subr.mxu0 %v7643_v63  ;;  %3641 = vmatprep.subr.mxu1 %v7644_v0 }
 0xb56   :  { %3571 = vmatpush1.msra.mxu0 %v7659_v1  ;;  %3642 = vmatpush1.msra.mxu1 %v7660_v2  ;;  %v6804_v1 = vld [vmem:[#allocation11 + $0x170] sm:$0xff]  ;;  %v6807_v2 = vld [vmem:[#allocation11 + $0x148] sm:$0xff] }
 0xb57   :  { %3572 = vmatprep.subr.mxu0 %v7661_v5  ;;  %3643 = vmatprep.subr.mxu1 %v7662_v25  ;;  %v6810_v5 = vld [vmem:[#allocation11 + $0x158] sm:$0xff]  ;;  %v6813_v25 = vld [vmem:[#allocation11 + $0x140] sm:$0xff] }
 0xb58   :  { %3573 = vmatpush1.msra.mxu0 %v7663_v49  ;;  %3606 = vmatprep.mubr.f32.mxu0 %v7664_v4  ;;  %v6816_v49 = vld [vmem:[#allocation11 + $0x150] sm:$0xff] }
 0xb59   :  { %3644 = vmatpush1.msra.mxu1 %v7665_v17  ;;  %3677 = vmatprep.mubr.f32.mxu1 %v7664_v4  ;;  %v6819_v17 = vld [vmem:[#allocation11 + $0x128] sm:$0xff] }
 0xb5a   :  { %3716 = vmatprep.subr.mxu0 %v6765_v22  ;;  %3787 = vmatprep.subr.mxu1 %v6768_v38 }
 0xbf9   :  { %v3434_v14 = vpop.f32.mrf.mxu0  ;;  %v3505_v30 = vpop.f32.mrf.mxu1 }
 0xbfa   :  { %v3510_v7 = vadd.f32 %v3434_v14, %v2601_v19  ;;  %v3512_v16 = vadd.f32 %v3505_v30, %v2714_v50  ;;  %v6825_v19 = vld [vmem:[#allocation11 + $0x120] sm:$0xff]  ;;  %v6828_v14 = vld [vmem:[#allocation11 + $0x130] sm:$0xff]  ;;  %v6870_v50 = vld [vmem:[#allocation11 + $0xb8] sm:$0xff] }
 0xbfb   :  { %v3436_v46 = vpop.f32.mrf.mxu0  ;;  %v3507_v10 = vpop.f32.mrf.mxu1  ;;  %v6849_v30 = vld [vmem:[#allocation11 + $0xe0] sm:$0xff] }
 0xbfc   :  { %v4439_v11 = vmul.f32 -1.442695, %v3510_v7  ;;  %v3511_v6 = vadd.f32 %v3436_v46, %v2603_v9  ;;  %v3513_v31 = vadd.f32 %v3507_v10, %v2716_v39  ;;  %v6834_v9 = vld [vmem:[#allocation11 + $0x118] sm:$0xff]  ;;  %v6837_v7 = vld [vmem:[#allocation11 + $0x100] sm:$0xff]  ;;  %v6840_v46 = vld [vmem:[#allocation11 + $0x110] sm:$0xff] }
 0xbfd   :  { %v6855_v10 = vld [vmem:[#allocation11 + $0xc8] sm:$0xff]  ;;  %v6861_v39 = vld [vmem:[#allocation11 + $0xc0] sm:$0xff] }
 0xbfe   :  { %4696 = vpow2.f32 %v4439_v11  ;;  %v4440_v23 = vmul.f32 -1.442695, %v3511_v6  ;;  %v4441_v51 = vmul.f32 -1.442695, %v3513_v31  ;;  %v6843_v11 = vld [vmem:[#allocation11 + $0xe8] sm:$0xff]  ;;  %v6846_v6 = vld [vmem:[#allocation11 + $0xf8] sm:$0xff] }
 0xbff   :  { %v6864_v31 = vld [vmem:[#allocation11 + $0xd0] sm:$0xff] }
 0xc00   :  { %4698 = vpow2.f32 %v4440_v23  ;;  %v6852_v23 = vld [vmem:[#allocation11 + $0xf0] sm:$0xff] }
 0xc01   :  { %4700 = vtanh.f32 %v3512_v16  ;;  %v6873_v16 = vld [vmem:[#allocation11 + $0xa0] sm:$0xff] }
 0xc02   :  { %4702 = vpow2.f32 %v4441_v51  ;;  %v6876_v51 = vld [vmem:[#allocation11 + $0xb0] sm:$0xff] }
 0xc03   :  { %7673 = vst [vmem:[#allocation32_spill] sm:$0xff] %v6876_v51 }
 0xc0b   :  { %v4697_v36 = vpop.eup %4696 }
 0xc0c   :  { %v3517_v52 = vadd.f32 1.0, %v4697_v36  ;;  %v6879_v36 = vld [vmem:[#allocation11 + $0x88] sm:$0xff] }
 0xc0d   :  { %v4699_v54 = vpop.eup %4698  ;;  %7674 = vst [vmem:[#allocation30_spill] sm:$0xff] %v6879_v36 }
 0xc0e   :  { %4704 = vrcp.f32 %v3517_v52  ;;  %v3523_v55 = vadd.f32 1.0, %v4699_v54  ;;  %v4701_v56 = vpop.eup %4700  ;;  %v6882_v52 = vld [vmem:[#allocation11 + $0x98] sm:$0xff]  ;;  %v6885_v54 = vld [vmem:[#allocation11 + $0x80] sm:$0xff] }
 0xc0f   :  { %v4703_v57 = vpop.eup %4702  ;;  %7675 = vst [vmem:[#allocation43_spill] sm:$0xff] %v6882_v52  ;;  %7676 = vst [vmem:[#allocation45_spill] sm:$0xff] %v6885_v54 }
 0xc10   :  { %4706 = vrcp.f32 %v3523_v55  ;;  %v3530_v61 = vadd.f32 1.0, %v4703_v57  ;;  %v6888_v55 = vld [vmem:[#allocation11 + $0x90] sm:$0xff]  ;;  %v6894_v57 = vld [vmem:[#allocation11 + $0x78] sm:$0xff] }
 0xc11   :  { %7677 = vst [vmem:[#allocation46_spill] sm:$0xff] %v6888_v55  ;;  %7679 = vst [vmem:[#allocation47_spill] sm:$0xff] %v6894_v57 }
 0xc12   :  { %4708 = vrcp.f32 %v3530_v61  ;;  %v6906_v61 = vld [vmem:[#allocation11 + $0x58] sm:$0xff] }
 0xc13   :  { %7683 = vst [vmem:[#allocation20_spill] sm:$0xff] %v6906_v61 }
 0xc1b   :  { %v4705_v58 = vpop.eup %4704 }
 0xc1c   :  { %v3534_v59 = vmul.f32 %v4705_v58, %v4701_v56  ;;  %v6891_v56 = vld [vmem:[#allocation11 + $0x68] sm:$0xff]  ;;  %v6897_v58 = vld [vmem:[#allocation11 + $0x60] sm:$0xff] }
 0xc1d   :  { %v4707_v60 = vpop.eup %4706  ;;  %7678 = vst [vmem:[#allocation44_spill] sm:$0xff] %v6891_v56  ;;  %7680 = vst [vmem:[#allocation49_spill] sm:$0xff] %v6897_v58 }
 0xc1e   :  { %v3533_v63 = vmul.f32 %v4707_v60, %v6668_v28  ;;  %v6798_v28 = vld [vmem:[#allocation11 + $0x178] sm:$0xff]  ;;  %v6903_v60 = vld [vmem:[#allocation11 + $0x48] sm:$0xff] }
 0xc1f   :  { %v4709_v35 = vpop.eup %4708  ;;  %7682 = vst [vmem:[#allocation48_spill] sm:$0xff] %v6903_v60 }
 0xc20   :  { %v6780_v0 = vadd.f32 %v3534_v59, %v3533_v63  ;;  %v6900_v59 = vld [vmem:[#allocation11 + $0x70] sm:$0xff]  ;;  %v6909_v63 = vld [vmem:[#allocation11 + $0x40] sm:$0xff] }
 0xc21   :  { %7681 = vst [vmem:[#allocation50_spill] sm:$0xff] %v6900_v59  ;;  %7684 = vst [vmem:[#allocation19_spill] sm:$0xff] %v6909_v63 }
 0xc22   :  { %4710 = vtanh.f32 %v6780_v0 }
 0xc2f   :  { %v4711_v20 = vpop.eup %4710 }
 0xc30   :  { %v3537_v18 = vmul.f32 %v4711_v20, %v4709_v35  ;;  %v6912_v35 = vld [vmem:[#allocation11 + $0x50] sm:$0xff]  ;;  %v6915_v20 = vld [vmem:[#allocation11 + $0x28] sm:$0xff] }
 0xc31   :  { %7685 = vst [vmem:[#allocation51_spill] sm:$0xff] %v6912_v35  ;;  %7686 = vst [vmem:[#allocation53_spill] sm:$0xff] %v6915_v20 }
 0xc32   :  { %3607 = vmatmul.mubr.f32.vlgmr.msra.gmra.mxu0 %v3537_v18  ;;  %3678 = vmatmul.mubr.f32.vlgmr.msra.gmra.mxu1 %v3537_v18  ;;  %v6918_v18 = vld [vmem:[#allocation11 + $0x38] sm:$0xff] }
 0xc33   :  { %3717 = vmatpush1.msra.mxu0 %v6671_v45  ;;  %3788 = vmatpush1.msra.mxu1 %v6674_v48  ;;  %7687 = vst [vmem:[#allocation54_spill] sm:$0xff] %v6918_v18 }
 0xc34   :  { %3718 = vmatprep.subr.mxu0 %v6677_v26  ;;  %3789 = vmatprep.subr.mxu1 %v6680_v3 }
 0xc35   :  { %3719 = vmatpush1.msra.mxu0 %v6683_v41  ;;  %3790 = vmatpush1.msra.mxu1 %v6686_v15 }
 0xc36   :  { %3720 = vmatprep.subr.mxu0 %v6689_v43  ;;  %3791 = vmatprep.subr.mxu1 %v6692_v37 }
 0xc37   :  { %3721 = vmatpush1.msra.mxu0 %v6695_v44  ;;  %3792 = vmatpush1.msra.mxu1 %v6698_v47 }
 0xc38   :  { %3722 = vmatprep.subr.mxu0 %v6701_v40  ;;  %3793 = vmatprep.subr.mxu1 %v6704_v24 }
 0xc39   :  { %3723 = vmatpush1.msra.mxu0 %v6707_v53  ;;  %3794 = vmatpush1.msra.mxu1 %v6710_v32 }
 0xc3a   :  { %3724 = vmatprep.subr.mxu0 %v6713_v21  ;;  %3795 = vmatprep.subr.mxu1 %v6798_v28 }
 0xc3b   :  { %3725 = vmatpush1.msra.mxu0 %v6801_v27  ;;  %3796 = vmatpush1.msra.mxu1 %v6804_v1 }
 0xc3c   :  { %3726 = vmatprep.subr.mxu0 %v6807_v2  ;;  %3797 = vmatprep.subr.mxu1 %v6810_v5 }
 0xc3d   :  { %3727 = vmatpush1.msra.mxu0 %v6813_v25  ;;  %3798 = vmatpush1.msra.mxu1 %v6816_v49 }
 0xc3e   :  { %3728 = vmatprep.subr.mxu0 %v6819_v17  ;;  %3799 = vmatprep.subr.mxu1 %v6822_v12 }
 0xc3f   :  { %3729 = vmatpush1.msra.mxu0 %v6825_v19  ;;  %3800 = vmatpush1.msra.mxu1 %v6828_v14 }
 0xc40   :  { %3730 = vmatprep.subr.mxu0 %v6831_v62  ;;  %3801 = vmatprep.subr.mxu1 %v6834_v9 }
 0xc41   :  { %3731 = vmatpush1.msra.mxu0 %v6837_v7  ;;  %3802 = vmatpush1.msra.mxu1 %v6840_v46 }
 0xc42   :  { %3732 = vmatprep.subr.mxu0 %v6843_v11  ;;  %3803 = vmatprep.subr.mxu1 %v6846_v6 }
 0xc43   :  { %3733 = vmatpush1.msra.mxu0 %v6849_v30  ;;  %3804 = vmatpush1.msra.mxu1 %v6852_v23 }
 0xc44   :  { %3734 = vmatprep.subr.mxu0 %v6855_v10  ;;  %3805 = vmatprep.subr.mxu1 %v6858_v13 }
 0xc45   :  { %3735 = vmatpush1.msra.mxu0 %v6861_v39  ;;  %3806 = vmatpush1.msra.mxu1 %v6864_v31 }
 0xc46   :  { %3736 = vmatprep.subr.mxu0 %v6867_v42  ;;  %3807 = vmatprep.subr.mxu1 %v6870_v50 }
 0xc47   :  { %3737 = vmatpush1.msra.mxu0 %v6873_v16  ;;  %3808 = vmatpush1.msra.mxu1 %v6876_v51 }
 0xc48   :  { %3738 = vmatprep.subr.mxu0 %v6879_v36  ;;  %3809 = vmatprep.subr.mxu1 %v6882_v52  ;;  %v7697_v52 = vld [vmem:[#allocation56_spill] sm:$0xff] }
 0xc49   :  { %3739 = vmatpush1.msra.mxu0 %v6885_v54  ;;  %3810 = vmatpush1.msra.mxu1 %v6888_v55 }
 0xc4a   :  { %3740 = vmatprep.subr.mxu0 %v6891_v56  ;;  %3811 = vmatprep.subr.mxu1 %v6894_v57 }
 0xc4b   :  { %3741 = vmatpush1.msra.mxu0 %v6897_v58  ;;  %3812 = vmatpush1.msra.mxu1 %v6900_v59 }
 0xc4c   :  { %3742 = vmatprep.subr.mxu0 %v6903_v60  ;;  %3813 = vmatprep.subr.mxu1 %v6906_v61  ;;  %v6921_v60 = vld [vmem:[#allocation11 + $0x20] sm:$0xff]  ;;  %v6924_v61 = vld [vmem:[#allocation11 + $0x30] sm:$0xff] }
 0xc4d   :  { %3743 = vmatpush1.msra.mxu0 %v6909_v63  ;;  %3814 = vmatpush1.msra.mxu1 %v6912_v35  ;;  %7688 = vst [vmem:[#allocation52_spill] sm:$0xff] %v6921_v60  ;;  %7689 = vst [vmem:[#allocation22_spill] sm:$0xff] %v6924_v61  ;;  %v6927_v63 = vld [vmem:[#allocation11 + $0x8] sm:$0xff]  ;;  %v6930_v35 = vld [vmem:[#allocation11 + $0x18] sm:$0xff] }
 0xc4e   :  { %3744 = vmatprep.subr.mxu0 %v6915_v20  ;;  %3815 = vmatprep.subr.mxu1 %v6918_v18  ;;  %7690 = vst [vmem:[#allocation42_spill] sm:$0xff] %v6927_v63  ;;  %7691 = vst [vmem:[#allocation40_spill] sm:$0xff] %v6930_v35  ;;  %v6933_v20 = vld [vmem:[#allocation11] sm:$0xff]  ;;  %v6937_v18 = vld [vmem:[#allocation11 + $0x10] sm:$0xff] }
 0xc4f   :  { %3745 = vmatpush1.msra.mxu0 %v6921_v60  ;;  %3816 = vmatpush1.msra.mxu1 %v6924_v61  ;;  %7692 = vst [vmem:[#allocation31_spill] sm:$0xff] %v6933_v20  ;;  %7693 = vst [vmem:[#allocation33_spill] sm:$0xff] %v6937_v18  ;;  %v7695_v60 = vld [vmem:[#allocation59_spill] sm:$0xff] }
 0xc50   :  { %3746 = vmatprep.subr.mxu0 %v6927_v63  ;;  %3817 = vmatprep.subr.mxu1 %v6930_v35  ;;  %v7694_v63 = vld [vmem:[#allocation58_spill] sm:$0xff]  ;;  %v2609_v59 = vadd.f32 %v7695_v60, %v6489_v33 }
 0xc51   :  { %3747 = vmatpush1.msra.mxu0 %v6933_v20  ;;  %3780 = vmatprep.mubr.f32.mxu0 %v7664_v4  ;;  %v2607_v61 = vadd.f32 %v7694_v63, %v7668_v8  ;;  %v2720_v63 = vadd.f32 %v7697_v52, %v6506_v34  ;;  %v7700_v52 = vld [vmem:[#allocation43_spill] sm:$0xff] }
 0xc52   :  { %3818 = vmatpush1.msra.mxu1 %v6937_v18  ;;  %3851 = vmatprep.mubr.f32.mxu1 %v7664_v4 }
 0xc53   :  { %3890 = vmatprep.subr.mxu0 %v6765_v22  ;;  %3961 = vmatprep.subr.mxu1 %v6768_v38  ;;  %v7696_v22 = vld [vmem:[#allocation61_spill] sm:$0xff] }
 0xc54   :  { %v2722_v54 = vadd.f32 %v7696_v22, %v6501_v29 }
 0xcf2   :  { %v3608_v35 = vpop.f32.mrf.mxu0  ;;  %v3679_v55 = vpop.f32.mrf.mxu1 }
 0xcf3   :  { %v3684_v20 = vadd.f32 %v3608_v35, %v2607_v61  ;;  %v3686_v8 = vadd.f32 %v3679_v55, %v2720_v63  ;;  %v7701_v55 = vld [vmem:[#allocation45_spill] sm:$0xff]  ;;  %v7703_v63 = vld [vmem:[#allocation44_spill] sm:$0xff] }
 0xcf4   :  { %v3610_v58 = vpop.f32.mrf.mxu0  ;;  %v3681_v4 = vpop.f32.mrf.mxu1 }
 0xcf5   :  { %v4442_v57 = vmul.f32 -1.442695, %v3684_v20  ;;  %v3685_v56 = vadd.f32 %v3610_v58, %v2609_v59  ;;  %v3687_v38 = vadd.f32 %v3681_v4, %v2722_v54 }
 0xcf7   :  { %4712 = vpow2.f32 %v4442_v57  ;;  %v4443_v18 = vmul.f32 -1.442695, %v3685_v56  ;;  %v4444_v36 = vmul.f32 -1.442695, %v3687_v38 }
 0xcf9   :  { %4714 = vpow2.f32 %v4443_v18  ;;  %v7702_v18 = vld [vmem:[#allocation46_spill] sm:$0xff] }
 0xcfa   :  { %4716 = vtanh.f32 %v3686_v8 }
 0xcfb   :  { %4718 = vpow2.f32 %v4444_v36  ;;  %v7699_v36 = vld [vmem:[#allocation30_spill] sm:$0xff] }
 0xd04   :  { %v4713_v51 = vpop.eup %4712 }
 0xd05   :  { %v3691_v60 = vadd.f32 1.0, %v4713_v51 }
 0xd06   :  { %v4715_v61 = vpop.eup %4714 }
 0xd07   :  { %4720 = vrcp.f32 %v3691_v60  ;;  %v3697_v57 = vadd.f32 1.0, %v4715_v61  ;;  %v4717_v56 = vpop.eup %4716  ;;  %v7704_v60 = vld [vmem:[#allocation47_spill] sm:$0xff]  ;;  %v7705_v61 = vld [vmem:[#allocation49_spill] sm:$0xff] }
 0xd08   :  { %v4719_v58 = vpop.eup %4718 }
 0xd09   :  { %4722 = vrcp.f32 %v3697_v57  ;;  %v3704_v22 = vadd.f32 1.0, %v4719_v58  ;;  %v7706_v57 = vld [vmem:[#allocation50_spill] sm:$0xff]  ;;  %v7708_v58 = vld [vmem:[#allocation20_spill] sm:$0xff] }
 0xd0b   :  { %4724 = vrcp.f32 %v3704_v22  ;;  %v7712_v22 = vld [vmem:[#allocation54_spill] sm:$0xff] }
 0xd14   :  { %v4721_v59 = vpop.eup %4720 }
 0xd15   :  { %v3708_v35 = vmul.f32 %v4721_v59, %v4717_v56  ;;  %v7707_v56 = vld [vmem:[#allocation48_spill] sm:$0xff]  ;;  %v7709_v59 = vld [vmem:[#allocation19_spill] sm:$0xff] }
 0xd16   :  { %v4723_v20 = vpop.eup %4722 }
 0xd17   :  { %v3707_v4 = vmul.f32 %v4723_v20, %v6780_v0  ;;  %v7698_v0 = vld [vmem:[#allocation32_spill] sm:$0xff]  ;;  %v7711_v20 = vld [vmem:[#allocation53_spill] sm:$0xff] }
 0xd18   :  { %v4725_v38 = vpop.eup %4724 }
 0xd19   :  { %v6952_v54 = vadd.f32 %v3708_v35, %v3707_v4  ;;  %v7710_v35 = vld [vmem:[#allocation51_spill] sm:$0xff]  ;;  %v7713_v4 = vld [vmem:[#allocation52_spill] sm:$0xff] }
 0xd1b   :  { %4726 = vtanh.f32 %v6952_v54 }
 0xd28   :  { %v4727_v8 = vpop.eup %4726 }
 0xd29   :  { %v3711_v51 = vmul.f32 %v4727_v8, %v4725_v38  ;;  %v7714_v38 = vld [vmem:[#allocation22_spill] sm:$0xff] }
 0xd2a   :  { %v7715_v8 = vld [vmem:[#allocation42_spill] sm:$0xff] }
 0xd2b   :  { %3781 = vmatmul.mubr.f32.vlgmr.msra.gmra.mxu0 %v3711_v51  ;;  %3852 = vmatmul.mubr.f32.vlgmr.msra.gmra.mxu1 %v3711_v51  ;;  %v7716_v51 = vld [vmem:[#allocation40_spill] sm:$0xff] }
 0xd2c   :  { %3891 = vmatpush1.msra.mxu0 %v6671_v45  ;;  %3962 = vmatpush1.msra.mxu1 %v6674_v48 }
 0xd2d   :  { %3892 = vmatprep.subr.mxu0 %v6677_v26  ;;  %3963 = vmatprep.subr.mxu1 %v6680_v3 }
 0xd2e   :  { %3893 = vmatpush1.msra.mxu0 %v6683_v41  ;;  %3964 = vmatpush1.msra.mxu1 %v6686_v15 }
 0xd2f   :  { %3894 = vmatprep.subr.mxu0 %v6689_v43  ;;  %3965 = vmatprep.subr.mxu1 %v6692_v37 }
 0xd30   :  { %3895 = vmatpush1.msra.mxu0 %v6695_v44  ;;  %3966 = vmatpush1.msra.mxu1 %v6698_v47 }
 0xd31   :  { %3896 = vmatprep.subr.mxu0 %v6701_v40  ;;  %3967 = vmatprep.subr.mxu1 %v6704_v24 }
 0xd32   :  { %3897 = vmatpush1.msra.mxu0 %v6707_v53  ;;  %3968 = vmatpush1.msra.mxu1 %v6710_v32 }
 0xd33   :  { %3898 = vmatprep.subr.mxu0 %v6713_v21  ;;  %3969 = vmatprep.subr.mxu1 %v6798_v28 }
 0xd34   :  { %3899 = vmatpush1.msra.mxu0 %v6801_v27  ;;  %3970 = vmatpush1.msra.mxu1 %v6804_v1 }
 0xd35   :  { %3900 = vmatprep.subr.mxu0 %v6807_v2  ;;  %3971 = vmatprep.subr.mxu1 %v6810_v5 }
 0xd36   :  { %3901 = vmatpush1.msra.mxu0 %v6813_v25  ;;  %3972 = vmatpush1.msra.mxu1 %v6816_v49 }
 0xd37   :  { %3902 = vmatprep.subr.mxu0 %v6819_v17  ;;  %3973 = vmatprep.subr.mxu1 %v6822_v12 }
 0xd38   :  { %3903 = vmatpush1.msra.mxu0 %v6825_v19  ;;  %3974 = vmatpush1.msra.mxu1 %v6828_v14 }
 0xd39   :  { %3904 = vmatprep.subr.mxu0 %v6831_v62  ;;  %3975 = vmatprep.subr.mxu1 %v6834_v9 }
 0xd3a   :  { %3905 = vmatpush1.msra.mxu0 %v6837_v7  ;;  %3976 = vmatpush1.msra.mxu1 %v6840_v46 }
 0xd3b   :  { %3906 = vmatprep.subr.mxu0 %v6843_v11  ;;  %3977 = vmatprep.subr.mxu1 %v6846_v6 }
 0xd3c   :  { %3907 = vmatpush1.msra.mxu0 %v6849_v30  ;;  %3978 = vmatpush1.msra.mxu1 %v6852_v23 }
 0xd3d   :  { %3908 = vmatprep.subr.mxu0 %v6855_v10  ;;  %3979 = vmatprep.subr.mxu1 %v6858_v13 }
 0xd3e   :  { %3909 = vmatpush1.msra.mxu0 %v6861_v39  ;;  %3980 = vmatpush1.msra.mxu1 %v6864_v31 }
 0xd3f   :  { %3910 = vmatprep.subr.mxu0 %v6867_v42  ;;  %3981 = vmatprep.subr.mxu1 %v6870_v50 }
 0xd40   :  { %3911 = vmatpush1.msra.mxu0 %v6873_v16  ;;  %3982 = vmatpush1.msra.mxu1 %v7698_v0 }
 0xd41   :  { %3912 = vmatprep.subr.mxu0 %v7699_v36  ;;  %3983 = vmatprep.subr.mxu1 %v7700_v52  ;;  %v7726_v52 = vld [vmem:[#allocation60_spill] sm:$0xff] }
 0xd42   :  { %3913 = vmatpush1.msra.mxu0 %v7701_v55  ;;  %3984 = vmatpush1.msra.mxu1 %v7702_v18 }
 0xd43   :  { %3914 = vmatprep.subr.mxu0 %v7703_v63  ;;  %3985 = vmatprep.subr.mxu1 %v7704_v60 }
 0xd44   :  { %3915 = vmatpush1.msra.mxu0 %v7705_v61  ;;  %3986 = vmatpush1.msra.mxu1 %v7706_v57  ;;  %v7717_v57 = vld [vmem:[#allocation31_spill] sm:$0xff] }
 0xd45   :  { %3916 = vmatprep.subr.mxu0 %v7707_v56  ;;  %3987 = vmatprep.subr.mxu1 %v7708_v58  ;;  %v7718_v56 = vmov 0.0   ;;  %v7719_v58 = vld [vmem:[#allocation33_spill] sm:$0xff] }
 0xd46   :  { %3917 = vmatpush1.msra.mxu0 %v7709_v59  ;;  %3988 = vmatpush1.msra.mxu1 %v7710_v35  ;;  %v7720_v35 = vld [vmem:[#allocation27_spill] sm:$0xff] }
 0xd47   :  { %3918 = vmatprep.subr.mxu0 %v7711_v20  ;;  %3989 = vmatprep.subr.mxu1 %v7712_v22  ;;  %v7721_v20 = vld [vmem:[#allocation29_spill] sm:$0xff] }
 0xd48   :  { %3919 = vmatpush1.msra.mxu0 %v7713_v4  ;;  %3990 = vmatpush1.msra.mxu1 %v7714_v38  ;;  %v7722_v22 = vld [vmem:[#allocation65_spill] sm:$0xff]  ;;  %v7723_v4 = vld [vmem:[#allocation62_spill] sm:$0xff] }
 0xd49   :  { %3920 = vmatprep.subr.mxu0 %v7715_v8  ;;  %3991 = vmatprep.subr.mxu1 %v7716_v51  ;;  %v2613_v59 = vadd.f32 %v7723_v4, %v7722_v22  ;;  %v7724_v8 = vld [vmem:[#allocation67_spill] sm:$0xff]  ;;  %v2726_v4 = vadd.f32 %v7726_v52, %v6506_v34 }
 0xd4a   :  { %3921 = vmatpush1.msra.mxu0 %v7717_v57  ;;  %3954 = vmatprep.mubr.f32.mxu0 %v7718_v56  ;;  %v2615_v61 = vadd.f32 %v7724_v8, %v6489_v33 }
 0xd4b   :  { %3992 = vmatpush1.msra.mxu1 %v7719_v58  ;;  %4025 = vmatprep.mubr.f32.mxu1 %v7718_v56 }
 0xd4c   :  { %4064 = vmatprep.subr.mxu0 %v7720_v35  ;;  %4135 = vmatprep.subr.mxu1 %v7721_v20  ;;  %v7725_v35 = vld [vmem:[#allocation18_spill] sm:$0xff] }
 0xd4d   :  { %v2728_v55 = vadd.f32 %v7725_v35, %v6501_v29 }
 0xdeb   :  { %v3782_v38 = vpop.f32.mrf.mxu0  ;;  %v3853_v18 = vpop.f32.mrf.mxu1 }
 0xdec   :  { %v3858_v51 = vadd.f32 %v3782_v38, %v2613_v59  ;;  %v3860_v22 = vadd.f32 %v3853_v18, %v2726_v4 }
 0xded   :  { %v3784_v60 = vpop.f32.mrf.mxu0  ;;  %v3855_v56 = vpop.f32.mrf.mxu1 }
 0xdee   :  { %v4445_v57 = vmul.f32 -1.442695, %v3858_v51  ;;  %v3859_v63 = vadd.f32 %v3784_v60, %v2615_v61  ;;  %v3861_v20 = vadd.f32 %v3855_v56, %v2728_v55 }
 0xdf0   :  { %4728 = vpow2.f32 %v4445_v57  ;;  %v4446_v58 = vmul.f32 -1.442695, %v3859_v63  ;;  %v4447_v36 = vmul.f32 -1.442695, %v3861_v20 }
 0xdf2   :  { %4730 = vpow2.f32 %v4446_v58 }
 0xdf3   :  { %4732 = vtanh.f32 %v3860_v22 }
 0xdf4   :  { %4734 = vpow2.f32 %v4447_v36 }
 0xdfd   :  { %v4729_v0 = vpop.eup %4728 }
 0xdfe   :  { %v3865_v8 = vadd.f32 1.0, %v4729_v0 }
 0xdff   :  { %v4731_v59 = vpop.eup %4730 }
 0xe00   :  { %4736 = vrcp.f32 %v3865_v8  ;;  %v3871_v60 = vadd.f32 1.0, %v4731_v59  ;;  %v4733_v63 = vpop.eup %4732 }
 0xe01   :  { %v4735_v61 = vpop.eup %4734 }
 0xe02   :  { %4738 = vrcp.f32 %v3871_v60  ;;  %v3878_v51 = vadd.f32 1.0, %v4735_v61 }
 0xe04   :  { %4740 = vrcp.f32 %v3878_v51 }
 0xe0d   :  { %v4737_v57 = vpop.eup %4736 }
 0xe0e   :  { %v3882_v58 = vmul.f32 %v4737_v57, %v4733_v63 }
 0xe0f   :  { %v4739_v38 = vpop.eup %4738 }
 0xe10   :  { %v3881_v55 = vmul.f32 %v4739_v38, %v6952_v54 }
 0xe11   :  { %v4741_v0 = vpop.eup %4740 }
 0xe12   :  { %v7030_v56 = vadd.f32 %v3882_v58, %v3881_v55 }
 0xe14   :  { %4742 = vtanh.f32 %v7030_v56 }
 0xe21   :  { %v4743_v52 = vpop.eup %4742 }
 0xe22   :  { %v3885_v18 = vmul.f32 %v4743_v52, %v4741_v0  ;;  %v4253_v0 = vld [vmem:[#allocation12 + $0x78] sm:$0xff]  ;;  %v4252_v52 = vld [vmem:[#allocation12 + $0x70] sm:$0xff] }
 0xe24   :  { %3955 = vmatmul.mubr.f32.vlgmr.msra.gmra.mxu0 %v3885_v18  ;;  %4026 = vmatmul.mubr.f32.vlgmr.msra.gmra.mxu1 %v3885_v18  ;;  %v4251_v18 = vld [vmem:[#allocation12 + $0x68] sm:$0xff] }
 0xe25   :  { %4065 = vmatpush1.msra.mxu0 %v6671_v45  ;;  %4136 = vmatpush1.msra.mxu1 %v6674_v48  ;;  %v7727_v45 = vld [vmem:[#allocation32_spill] sm:$0xff]  ;;  %v7728_v48 = vld [vmem:[#allocation30_spill] sm:$0xff] }
 0xe26   :  { %4066 = vmatprep.subr.mxu0 %v6677_v26  ;;  %4137 = vmatprep.subr.mxu1 %v6680_v3  ;;  %v7729_v26 = vld [vmem:[#allocation43_spill] sm:$0xff]  ;;  %v7730_v3 = vld [vmem:[#allocation45_spill] sm:$0xff] }
 0xe27   :  { %4067 = vmatpush1.msra.mxu0 %v6683_v41  ;;  %4138 = vmatpush1.msra.mxu1 %v6686_v15  ;;  %v7731_v41 = vld [vmem:[#allocation46_spill] sm:$0xff]  ;;  %v7732_v15 = vld [vmem:[#allocation44_spill] sm:$0xff] }
 0xe28   :  { %4068 = vmatprep.subr.mxu0 %v6689_v43  ;;  %4139 = vmatprep.subr.mxu1 %v6692_v37  ;;  %v7733_v43 = vld [vmem:[#allocation47_spill] sm:$0xff]  ;;  %v7734_v37 = vld [vmem:[#allocation49_spill] sm:$0xff] }
 0xe29   :  { %4069 = vmatpush1.msra.mxu0 %v6695_v44  ;;  %4140 = vmatpush1.msra.mxu1 %v6698_v47  ;;  %v7735_v44 = vld [vmem:[#allocation50_spill] sm:$0xff]  ;;  %v7736_v47 = vld [vmem:[#allocation48_spill] sm:$0xff] }
 0xe2a   :  { %4070 = vmatprep.subr.mxu0 %v6701_v40  ;;  %4141 = vmatprep.subr.mxu1 %v6704_v24  ;;  %v7737_v40 = vld [vmem:[#allocation20_spill] sm:$0xff]  ;;  %v7738_v24 = vld [vmem:[#allocation19_spill] sm:$0xff] }
 0xe2b   :  { %4071 = vmatpush1.msra.mxu0 %v6707_v53  ;;  %4142 = vmatpush1.msra.mxu1 %v6710_v32  ;;  %v7739_v53 = vld [vmem:[#allocation51_spill] sm:$0xff]  ;;  %v7740_v32 = vld [vmem:[#allocation53_spill] sm:$0xff] }
 0xe2c   :  { %4072 = vmatprep.subr.mxu0 %v6713_v21  ;;  %4143 = vmatprep.subr.mxu1 %v6798_v28  ;;  %v7741_v21 = vld [vmem:[#allocation54_spill] sm:$0xff]  ;;  %v7742_v28 = vld [vmem:[#allocation52_spill] sm:$0xff] }
 0xe2d   :  { %4073 = vmatpush1.msra.mxu0 %v6801_v27  ;;  %4144 = vmatpush1.msra.mxu1 %v6804_v1  ;;  %v7743_v27 = vld [vmem:[#allocation22_spill] sm:$0xff] }
 0xe2e   :  { %4074 = vmatprep.subr.mxu0 %v6807_v2  ;;  %4145 = vmatprep.subr.mxu1 %v6810_v5  ;;  %v7744_v1 = vld [vmem:[#allocation42_spill] sm:$0xff]  ;;  %v7745_v2 = vld [vmem:[#allocation40_spill] sm:$0xff]  ;;  %v7746_v5 = vld [vmem:[#allocation31_spill] sm:$0xff] }
 0xe2f   :  { %4075 = vmatpush1.msra.mxu0 %v6813_v25  ;;  %4146 = vmatpush1.msra.mxu1 %v6816_v49  ;;  %v7747_v25 = vmov 0.0   ;;  %v7748_v49 = vld [vmem:[#allocation33_spill] sm:$0xff] }
 0xe30   :  { %4076 = vmatprep.subr.mxu0 %v6819_v17  ;;  %4147 = vmatprep.subr.mxu1 %v6822_v12  ;;  %v7749_v17 = vld [vmem:[#allocation65_spill] sm:$0xff]  ;;  %v7750_v12 = vld [vmem:[#allocation39_spill] sm:$0xff] }
 0xe31   :  { %4077 = vmatpush1.msra.mxu0 %v6825_v19  ;;  %4148 = vmatpush1.msra.mxu1 %v6828_v14  ;;  %v2619_v19 = vadd.f32 %v7750_v12, %v7749_v17 }
 0xe32   :  { %4078 = vmatprep.subr.mxu0 %v6831_v62  ;;  %4149 = vmatprep.subr.mxu1 %v6834_v9  ;;  %v7751_v62 = vld [vmem:[#allocation63_spill] sm:$0xff] }
 0xe33   :  { %4079 = vmatpush1.msra.mxu0 %v6837_v7  ;;  %4150 = vmatpush1.msra.mxu1 %v6840_v46  ;;  %v2621_v9 = vadd.f32 %v7751_v62, %v6489_v33  ;;  %v7756_v62 = vld [vmem:[#allocation69_spill] sm:$0xff] }
 0xe34   :  { %4080 = vmatprep.subr.mxu0 %v6843_v11  ;;  %4151 = vmatprep.subr.mxu1 %v6846_v6 }
 0xe35   :  { %4081 = vmatpush1.msra.mxu0 %v6849_v30  ;;  %4152 = vmatpush1.msra.mxu1 %v6852_v23 }
 0xe36   :  { %4082 = vmatprep.subr.mxu0 %v6855_v10  ;;  %4153 = vmatprep.subr.mxu1 %v6858_v13  ;;  %v7752_v13 = vld [vmem:[#allocation66_spill] sm:$0xff] }
 0xe37   :  { %4083 = vmatpush1.msra.mxu0 %v6861_v39  ;;  %4154 = vmatpush1.msra.mxu1 %v6864_v31  ;;  %v2734_v39 = vadd.f32 %v7752_v13, %v6501_v29 }
 0xe38   :  { %4084 = vmatprep.subr.mxu0 %v6867_v42  ;;  %4155 = vmatprep.subr.mxu1 %v6870_v50  ;;  %v7753_v42 = vld [vmem:[#allocation41_spill] sm:$0xff] }
 0xe39   :  { %4085 = vmatpush1.msra.mxu0 %v6873_v16  ;;  %4156 = vmatpush1.msra.mxu1 %v7727_v45  ;;  %v2732_v50 = vadd.f32 %v7753_v42, %v6506_v34  ;;  %v4249_v45 = vld [vmem:[#allocation12 + $0x58] sm:$0xff] }
 0xe3a   :  { %4086 = vmatprep.subr.mxu0 %v7728_v48  ;;  %4157 = vmatprep.subr.mxu1 %v7729_v26  ;;  %v4248_v48 = vld [vmem:[#allocation12 + $0x50] sm:$0xff]  ;;  %v4247_v26 = vld [vmem:[#allocation12 + $0x48] sm:$0xff] }
 0xe3b   :  { %4087 = vmatpush1.msra.mxu0 %v7730_v3  ;;  %4158 = vmatpush1.msra.mxu1 %v7731_v41  ;;  %v4246_v3 = vld [vmem:[#allocation12 + $0x40] sm:$0xff]  ;;  %v4245_v41 = vld [vmem:[#allocation12 + $0x38] sm:$0xff] }
 0xe3c   :  { %4088 = vmatprep.subr.mxu0 %v7732_v15  ;;  %4159 = vmatprep.subr.mxu1 %v7733_v43  ;;  %v4244_v15 = vld [vmem:[#allocation12 + $0x30] sm:$0xff]  ;;  %v4243_v43 = vld [vmem:[#allocation12 + $0x28] sm:$0xff] }
 0xe3d   :  { %4089 = vmatpush1.msra.mxu0 %v7734_v37  ;;  %4160 = vmatpush1.msra.mxu1 %v7735_v44  ;;  %v4242_v37 = vld [vmem:[#allocation12 + $0x20] sm:$0xff]  ;;  %v4241_v44 = vld [vmem:[#allocation12 + $0x18] sm:$0xff] }
 0xe3e   :  { %4090 = vmatprep.subr.mxu0 %v7736_v47  ;;  %4161 = vmatprep.subr.mxu1 %v7737_v40  ;;  %v4240_v47 = vld [vmem:[#allocation12 + $0x10] sm:$0xff]  ;;  %v4239_v40 = vld [vmem:[#allocation12 + $0x8] sm:$0xff] }
 0xe3f   :  { %4091 = vmatpush1.msra.mxu0 %v7738_v24  ;;  %4162 = vmatpush1.msra.mxu1 %v7739_v53  ;;  %v4238_v24 = vld [vmem:[#allocation12] sm:$0xff]  ;;  %v7754_v53 = vld [vmem:[#allocation64_spill] sm:$0xff] }
 0xe40   :  { %4092 = vmatprep.subr.mxu0 %v7740_v32  ;;  %4163 = vmatprep.subr.mxu1 %v7741_v21  ;;  %v2625_v32 = vadd.f32 %v7754_v53, %v7749_v17 }
 0xe41   :  { %4093 = vmatpush1.msra.mxu0 %v7742_v28  ;;  %4164 = vmatpush1.msra.mxu1 %v7743_v27  ;;  %v7755_v28 = vld [vmem:[#allocation68_spill] sm:$0xff] }
 0xe42   :  { %4094 = vmatprep.subr.mxu0 %v7744_v1  ;;  %4165 = vmatprep.subr.mxu1 %v7745_v2  ;;  %v2627_v27 = vadd.f32 %v7755_v28, %v6489_v33 }
 0xe43   :  { %4095 = vmatpush1.msra.mxu0 %v7746_v5  ;;  %4128 = vmatprep.mubr.f32.mxu0 %v7747_v25 }
 0xe44   :  { %4166 = vmatpush1.msra.mxu1 %v7748_v49  ;;  %4199 = vmatprep.mubr.f32.mxu1 %v7747_v25 }
 0xe45   :  { %4474 = vmatprep.subr.mxu0 %v7747_v25 }
 0xee4   :  { %v3956_v14 = vpop.f32.mrf.mxu0  ;;  %v4027_v30 = vpop.f32.mrf.mxu1 }
 0xee5   :  { %v4032_v7 = vadd.f32 %v3956_v14, %v2619_v19  ;;  %v4034_v16 = vadd.f32 %v4027_v30, %v2732_v50 }
 0xee6   :  { %v3958_v46 = vpop.f32.mrf.mxu0  ;;  %v4029_v10 = vpop.f32.mrf.mxu1 }
 0xee7   :  { %v4448_v11 = vmul.f32 -1.442695, %v4032_v7  ;;  %v4033_v6 = vadd.f32 %v3958_v46, %v2621_v9  ;;  %v4035_v31 = vadd.f32 %v4029_v10, %v2734_v39  ;;  %v7757_v7 = vld [vmem:[#allocation38_spill] sm:$0xff] }
 0xee8   :  { %v2738_v17 = vadd.f32 %v7757_v7, %v6506_v34 }
 0xee9   :  { %4744 = vpow2.f32 %v4448_v11  ;;  %v4449_v23 = vmul.f32 -1.442695, %v4033_v6  ;;  %v4450_v54 = vmul.f32 -1.442695, %v4035_v31 }
 0xeeb   :  { %4746 = vpow2.f32 %v4449_v23 }
 0xeec   :  { %4748 = vtanh.f32 %v4034_v16 }
 0xeed   :  { %4750 = vpow2.f32 %v4450_v54 }
 0xef6   :  { %v4745_v36 = vpop.eup %4744 }
 0xef7   :  { %v4039_v22 = vadd.f32 1.0, %v4745_v36 }
 0xef8   :  { %v4747_v35 = vpop.eup %4746 }
 0xef9   :  { %4752 = vrcp.f32 %v4039_v22  ;;  %v4045_v20 = vadd.f32 1.0, %v4747_v35  ;;  %v4749_v4 = vpop.eup %4748  ;;  %v4456_v22 = vld [vmem:[%s7158_s11] ss:$0 sm:$0xff] }
 0xefa   :  { %v4751_v8 = vpop.eup %4750 }
 0xefb   :  { %4754 = vrcp.f32 %v4045_v20  ;;  %v4052_v61 = vadd.f32 1.0, %v4751_v8 }
 0xefd   :  { %4756 = vrcp.f32 %v4052_v61 }
 0xf06   :  { %v4753_v59 = vpop.eup %4752 }
 0xf07   :  { %v4056_v60 = vmul.f32 %v4753_v59, %v4749_v4 }
 0xf08   :  { %v4755_v63 = vpop.eup %4754 }
 0xf09   :  { %v4055_v57 = vmul.f32 %v4755_v63, %v7030_v56  ;;  %v4250_v56 = vld [vmem:[#allocation12 + $0x60] sm:$0xff] }
 0xf0a   :  { %v4757_v38 = vpop.eup %4756 }
 0xf0b   :  { %v7107_v58 = vadd.f32 %v4056_v60, %v4055_v57 }
 0xf0d   :  { %4758 = vtanh.f32 %v7107_v58 }
 0xf1a   :  { %v4759_v51 = vpop.eup %4758 }
 0xf1b   :  { %v4059_v55 = vmul.f32 %v4759_v51, %v4757_v38 }
 0xf1d   :  { %4129 = vmatmul.mubr.f32.vlgmr.msra.gmra.mxu0 %v4059_v55  ;;  %4200 = vmatmul.mubr.f32.vlgmr.msra.gmra.mxu1 %v4059_v55 }
 0xf1e   :  { %4475 = vmatpush3.msra.mxu0 %v4253_v0  ;;  %4506 = vmatprep.mubr.msk.f32.mxu0 %vm4954_vm2, %v7747_v25 }
 0xf1f   :  { %4476 = vmatprep.subr.mxu0 %v7747_v25 }
 0xf20   :  { %4477 = vmatpush3.msra.mxu0 %v4252_v52 }
 0xf21   :  { %4478 = vmatprep.subr.mxu0 %v7747_v25 }
 0xf22   :  { %4479 = vmatpush3.msra.mxu0 %v4251_v18 }
 0xf23   :  { %4480 = vmatprep.subr.mxu0 %v7747_v25 }
 0xf24   :  { %4481 = vmatpush3.msra.mxu0 %v4250_v56 }
 0xf25   :  { %4482 = vmatprep.subr.mxu0 %v7747_v25 }
 0xf26   :  { %4483 = vmatpush3.msra.mxu0 %v4249_v45 }
 0xf27   :  { %4484 = vmatprep.subr.mxu0 %v7747_v25 }
 0xf28   :  { %4485 = vmatpush3.msra.mxu0 %v4248_v48 }
 0xf29   :  { %4486 = vmatprep.subr.mxu0 %v7747_v25 }
 0xf2a   :  { %4487 = vmatpush3.msra.mxu0 %v4247_v26 }
 0xf2b   :  { %4488 = vmatprep.subr.mxu0 %v7747_v25 }
 0xf2c   :  { %4489 = vmatpush3.msra.mxu0 %v4246_v3 }
 0xf2d   :  { %4490 = vmatprep.subr.mxu0 %v7747_v25 }
 0xf2e   :  { %4491 = vmatpush3.msra.mxu0 %v4245_v41 }
 0xf2f   :  { %4492 = vmatprep.subr.mxu0 %v7747_v25 }
 0xf30   :  { %4493 = vmatpush3.msra.mxu0 %v4244_v15 }
 0xf31   :  { %4494 = vmatprep.subr.mxu0 %v7747_v25 }
 0xf32   :  { %4495 = vmatpush3.msra.mxu0 %v4243_v43 }
 0xf33   :  { %4496 = vmatprep.subr.mxu0 %v7747_v25 }
 0xf34   :  { %4497 = vmatpush3.msra.mxu0 %v4242_v37 }
 0xf35   :  { %4498 = vmatprep.subr.mxu0 %v7747_v25 }
 0xf36   :  { %4499 = vmatpush3.msra.mxu0 %v4241_v44 }
 0xf37   :  { %4500 = vmatprep.subr.mxu0 %v7747_v25 }
 0xf38   :  { %4501 = vmatpush3.msra.mxu0 %v4240_v47 }
 0xf39   :  { %4502 = vmatprep.subr.mxu0 %v7747_v25 }
 0xf3a   :  { %4503 = vmatpush3.msra.mxu0 %v4239_v40 }
 0xf3b   :  { %4504 = vmatprep.subr.mxu0 %v7747_v25  ;;  %v2740_v25 = vadd.f32 %v7756_v62, %v6501_v29 }
 0xf3c   :  { %4505 = vmatpush3.msra.mxu0 %v4238_v24 }
 0xfdd   :  { %v4130_v21 = vpop.f32.mrf.mxu0  ;;  %v4201_v12 = vpop.f32.mrf.mxu1 }
 0xfde   :  { %v4206_v1 = vadd.f32 %v4130_v21, %v2625_v32  ;;  %v4208_v46 = vadd.f32 %v4201_v12, %v2738_v17 }
 0xfdf   :  { %v4132_v2 = vpop.f32.mrf.mxu0  ;;  %v4203_v14 = vpop.f32.mrf.mxu1 }
 0xfe0   :  { %v4451_v5 = vmul.f32 -1.442695, %v4206_v1  ;;  %v4207_v49 = vadd.f32 %v4132_v2, %v2627_v27  ;;  %v4209_v9 = vadd.f32 %v4203_v14, %v2740_v25 }
 0xfe2   :  { %4760 = vpow2.f32 %v4451_v5  ;;  %v4452_v19 = vmul.f32 -1.442695, %v4207_v49  ;;  %v4453_v11 = vmul.f32 -1.442695, %v4209_v9 }
 0xfe4   :  { %4762 = vpow2.f32 %v4452_v19 }
 0xfe5   :  { %4764 = vtanh.f32 %v4208_v46 }
 0xfe6   :  { %4766 = vpow2.f32 %v4453_v11 }
 0xfef   :  { %v4761_v6 = vpop.eup %4760 }
 0xff0   :  { %v4213_v33 = vadd.f32 1.0, %v4761_v6 }
 0xff1   :  { %v4763_v30 = vpop.eup %4762 }
 0xff2   :  { %4768 = vrcp.f32 %v4213_v33  ;;  %v4219_v23 = vadd.f32 1.0, %v4763_v30  ;;  %v4765_v10 = vpop.eup %4764 }
 0xff3   :  { %v4767_v13 = vpop.eup %4766 }
 0xff4   :  { %4770 = vrcp.f32 %v4219_v23  ;;  %v4226_v29 = vadd.f32 1.0, %v4767_v13 }
 0xff6   :  { %4772 = vrcp.f32 %v4226_v29 }
 0xfff   :  { %v4769_v39 = vpop.eup %4768 }
0x1000   :  { %v4230_v31 = vmul.f32 %v4769_v39, %v4765_v10 }
0x1001   :  { %v4771_v42 = vpop.eup %4770 }
0x1002   :  { %v4229_v50 = vmul.f32 %v4771_v42, %v7107_v58 }
0x1003   :  { %v4773_v34 = vpop.eup %4772 }
0x1004   :  { %v4231_v16 = vadd.f32 %v4230_v31, %v4229_v50 }
0x1006   :  { %4455 = vst [vmem:[%s7161_s14 + $0x8] sm:$0xff] %v4231_v16  ;;  %4774 = vtanh.f32 %v4231_v16 }
0x1013   :  { %v4775_v54 = vpop.eup %4774 }
0x1014   :  { %v4233_v36 = vmul.f32 %v4775_v54, %v4773_v34 }
0x1016   :  { %4454 = vst [vmem:[%s7160_s13 + $0x8] sm:$0xff] %v4233_v36  ;;  %4507 = vmatmul.mubr.f32.vlgmr.msra.gmra.mxu0 %v4233_v36 }
0x10d6   :  { %v4327_v35 = vpop.f32.mrf.mxu0 }
0x10d7   :  { %v4328_v20 = vadd.f32 %v4456_v22, %v4327_v35 }
0x10d8   :  { %v4508_v4 = vpop.f32.mrf.mxu0 }
0x10d9   :  { %4331 = vmax.xlane.f32.xlu0 %v4328_v20 }
0x1162   :  { %v4332_v8 = vpop.xlane.xlu0 %4331 }
0x1163   :  { %v4333_v59 = vsub.f32 %v4328_v20, %v4332_v8 }
0x1165   :  { %v4334_v60 = vmul.f32 1.442695, %v4333_v59 }
0x1167   :  { %4776 = vpow2.f32 %v4334_v60 }
0x1174   :  { %v4777_v63 = vpop.eup %4776 }
0x1175   :  { %4336 = vadd.xlane.f32.xlu0 %v4777_v63 }
0x11fe   :  { %v4337_v61 = vpop.xlane.xlu0 %4336 }
0x11ff   :  { %4778 = vrcp.f32 %v4337_v61 }
0x120c   :  { %v4779_v57 = vpop.eup %4778 }
0x120d   :  { %v4339_v58 = vmul.f32 %v4779_v57, %v4777_v63 }
0x120f   :  { %4340 = vst [vmem:[%s7159_s12] sm:$0xff] %v4339_v58 }
0x1210   :  { %4353 = vsyncpa [#allocation6], 1 }
0x1211   :  { %4354 = vsyncpa [#allocation10], 1 }
0x1212   :  { %4355 = vsyncpa [#allocation13], 1 }
0x1213   :  { %4356 = vsyncpa [#allocation7], 1 }

</bundles_post_ra>
